<compile_context>
chip_gen: v7x
topology: tpu7x:2x2x1
jax: 0.10.0
libtpu: 0.0.40
codegen_flags: <defaults>
</compile_context>

<pallas_src>
import math
import functools
import numpy as np

import jax
import jax.numpy as jnp
from jax import lax
from jax.experimental import pallas as pl
from jax.experimental.pallas import tpu as pltpu


# ---------------------------------------------------------------------------
# Small helpers
# ---------------------------------------------------------------------------
def _round_up(x, m):
    return ((x + m - 1) // m) * m


def _pad2d(x, rows, cols):
    r, c = x.shape
    if r == rows and c == cols:
        return x
    return jnp.pad(x, ((0, rows - r), (0, cols - c)))


def _cparams(sem, vmem_mb=32):
    return pltpu.CompilerParams(dimension_semantics=sem,
                                vmem_limit_bytes=vmem_mb * 1024 * 1024)


def bn_affine(gamma, beta, eps=1e-5):
    # fresh BatchNorm1d in eval(): running_mean=0, running_var=1 -> pure affine
    return gamma / jnp.sqrt(1.0 + eps), beta


# ---------------------------------------------------------------------------
# Pallas kernel 1: fused Linear  (x @ W^T + b, BN folded, PReLU/ReLU epilogue)
# ---------------------------------------------------------------------------
def _linear_kernel(x_ref, w_ref, b_ref, a_ref, o_ref):
    y = jnp.dot(x_ref[...].astype(jnp.bfloat16),
                w_ref[...].astype(jnp.bfloat16),
                preferred_element_type=jnp.float32)
    y = y + b_ref[...]
    a = a_ref[...]
    # prelu: a = 1 -> identity, a = 0 -> relu, a = param -> PReLU
    o_ref[...] = jnp.where(y >= 0.0, y, a * y)


def fused_linear(x, w, b=None, prelu_a=None, bn_scale=None, bn_shift=None,
                 tile_m=256):
    """y = prelu( (x * bn_scale + bn_shift) @ w.T + b ).  w is [out, in]."""
    x = jnp.asarray(x, jnp.float32)
    w = jnp.asarray(w, jnp.float32)
    out_d, in_d = w.shape
    M = x.shape[0]

    bias = jnp.zeros((out_d,), jnp.float32) if b is None else jnp.asarray(b, jnp.float32)
    if bn_scale is not None:
        bias = bias + w @ jnp.asarray(bn_shift, jnp.float32)          # W @ shift
        w = w * jnp.asarray(bn_scale, jnp.float32)[None, :]           # W * scale

    if prelu_a is None:
        a = jnp.ones((out_d,), jnp.float32)
    else:
        a = jnp.broadcast_to(jnp.asarray(prelu_a, jnp.float32), (out_d,))

    # pad the output axis to a lane-dense multiple of 128 -> unmasked stores
    out_pad = _round_up(out_d, 128)
    wt = _pad2d(w.T, in_d, out_pad)                                   # [in, out_pad]
    bias_p = _pad2d(bias.reshape(1, out_d), 1, out_pad)
    a_p = _pad2d(a.reshape(1, out_d), 1, out_pad)

    M_pad = _round_up(max(M, 1), 8)
    tile = min(tile_m, M_pad)
    M_pad = _round_up(M_pad, tile)
    xp = _pad2d(x, M_pad, in_d)

    out = pl.pallas_call(
        _linear_kernel,
        out_shape=jax.ShapeDtypeStruct((M_pad, out_pad), jnp.float32),
        grid=(M_pad // tile,),
        in_specs=[pl.BlockSpec((tile, in_d), lambda i: (i, 0)),
                  pl.BlockSpec((in_d, out_pad), lambda i: (0, 0)),
                  pl.BlockSpec((1, out_pad), lambda i: (0, 0)),
                  pl.BlockSpec((1, out_pad), lambda i: (0, 0))],
        out_specs=pl.BlockSpec((tile, out_pad), lambda i: (i, 0)),
        compiler_params=_cparams(("parallel",)),
    )(xp, wt, bias_p, a_p)
    return out[:M, :out_d]


# ---------------------------------------------------------------------------
# Pallas kernel 2: fused segment attention
#   e = sigmoid(feat_e) @ w_e^T  -> segment softmax (by int32 seg id) ->
#   weighted sum of values -> optional PReLU.  Edge/node axis tiled with an
#   online-softmax accumulator.
# ---------------------------------------------------------------------------
def _seg_attn_kernel(seg_ref, fe_ref, we_ref, v_ref, a_ref, o_ref,
                     m_sc, l_sc, acc_sc):
    t = pl.program_id(0)

    @pl.when(t == 0)
    def _():
        m_sc[...] = jnp.full_like(m_sc, -1e30)
        l_sc[...] = jnp.zeros_like(l_sc)
        acc_sc[...] = jnp.zeros_like(acc_sc)

    S = o_ref.shape[0]
    seg = seg_ref[...]                                     # [1, Tm] int32
    Tm = seg.shape[1]

    sig = jax.nn.sigmoid(fe_ref[...])                      # [Tm, De]
    # per-element logit, lane-major [1, Tm] (lane-dense, no [M,1] stores)
    e_row = lax.dot_general(we_ref[...].astype(jnp.bfloat16),
                            sig.astype(jnp.bfloat16),
                            (((1,), (1,)), ((), ())),
                            preferred_element_type=jnp.float32)      # [1, Tm]

    row_ids = lax.broadcasted_iota(jnp.int32, (S, Tm), 0)  # segment id per row
    mask = row_ids == seg                                  # [S, Tm] membership
    neg = jnp.float32(-1e30)
    scores = jnp.where(mask, jnp.broadcast_to(e_row, (S, Tm)), neg)

    m_new = jnp.maximum(m_sc[...], jnp.max(scores, axis=1, keepdims=True))
    alpha = jnp.exp(m_sc[...] - m_new)
    p = jnp.exp(scores - m_new) * mask.astype(jnp.float32)
    l_sc[...] = alpha * l_sc[...] + jnp.sum(p, axis=1, keepdims=True)
    acc_sc[...] = alpha * acc_sc[...] + jnp.dot(
        p.astype(jnp.bfloat16), v_ref[...].astype(jnp.bfloat16),
        preferred_element_type=jnp.float32)
    m_sc[...] = m_new

    @pl.when(t == pl.num_programs(0) - 1)
    def _():
        inv_l = pl.reciprocal(jnp.maximum(l_sc[...], 1e-30), approx=True)
        out = acc_sc[...] * inv_l
        a = a_ref[...]
        o_ref[...] = jnp.where(out >= 0.0, out, a * out)


def pallas_segment_attention(seg_ids, feat_e, w_e, values, num_segments,
                             prelu_a=None, tile_m=512):
    feat_e = jnp.asarray(feat_e, jnp.float32)
    values = jnp.asarray(values, jnp.float32)
    w_e = jnp.asarray(w_e, jnp.float32).reshape(1, -1)     # [1, De]
    M, De = feat_e.shape
    Dv = values.shape[1]
    S = int(num_segments)
    S_pad = _round_up(max(S, 1), 8)

    M_pad = _round_up(max(M, 1), 128)
    tile = min(tile_m, M_pad)
    M_pad = _round_up(M_pad, tile)

    seg = jnp.full((1, M_pad), -1, jnp.int32)
    seg = seg.at[0, :M].set(jnp.asarray(seg_ids, jnp.int32))
    fe = _pad2d(feat_e, M_pad, De)
    vv = _pad2d(values, M_pad, Dv)
    if prelu_a is None:
        a = jnp.ones((1, Dv), jnp.float32)
    else:
        a = jnp.broadcast_to(jnp.asarray(prelu_a, jnp.float32), (Dv,)).reshape(1, Dv)

    out = pl.pallas_call(
        _seg_attn_kernel,
        out_shape=jax.ShapeDtypeStruct((S_pad, Dv), jnp.float32),
        grid=(M_pad // tile,),
        in_specs=[pl.BlockSpec((1, tile), lambda t: (0, t)),
                  pl.BlockSpec((tile, De), lambda t: (t, 0)),
                  pl.BlockSpec((1, De), lambda t: (0, 0)),
                  pl.BlockSpec((tile, Dv), lambda t: (t, 0)),
                  pl.BlockSpec((1, Dv), lambda t: (0, 0))],
        out_specs=pl.BlockSpec((S_pad, Dv), lambda t: (0, 0)),
        scratch_shapes=[pltpu.VMEM((S_pad, 1), jnp.float32),
                        pltpu.VMEM((S_pad, 1), jnp.float32),
                        pltpu.VMEM((S_pad, Dv), jnp.float32)],
        compiler_params=_cparams(("arbitrary",)),
    )(seg, fe, w_e, vv, a)
    return out[:S]


# ---------------------------------------------------------------------------
# Pallas kernel 3: logits = sr @ renorm(emb).T, tiled over items,
#   max_norm=1 renorm fused in-kernel, bf16 MXU operands, lane-dense output.
# ---------------------------------------------------------------------------
def _logits_kernel(sr_ref, emb_ref, o_ref):
    emb = emb_ref[...]                                     # [tile_n, D]
    nrm = jnp.sqrt(jnp.sum(emb * emb, axis=1, keepdims=True))
    scale = jnp.where(nrm > 1.0, 1.0 / (nrm + 1e-7), 1.0)  # max_norm=1
    et = (emb * scale).astype(jnp.bfloat16)
    s = sr_ref[...].astype(jnp.bfloat16)
    # contract the shared D axis directly (no emb.T materialization)
    o_ref[...] = lax.dot_general(s, et, (((1,), (1,)), ((), ())),
                                 preferred_element_type=jnp.float32)


def pallas_logits(sr, emb, tile_n=1024):
    # TODO(synk): for very large embedding_dim, also tile the D (contraction)
    # axis with an f32 VMEM accumulator; D fits a single block at typical sizes.
    sr = jnp.asarray(sr, jnp.float32)
    emb = jnp.asarray(emb, jnp.float32)
    B, D = sr.shape
    V = emb.shape[0]
    B_pad = _round_up(B, 8)
    tile = min(tile_n, _round_up(V, 128))
    V_pad = _round_up(V, tile)
    srp = _pad2d(sr, B_pad, D)
    embp = _pad2d(emb, V_pad, D)

    out = pl.pallas_call(
        _logits_kernel,
        out_shape=jax.ShapeDtypeStruct((B_pad, V_pad), jnp.float32),
        grid=(V_pad // tile,),
        in_specs=[pl.BlockSpec((B_pad, D), lambda n: (0, 0)),
                  pl.BlockSpec((tile, D), lambda n: (n, 0))],
        out_specs=pl.BlockSpec((B_pad, tile), lambda n: (0, n)),
        compiler_params=_cparams(("parallel",)),
    )(srp, embp)
    return out[:B, :V]


# ---------------------------------------------------------------------------
# JAX glue (positional encoding, layer norm, tiny per-head attention)
# ---------------------------------------------------------------------------
def layer_norm(x, gamma, beta, eps=1e-5):
    mu = jnp.mean(x, axis=-1, keepdims=True)
    var = jnp.mean((x - mu) ** 2, axis=-1, keepdims=True)
    return (x - mu) / jnp.sqrt(var + eps) * gamma + beta


def positional_encoding(length, d_model):
    pos = np.arange(length, dtype=np.float32)[:, None]
    div = np.exp(np.arange(0, d_model, 2, dtype=np.float32)
                 * (-math.log(10000.0) / d_model))
    pe = np.zeros((length, d_model), np.float32)
    pe[:, 0::2] = np.sin(pos * div)
    pe[:, 1::2] = np.cos(pos * div)
    return jnp.asarray(pe)


def transformer_encoder_layer(x, valid_mask, p, nhead=8):
    """nn.TransformerEncoderLayer (post-norm, relu, dropout=0 at eval).

    x: [Nn, L, d]; valid_mask: [Nn, L] bool — key positions that exist
    (emulates DGL degree bucketing for the positions actually used).
    """
    Nn, L, d = x.shape
    hd = d // nhead
    xf = x.reshape(Nn * L, d)

    qkv = fused_linear(xf, p['in_proj_w'], p['in_proj_b'])            # [Nn*L, 3d]
    qkv = qkv.reshape(Nn, L, 3, nhead, hd)
    q = qkv[:, :, 0].transpose(0, 2, 1, 3) * (1.0 / math.sqrt(hd))
    k = qkv[:, :, 1].transpose(0, 2, 1, 3)
    v = qkv[:, :, 2].transpose(0, 2, 1, 3)                            # [Nn,h,L,hd]

    # tiny per-head attention (L <= max in-degree, here 2) kept in JAX glue
    scores = jnp.einsum('nhld,nhmd->nhlm', q, k)
    scores = jnp.where(valid_mask[:, None, None, :], scores, -1e30)
    attn = jax.nn.softmax(scores, axis=-1)
    ctx = jnp.einsum('nhlm,nhmd->nhld', attn, v)
    ctx = ctx.transpose(0, 2, 1, 3).reshape(Nn * L, d)

    attn_out = fused_linear(ctx, p['out_proj_w'], p['out_proj_b']).reshape(Nn, L, d)
    x = layer_norm(x + attn_out, p['ln1_g'], p['ln1_b'])

    xf = x.reshape(Nn * L, d)
    h = fused_linear(xf, p['ff1_w'], p['ff1_b'], prelu_a=0.0)         # relu fused
    h = fused_linear(h, p['ff2_w'], p['ff2_b']).reshape(Nn, L, d)
    x = layer_norm(x + h, p['ln2_g'], p['ln2_b'])
    return x


# ---------------------------------------------------------------------------
# LESSR sub-modules
# ---------------------------------------------------------------------------
def eopa_forward(feat, mailbox_src, mailbox_mask, deg, p):
    s, b = bn_affine(p['bn_g'], p['bn_b'])
    feat_bn = feat * s + b                                 # feat_drop = 0
    N, Din = feat_bn.shape
    L = mailbox_src.shape[1]

    # mailbox of copy_u messages, padded to max in-degree, edge-id ordered
    msgs = feat_bn[mailbox_src] * mailbox_mask[:, :, None]            # [N, L, Din]
    msgs = msgs + positional_encoding(L, Din)[None, :, :]
    h = transformer_encoder_layer(msgs, mailbox_mask > 0.5, p['tf'])

    last_pos = jnp.maximum(deg - 1, 0)
    hn = h[jnp.arange(N), last_pos]                                   # [N, Din]
    neigh = jnp.where((deg > 0)[:, None], hn, 0.0)

    # fc_self(feat_bn) + fc_neigh(neigh) fused into one MXU pass
    x2 = jnp.concatenate([feat_bn, neigh], axis=1)                    # [N, 2Din]
    w2 = jnp.concatenate([p['fc_self_w'], p['fc_neigh_w']], axis=1)   # [D, 2Din]
    return fused_linear(x2, w2, prelu_a=p['prelu_a'])


def sgat_forward(feat, sg_src, sg_dst, p):
    s, b = bn_affine(p['bn_g'], p['bn_b'])
    D = p['fc_q_w'].shape[0]
    N = feat.shape[0]

    # one MXU pass for q/k/v, BatchNorm folded into the stacked weight
    w_qkv = jnp.concatenate([p['fc_q_w'], p['fc_k_w'], p['fc_v_w']], axis=0)
    b_qkv = jnp.concatenate([p['fc_q_b'], jnp.zeros((2 * D,), jnp.float32)])
    qkv = fused_linear(feat, w_qkv, b_qkv, bn_scale=s, bn_shift=b)    # [N, 3D]
    q, k, v = qkv[:, :D], qkv[:, D:2 * D], qkv[:, 2 * D:]

    feat_e = q[sg_src] + k[sg_dst]                                    # u_add_v
    vals = v[sg_src]
    # sigmoid + fc_e + edge_softmax + u_mul_e_sum + PReLU fused in one kernel
    return pallas_segment_attention(sg_dst, feat_e, p['fc_e_w'], vals,
                                    num_segments=N, prelu_a=p['prelu_a'])


def readout_forward(feat, last_nodes, graph_id, num_graphs, p):
    s, b = bn_affine(p['bn_g'], p['bn_b'])
    feat_bn = feat * s + b
    H = p['fc_u_w'].shape[0]

    # fc_u and fc_v share one MXU pass over feat_bn
    w_uv = jnp.concatenate([p['fc_u_w'], p['fc_v_w']], axis=0)        # [2H, 3D]
    b_uv = jnp.concatenate([jnp.zeros((H,), jnp.float32), p['fc_v_b']])
    uv = fused_linear(feat_bn, w_uv, b_uv)                            # [N, 2H]
    feat_u = uv[:, :H]
    feat_v = uv[:, H:]
    feat_v_b = feat_v[last_nodes][graph_id]      # broadcast_nodes via gather

    feat_e = feat_u + feat_v_b
    # sigmoid + fc_e + segment softmax over graph nodes + weighted sum
    attn = pallas_segment_attention(graph_id, feat_e, p['fc_e_w'], feat_bn,
                                    num_segments=num_graphs)          # [B, 3D]
    return fused_linear(attn, p['fc_out_w'], prelu_a=p['prelu_a'])


def lessr_forward(params, iid, mailbox_src, mailbox_mask, deg,
                  sg_src, sg_dst, graph_id, last_nodes, num_graphs):
    emb = params['embedding']

    # Embedding max_norm=1: renormalize only the gathered rows here; the full
    # table renorm for the logits is fused into the logits kernel.
    rows = emb[iid]
    nrm = jnp.linalg.norm(rows, axis=1, keepdims=True)
    feat = rows * jnp.where(nrm > 1.0, 1.0 / (nrm + 1e-7), 1.0)       # [N, D]

    out0 = eopa_forward(feat, mailbox_src, mailbox_mask, deg, params['layer0'])
    feat = jnp.concatenate([out0, feat], axis=1)                      # [N, 2D]

    out1 = sgat_forward(feat, sg_src, sg_dst, params['layer1'])
    feat = jnp.concatenate([out1, feat], axis=1)                      # [N, 3D]

    sr_g = readout_forward(feat, last_nodes, graph_id, num_graphs,
                           params['readout'])
    sr_l = feat[last_nodes]                                           # [B, 3D]
    sr = jnp.concatenate([sr_l, sr_g], axis=1)                        # [B, 4D]

    # final BatchNorm folded into fc_sr
    s, b = bn_affine(params['bn_g'], params['bn_b'])
    sr = fused_linear(sr, params['fc_sr_w'], bn_scale=s, bn_shift=b)  # [B, D]

    logits = pallas_logits(sr, emb)                                   # [B, V]
    return logits


# single jit of the whole forward: const-folds padding / weight-stacking glue
# and issues all pallas_calls from one XLA program.
lessr_forward_jit = jax.jit(lessr_forward, static_argnames=("num_graphs",))


# ---------------------------------------------------------------------------
# Deterministic parameter initialization (shapes per module __init__)
# ---------------------------------------------------------------------------
def init_params(key, num_items, D):
    keys = iter(jax.random.split(key, 64))

    def nk():
        return next(keys)

    def lin(out_d, in_d):
        b = 1.0 / math.sqrt(in_d)
        return jax.random.uniform(nk(), (out_d, in_d), jnp.float32, -b, b)

    def vec(in_d, shape):
        b = 1.0 / math.sqrt(in_d)
        return jax.random.uniform(nk(), shape, jnp.float32, -b, b)

    params = {'embedding': jax.random.normal(nk(), (num_items, D), jnp.float32)}

    # layer 0: EOPA(input=D, output=D) + 1-layer TransformerEncoder(d=D, heads=8, ff=512)
    d_in = D
    params['layer0'] = {
        'bn_g': jnp.ones((d_in,)), 'bn_b': jnp.zeros((d_in,)),
        'fc_self_w': lin(D, d_in), 'fc_neigh_w': lin(D, d_in),
        'prelu_a': jnp.full((D,), 0.25, jnp.float32),
        'tf': {
            'in_proj_w': lin(3 * d_in, d_in), 'in_proj_b': jnp.zeros((3 * d_in,)),
            'out_proj_w': lin(d_in, d_in),    'out_proj_b': jnp.zeros((d_in,)),
            'ln1_g': jnp.ones((d_in,)), 'ln1_b': jnp.zeros((d_in,)),
            'ff1_w': lin(512, d_in), 'ff1_b': vec(d_in, (512,)),
            'ff2_w': lin(d_in, 512), 'ff2_b': vec(512, (d_in,)),
            'ln2_g': jnp.ones((d_in,)), 'ln2_b': jnp.zeros((d_in,)),
        },
    }
    # layer 1: SGAT(input=2D, hidden=D, output=D)
    d_in = 2 * D
    params['layer1'] = {
        'bn_g': jnp.ones((d_in,)), 'bn_b': jnp.zeros((d_in,)),
        'fc_q_w': lin(D, d_in), 'fc_q_b': vec(d_in, (D,)),
        'fc_k_w': lin(D, d_in), 'fc_v_w': lin(D, d_in),
        'fc_e_w': lin(1, D),
        'prelu_a': jnp.full((D,), 0.25, jnp.float32),
    }
    # readout: AttnReadout(input=3D, hidden=D, output=D)
    d_in = 3 * D
    params['readout'] = {
        'bn_g': jnp.ones((d_in,)), 'bn_b': jnp.zeros((d_in,)),
        'fc_u_w': lin(D, d_in),
        'fc_v_w': lin(D, d_in), 'fc_v_b': vec(d_in, (D,)),
        'fc_e_w': lin(1, D),
        'fc_out_w': lin(D, d_in),
        'prelu_a': jnp.full((D,), 0.25, jnp.float32),
    }
    d_in = 4 * D
    params['bn_g'] = jnp.ones((d_in,))
    params['bn_b'] = jnp.zeros((d_in,))
    params['fc_sr_w'] = lin(D, d_in)
    return params


# ---------------------------------------------------------------------------
# Example run
# ---------------------------------------------------------------------------
if __name__ == "__main__":
    num_items, D, B, N = 64, 32, 2, 8

    key = jax.random.PRNGKey(0)
    k_params, k_iid = jax.random.split(key)
    params = init_params(k_params, num_items, D)

    # batch of 2 sessions: nodes 0-2 -> graph 0, nodes 3-7 -> graph 1
    iid = jax.random.randint(k_iid, (N,), 0, num_items)
    graph_id = jnp.asarray(np.array([0, 0, 0, 1, 1, 1, 1, 1], np.int32))
    last_nodes = jnp.asarray([2, 7], dtype=jnp.int32)

    # EOPA multigraph (mg) edges, ordered by edge id (DGL mailbox order)
    mg_src = np.array([0, 1, 0, 3, 4, 3, 5, 6], np.int32)
    mg_dst = np.array([1, 2, 2, 4, 5, 5, 6, 7], np.int32)
    Lmax = 2
    mailbox_src = np.zeros((N, Lmax), np.int32)
    mailbox_mask = np.zeros((N, Lmax), np.float32)
    deg = np.zeros((N,), np.int32)
    for s, d in zip(mg_src, mg_dst):
        mailbox_src[d, deg[d]] = s
        mailbox_mask[d, deg[d]] = 1.0
        deg[d] += 1

    # SGAT shortcut graph (sg) edges: self-loops + a few shortcuts
    sg_src = np.array([0, 1, 2, 3, 4, 5, 6, 7, 0, 3, 3, 4, 5], np.int32)
    sg_dst = np.array([0, 1, 2, 3, 4, 5, 6, 7, 2, 5, 6, 7, 7], np.int32)

    logits = lessr_forward_jit(
        params,
        jnp.asarray(iid),
        jnp.asarray(mailbox_src),
        jnp.asarray(mailbox_mask),
        jnp.asarray(deg),
        jnp.asarray(sg_src),
        jnp.asarray(sg_dst),
        graph_id,
        last_nodes,
        num_graphs=B,
    )
    jax.block_until_ready(logits)
    assert logits.shape == (B, num_items)
    assert bool(jnp.all(jnp.isfinite(logits)))
    print("KERNEL_OK")
</pallas_src>

<mosaic_0001>
module attributes {stable_mosaic.version = 11 : i64} {
  func.func @_linear_kernel(%arg0: i32, %arg1: memref<16x32xf32, #tpu.memory_space<vmem>>, %arg2: memref<32x128xf32, #tpu.memory_space<vmem>>, %arg3: memref<1x128xf32, #tpu.memory_space<vmem>>, %arg4: memref<1x128xf32, #tpu.memory_space<vmem>>, %arg5: memref<16x128xf32, #tpu.memory_space<vmem>>) attributes {dimension_semantics = [#tpu.dimension_semantics<parallel>], iteration_bounds = array<i64: 1>, scalar_prefetch = 0 : i64, scratch_operands = 0 : i64, tpu.core_type = #tpu.core_type<tc>, window_params = [{transform_indices = @transform_0, window_bounds = array<i64: 16, 32>}, {pipeline_mode = #tpu.pipeline_mode<synchronous>, transform_indices = @transform_1, window_bounds = array<i64: 32, 128>}, {pipeline_mode = #tpu.pipeline_mode<synchronous>, transform_indices = @transform_2, window_bounds = array<i64: 1, 128>}, {pipeline_mode = #tpu.pipeline_mode<synchronous>, transform_indices = @transform_3, window_bounds = array<i64: 1, 128>}, {transform_indices = @transform_4, window_bounds = array<i64: 16, 128>}]} {
    %c0 = arith.constant 0 : index
    %c0_0 = arith.constant 0 : index
    %0 = vector.load %arg1[%c0, %c0_0] : memref<16x32xf32, #tpu.memory_space<vmem>>, vector<16x32xf32>
    %1 = arith.truncf %0 : vector<16x32xf32> to vector<16x32xbf16>
    %c0_1 = arith.constant 0 : index
    %c0_2 = arith.constant 0 : index
    %2 = vector.load %arg2[%c0_1, %c0_2] : memref<32x128xf32, #tpu.memory_space<vmem>>, vector<32x128xf32>
    %3 = arith.truncf %2 : vector<32x128xf32> to vector<32x128xbf16>
    %cst = arith.constant dense<0.000000e+00> : vector<16x128xf32>
    %4 = tpu.matmul %1, %3, %cst {dimension_numbers = #tpu.dot_dimension_numbers<[1], [0], [0], [1], [0, 0, 1, 1], [], []>} : vector<16x32xbf16>, vector<32x128xbf16>, vector<16x128xf32> -> vector<16x128xf32>
    %c0_3 = arith.constant 0 : index
    %c0_4 = arith.constant 0 : index
    %5 = vector.load %arg3[%c0_3, %c0_4] : memref<1x128xf32, #tpu.memory_space<vmem>>, vector<1x128xf32>
    %6 = vector.broadcast %5 : vector<1x128xf32> to vector<16x128xf32>
    %7 = arith.addf %4, %6 : vector<16x128xf32>
    %c0_5 = arith.constant 0 : index
    %c0_6 = arith.constant 0 : index
    %8 = vector.load %arg4[%c0_5, %c0_6] : memref<1x128xf32, #tpu.memory_space<vmem>>, vector<1x128xf32>
    %cst_7 = arith.constant 0.000000e+00 : f32
    %9 = vector.broadcast %cst_7 : f32 to vector<16x128xf32>
    %10 = arith.cmpf oge, %7, %9 : vector<16x128xf32>
    %11 = vector.broadcast %8 : vector<1x128xf32> to vector<16x128xf32>
    %12 = arith.mulf %11, %7 : vector<16x128xf32>
    %13 = arith.select %10, %7, %12 : vector<16x128xi1>, vector<16x128xf32>
    %c0_8 = arith.constant 0 : index
    %c0_9 = arith.constant 0 : index
    %14 = vector.load %arg5[%c0_8, %c0_9] : memref<16x128xf32, #tpu.memory_space<vmem>>, vector<16x128xf32>
    tpu.vector_store %arg5[%c0_8, %c0_9], %13 {strides = array<i32>} : memref<16x128xf32, #tpu.memory_space<vmem>>, vector<16x128xf32>,
    return
  }
  func.func @transform_0(%arg0: i32) -> (i32, i32) {
    %c0_i32 = arith.constant 0 : i32
    %c0_i32_0 = arith.constant 0 : i32
    return %arg0, %c0_i32 : i32, i32
  }
  func.func @transform_1(%arg0: i32) -> (i32, i32) {
    %c0_i32 = arith.constant 0 : i32
    %c0_i32_0 = arith.constant 0 : i32
    %c0_i32_1 = arith.constant 0 : i32
    return %c0_i32, %c0_i32_0 : i32, i32
  }
  func.func @transform_2(%arg0: i32) -> (i32, i32) {
    %c0_i32 = arith.constant 0 : i32
    %c0_i32_0 = arith.constant 0 : i32
    %c0_i32_1 = arith.constant 0 : i32
    return %c0_i32, %c0_i32_0 : i32, i32
  }
  func.func @transform_3(%arg0: i32) -> (i32, i32) {
    %c0_i32 = arith.constant 0 : i32
    %c0_i32_0 = arith.constant 0 : i32
    %c0_i32_1 = arith.constant 0 : i32
    return %c0_i32, %c0_i32_0 : i32, i32
  }
  func.func @transform_4(%arg0: i32) -> (i32, i32) {
    %c0_i32 = arith.constant 0 : i32
    %c0_i32_0 = arith.constant 0 : i32
    return %arg0, %c0_i32 : i32, i32
  }
}

module attributes {stable_mosaic.version = 11 : i64} {
  func.func @_linear_kernel(%arg0: i32, %arg1: memref<16x512xf32, #tpu.memory_space<vmem>>, %arg2: memref<512x128xf32, #tpu.memory_space<vmem>>, %arg3: memref<1x128xf32, #tpu.memory_space<vmem>>, %arg4: memref<1x128xf32, #tpu.memory_space<vmem>>, %arg5: memref<16x128xf32, #tpu.memory_space<vmem>>) attributes {dimension_semantics = [#tpu.dimension_semantics<parallel>], iteration_bounds = array<i64: 1>, scalar_prefetch = 0 : i64, scratch_operands = 0 : i64, tpu.core_type = #tpu.core_type<tc>, window_params = [{transform_indices = @transform_0, window_bounds = array<i64: 16, 512>}, {pipeline_mode = #tpu.pipeline_mode<synchronous>, transform_indices = @transform_1, window_bounds = array<i64: 512, 128>}, {pipeline_mode = #tpu.pipeline_mode<synchronous>, transform_indices = @transform_2, window_bounds = array<i64: 1, 128>}, {pipeline_mode = #tpu.pipeline_mode<synchronous>, transform_indices = @transform_3, window_bounds = array<i64: 1, 128>}, {transform_indices = @transform_4, window_bounds = array<i64: 16, 128>}]} {
    %c0 = arith.constant 0 : index
    %c0_0 = arith.constant 0 : index
    %0 = vector.load %arg1[%c0, %c0_0] : memref<16x512xf32, #tpu.memory_space<vmem>>, vector<16x512xf32>
    %1 = arith.truncf %0 : vector<16x512xf32> to vector<16x512xbf16>
    %c0_1 = arith.constant 0 : index
    %c0_2 = arith.constant 0 : index
    %2 = vector.load %arg2[%c0_1, %c0_2] : memref<512x128xf32, #tpu.memory_space<vmem>>, vector<512x128xf32>
    %3 = arith.truncf %2 : vector<512x128xf32> to vector<512x128xbf16>
    %cst = arith.constant dense<0.000000e+00> : vector<16x128xf32>
    %4 = tpu.matmul %1, %3, %cst {dimension_numbers = #tpu.dot_dimension_numbers<[1], [0], [0], [1], [0, 0, 1, 1], [], []>} : vector<16x512xbf16>, vector<512x128xbf16>, vector<16x128xf32> -> vector<16x128xf32>
    %c0_3 = arith.constant 0 : index
    %c0_4 = arith.constant 0 : index
    %5 = vector.load %arg3[%c0_3, %c0_4] : memref<1x128xf32, #tpu.memory_space<vmem>>, vector<1x128xf32>
    %6 = vector.broadcast %5 : vector<1x128xf32> to vector<16x128xf32>
    %7 = arith.addf %4, %6 : vector<16x128xf32>
    %c0_5 = arith.constant 0 : index
    %c0_6 = arith.constant 0 : index
    %8 = vector.load %arg4[%c0_5, %c0_6] : memref<1x128xf32, #tpu.memory_space<vmem>>, vector<1x128xf32>
    %cst_7 = arith.constant 0.000000e+00 : f32
    %9 = vector.broadcast %cst_7 : f32 to vector<16x128xf32>
    %10 = arith.cmpf oge, %7, %9 : vector<16x128xf32>
    %11 = vector.broadcast %8 : vector<1x128xf32> to vector<16x128xf32>
    %12 = arith.mulf %11, %7 : vector<16x128xf32>
    %13 = arith.select %10, %7, %12 : vector<16x128xi1>, vector<16x128xf32>
    %c0_8 = arith.constant 0 : index
    %c0_9 = arith.constant 0 : index
    %14 = vector.load %arg5[%c0_8, %c0_9] : memref<16x128xf32, #tpu.memory_space<vmem>>, vector<16x128xf32>
    tpu.vector_store %arg5[%c0_8, %c0_9], %13 {strides = array<i32>} : memref<16x128xf32, #tpu.memory_space<vmem>>, vector<16x128xf32>,
    return
  }
  func.func @transform_0(%arg0: i32) -> (i32, i32) {
    %c0_i32 = arith.constant 0 : i32
    %c0_i32_0 = arith.constant 0 : i32
    return %arg0, %c0_i32 : i32, i32
  }
  func.func @transform_1(%arg0: i32) -> (i32, i32) {
    %c0_i32 = arith.constant 0 : i32
    %c0_i32_0 = arith.constant 0 : i32
    %c0_i32_1 = arith.constant 0 : i32
    return %c0_i32, %c0_i32_0 : i32, i32
  }
  func.func @transform_2(%arg0: i32) -> (i32, i32) {
    %c0_i32 = arith.constant 0 : i32
    %c0_i32_0 = arith.constant 0 : i32
    %c0_i32_1 = arith.constant 0 : i32
    return %c0_i32, %c0_i32_0 : i32, i32
  }
  func.func @transform_3(%arg0: i32) -> (i32, i32) {
    %c0_i32 = arith.constant 0 : i32
    %c0_i32_0 = arith.constant 0 : i32
    %c0_i32_1 = arith.constant 0 : i32
    return %c0_i32, %c0_i32_0 : i32, i32
  }
  func.func @transform_4(%arg0: i32) -> (i32, i32) {
    %c0_i32 = arith.constant 0 : i32
    %c0_i32_0 = arith.constant 0 : i32
    return %arg0, %c0_i32 : i32, i32
  }
}

module attributes {stable_mosaic.version = 11 : i64} {
  func.func @_linear_kernel(%arg0: i32, %arg1: memref<16x32xf32, #tpu.memory_space<vmem>>, %arg2: memref<32x512xf32, #tpu.memory_space<vmem>>, %arg3: memref<1x512xf32, #tpu.memory_space<vmem>>, %arg4: memref<1x512xf32, #tpu.memory_space<vmem>>, %arg5: memref<16x512xf32, #tpu.memory_space<vmem>>) attributes {dimension_semantics = [#tpu.dimension_semantics<parallel>], iteration_bounds = array<i64: 1>, scalar_prefetch = 0 : i64, scratch_operands = 0 : i64, tpu.core_type = #tpu.core_type<tc>, window_params = [{transform_indices = @transform_0, window_bounds = array<i64: 16, 32>}, {pipeline_mode = #tpu.pipeline_mode<synchronous>, transform_indices = @transform_1, window_bounds = array<i64: 32, 512>}, {pipeline_mode = #tpu.pipeline_mode<synchronous>, transform_indices = @transform_2, window_bounds = array<i64: 1, 512>}, {pipeline_mode = #tpu.pipeline_mode<synchronous>, transform_indices = @transform_3, window_bounds = array<i64: 1, 512>}, {transform_indices = @transform_4, window_bounds = array<i64: 16, 512>}]} {
    %c0 = arith.constant 0 : index
    %c0_0 = arith.constant 0 : index
    %0 = vector.load %arg1[%c0, %c0_0] : memref<16x32xf32, #tpu.memory_space<vmem>>, vector<16x32xf32>
    %1 = arith.truncf %0 : vector<16x32xf32> to vector<16x32xbf16>
    %c0_1 = arith.constant 0 : index
    %c0_2 = arith.constant 0 : index
    %2 = vector.load %arg2[%c0_1, %c0_2] : memref<32x512xf32, #tpu.memory_space<vmem>>, vector<32x512xf32>
    %3 = arith.truncf %2 : vector<32x512xf32> to vector<32x512xbf16>
    %cst = arith.constant dense<0.000000e+00> : vector<16x512xf32>
    %4 = tpu.matmul %1, %3, %cst {dimension_numbers = #tpu.dot_dimension_numbers<[1], [0], [0], [1], [0, 0, 1, 1], [], []>} : vector<16x32xbf16>, vector<32x512xbf16>, vector<16x512xf32> -> vector<16x512xf32>
    %c0_3 = arith.constant 0 : index
    %c0_4 = arith.constant 0 : index
    %5 = vector.load %arg3[%c0_3, %c0_4] : memref<1x512xf32, #tpu.memory_space<vmem>>, vector<1x512xf32>
    %6 = vector.broadcast %5 : vector<1x512xf32> to vector<16x512xf32>
    %7 = arith.addf %4, %6 : vector<16x512xf32>
    %c0_5 = arith.constant 0 : index
    %c0_6 = arith.constant 0 : index
    %8 = vector.load %arg4[%c0_5, %c0_6] : memref<1x512xf32, #tpu.memory_space<vmem>>, vector<1x512xf32>
    %cst_7 = arith.constant 0.000000e+00 : f32
    %9 = vector.broadcast %cst_7 : f32 to vector<16x512xf32>
    %10 = arith.cmpf oge, %7, %9 : vector<16x512xf32>
    %11 = vector.broadcast %8 : vector<1x512xf32> to vector<16x512xf32>
    %12 = arith.mulf %11, %7 : vector<16x512xf32>
    %13 = arith.select %10, %7, %12 : vector<16x512xi1>, vector<16x512xf32>
    %c0_8 = arith.constant 0 : index
    %c0_9 = arith.constant 0 : index
    %14 = vector.load %arg5[%c0_8, %c0_9] : memref<16x512xf32, #tpu.memory_space<vmem>>, vector<16x512xf32>
    tpu.vector_store %arg5[%c0_8, %c0_9], %13 {strides = array<i32>} : memref<16x512xf32, #tpu.memory_space<vmem>>, vector<16x512xf32>,
    return
  }
  func.func @transform_0(%arg0: i32) -> (i32, i32) {
    %c0_i32 = arith.constant 0 : i32
    %c0_i32_0 = arith.constant 0 : i32
    return %arg0, %c0_i32 : i32, i32
  }
  func.func @transform_1(%arg0: i32) -> (i32, i32) {
    %c0_i32 = arith.constant 0 : i32
    %c0_i32_0 = arith.constant 0 : i32
    %c0_i32_1 = arith.constant 0 : i32
    return %c0_i32, %c0_i32_0 : i32, i32
  }
  func.func @transform_2(%arg0: i32) -> (i32, i32) {
    %c0_i32 = arith.constant 0 : i32
    %c0_i32_0 = arith.constant 0 : i32
    %c0_i32_1 = arith.constant 0 : i32
    return %c0_i32, %c0_i32_0 : i32, i32
  }
  func.func @transform_3(%arg0: i32) -> (i32, i32) {
    %c0_i32 = arith.constant 0 : i32
    %c0_i32_0 = arith.constant 0 : i32
    %c0_i32_1 = arith.constant 0 : i32
    return %c0_i32, %c0_i32_0 : i32, i32
  }
  func.func @transform_4(%arg0: i32) -> (i32, i32) {
    %c0_i32 = arith.constant 0 : i32
    %c0_i32_0 = arith.constant 0 : i32
    return %arg0, %c0_i32 : i32, i32
  }
}

module attributes {stable_mosaic.version = 11 : i64} {
  func.func @_linear_kernel(%arg0: i32, %arg1: memref<8x64xf32, #tpu.memory_space<vmem>>, %arg2: memref<64x128xf32, #tpu.memory_space<vmem>>, %arg3: memref<1x128xf32, #tpu.memory_space<vmem>>, %arg4: memref<1x128xf32, #tpu.memory_space<vmem>>, %arg5: memref<8x128xf32, #tpu.memory_space<vmem>>) attributes {dimension_semantics = [#tpu.dimension_semantics<parallel>], iteration_bounds = array<i64: 1>, scalar_prefetch = 0 : i64, scratch_operands = 0 : i64, tpu.core_type = #tpu.core_type<tc>, window_params = [{transform_indices = @transform_0, window_bounds = array<i64: 8, 64>}, {pipeline_mode = #tpu.pipeline_mode<synchronous>, transform_indices = @transform_1, window_bounds = array<i64: 64, 128>}, {pipeline_mode = #tpu.pipeline_mode<synchronous>, transform_indices = @transform_2, window_bounds = array<i64: 1, 128>}, {pipeline_mode = #tpu.pipeline_mode<synchronous>, transform_indices = @transform_3, window_bounds = array<i64: 1, 128>}, {transform_indices = @transform_4, window_bounds = array<i64: 8, 128>}]} {
    %c0 = arith.constant 0 : index
    %c0_0 = arith.constant 0 : index
    %0 = vector.load %arg1[%c0, %c0_0] : memref<8x64xf32, #tpu.memory_space<vmem>>, vector<8x64xf32>
    %1 = arith.truncf %0 : vector<8x64xf32> to vector<8x64xbf16>
    %c0_1 = arith.constant 0 : index
    %c0_2 = arith.constant 0 : index
    %2 = vector.load %arg2[%c0_1, %c0_2] : memref<64x128xf32, #tpu.memory_space<vmem>>, vector<64x128xf32>
    %3 = arith.truncf %2 : vector<64x128xf32> to vector<64x128xbf16>
    %cst = arith.constant dense<0.000000e+00> : vector<8x128xf32>
    %4 = tpu.matmul %1, %3, %cst {dimension_numbers = #tpu.dot_dimension_numbers<[1], [0], [0], [1], [0, 0, 1, 1], [], []>} : vector<8x64xbf16>, vector<64x128xbf16>, vector<8x128xf32> -> vector<8x128xf32>
    %c0_3 = arith.constant 0 : index
    %c0_4 = arith.constant 0 : index
    %5 = vector.load %arg3[%c0_3, %c0_4] : memref<1x128xf32, #tpu.memory_space<vmem>>, vector<1x128xf32>
    %6 = vector.broadcast %5 : vector<1x128xf32> to vector<8x128xf32>
    %7 = arith.addf %4, %6 : vector<8x128xf32>
    %c0_5 = arith.constant 0 : index
    %c0_6 = arith.constant 0 : index
    %8 = vector.load %arg4[%c0_5, %c0_6] : memref<1x128xf32, #tpu.memory_space<vmem>>, vector<1x128xf32>
    %cst_7 = arith.constant 0.000000e+00 : f32
    %9 = vector.broadcast %cst_7 : f32 to vector<8x128xf32>
    %10 = arith.cmpf oge, %7, %9 : vector<8x128xf32>
    %11 = vector.broadcast %8 : vector<1x128xf32> to vector<8x128xf32>
    %12 = arith.mulf %11, %7 : vector<8x128xf32>
    %13 = arith.select %10, %7, %12 : vector<8x128xi1>, vector<8x128xf32>
    %c0_8 = arith.constant 0 : index
    %c0_9 = arith.constant 0 : index
    %14 = vector.load %arg5[%c0_8, %c0_9] : memref<8x128xf32, #tpu.memory_space<vmem>>, vector<8x128xf32>
    tpu.vector_store %arg5[%c0_8, %c0_9], %13 {strides = array<i32>} : memref<8x128xf32, #tpu.memory_space<vmem>>, vector<8x128xf32>,
    return
  }
  func.func @transform_0(%arg0: i32) -> (i32, i32) {
    %c0_i32 = arith.constant 0 : i32
    %c0_i32_0 = arith.constant 0 : i32
    return %arg0, %c0_i32 : i32, i32
  }
  func.func @transform_1(%arg0: i32) -> (i32, i32) {
    %c0_i32 = arith.constant 0 : i32
    %c0_i32_0 = arith.constant 0 : i32
    %c0_i32_1 = arith.constant 0 : i32
    return %c0_i32, %c0_i32_0 : i32, i32
  }
  func.func @transform_2(%arg0: i32) -> (i32, i32) {
    %c0_i32 = arith.constant 0 : i32
    %c0_i32_0 = arith.constant 0 : i32
    %c0_i32_1 = arith.constant 0 : i32
    return %c0_i32, %c0_i32_0 : i32, i32
  }
  func.func @transform_3(%arg0: i32) -> (i32, i32) {
    %c0_i32 = arith.constant 0 : i32
    %c0_i32_0 = arith.constant 0 : i32
    %c0_i32_1 = arith.constant 0 : i32
    return %c0_i32, %c0_i32_0 : i32, i32
  }
  func.func @transform_4(%arg0: i32) -> (i32, i32) {
    %c0_i32 = arith.constant 0 : i32
    %c0_i32_0 = arith.constant 0 : i32
    return %arg0, %c0_i32 : i32, i32
  }
}

module attributes {stable_mosaic.version = 11 : i64} {
  func.func @_seg_attn_kernel(%arg0: i32, %arg1: memref<1x128xi32, #tpu.memory_space<vmem>>, %arg2: memref<128x32xf32, #tpu.memory_space<vmem>>, %arg3: memref<1x32xf32, #tpu.memory_space<vmem>>, %arg4: memref<128x32xf32, #tpu.memory_space<vmem>>, %arg5: memref<1x32xf32, #tpu.memory_space<vmem>>, %arg6: memref<8x32xf32, #tpu.memory_space<vmem>>, %arg7: memref<8x1xf32, #tpu.memory_space<vmem>>, %arg8: memref<8x1xf32, #tpu.memory_space<vmem>>, %arg9: memref<8x32xf32, #tpu.memory_space<vmem>>) attributes {dimension_semantics = [#tpu.dimension_semantics<arbitrary>], iteration_bounds = array<i64: 1>, scalar_prefetch = 0 : i64, scratch_operands = 3 : i64, tpu.core_type = #tpu.core_type<tc>, window_params = [{transform_indices = @transform_0, window_bounds = array<i64: 1, 128>}, {transform_indices = @transform_1, window_bounds = array<i64: 128, 32>}, {pipeline_mode = #tpu.pipeline_mode<synchronous>, transform_indices = @transform_2, window_bounds = array<i64: 1, 32>}, {transform_indices = @transform_3, window_bounds = array<i64: 128, 32>}, {pipeline_mode = #tpu.pipeline_mode<synchronous>, transform_indices = @transform_4, window_bounds = array<i64: 1, 32>}, {pipeline_mode = #tpu.pipeline_mode<synchronous>, transform_indices = @transform_5, window_bounds = array<i64: 8, 32>}]} {
    %c0_i32 = arith.constant 0 : i32
    %0 = arith.cmpi eq, %arg0, %c0_i32 : i32
    %1 = arith.extui %0 : i1 to i32
    %c0_i32_0 = arith.constant 0 : i32
    %2 = arith.cmpi ne, %1, %c0_i32_0 : i32
    scf.if %2 {
      %cst_29 = arith.constant -1.000000e+30 : f32
      %53 = vector.broadcast %cst_29 : f32 to vector<8x1xf32>
      %c0_30 = arith.constant 0 : index
      %c0_31 = arith.constant 0 : index
      %54 = vector.load %arg7[%c0_30, %c0_31] : memref<8x1xf32, #tpu.memory_space<vmem>>, vector<8x1xf32>
      tpu.vector_store %arg7[%c0_30, %c0_31], %53 {strides = array<i32>} : memref<8x1xf32, #tpu.memory_space<vmem>>, vector<8x1xf32>,
      %cst_32 = arith.constant 0.000000e+00 : f32
      %55 = vector.broadcast %cst_32 : f32 to vector<8x1xf32>
      %c0_33 = arith.constant 0 : index
      %c0_34 = arith.constant 0 : index
      %56 = vector.load %arg8[%c0_33, %c0_34] : memref<8x1xf32, #tpu.memory_space<vmem>>, vector<8x1xf32>
      tpu.vector_store %arg8[%c0_33, %c0_34], %55 {strides = array<i32>} : memref<8x1xf32, #tpu.memory_space<vmem>>, vector<8x1xf32>,
      %cst_35 = arith.constant 0.000000e+00 : f32
      %57 = vector.broadcast %cst_35 : f32 to vector<8x32xf32>
      %c0_36 = arith.constant 0 : index
      %c0_37 = arith.constant 0 : index
      %58 = vector.load %arg9[%c0_36, %c0_37] : memref<8x32xf32, #tpu.memory_space<vmem>>, vector<8x32xf32>
      tpu.vector_store %arg9[%c0_36, %c0_37], %57 {strides = array<i32>} : memref<8x32xf32, #tpu.memory_space<vmem>>, vector<8x32xf32>,
    } else {
    }
    %c0 = arith.constant 0 : index
    %c0_1 = arith.constant 0 : index
    %3 = vector.load %arg1[%c0, %c0_1] : memref<1x128xi32, #tpu.memory_space<vmem>>, vector<1x128xi32>
    %c0_2 = arith.constant 0 : index
    %c0_3 = arith.constant 0 : index
    %4 = vector.load %arg2[%c0_2, %c0_3] : memref<128x32xf32, #tpu.memory_space<vmem>>, vector<128x32xf32>
    %5 = arith.negf %4 : vector<128x32xf32>
    %6 = math.exp %5 : vector<128x32xf32>
    %cst = arith.constant 1.000000e+00 : f32
    %7 = vector.broadcast %cst : f32 to vector<128x32xf32>
    %8 = arith.addf %7, %6 : vector<128x32xf32>
    %9 = arith.divf %7, %8 : vector<128x32xf32>
    %c0_4 = arith.constant 0 : index
    %c0_5 = arith.constant 0 : index
    %10 = vector.load %arg3[%c0_4, %c0_5] : memref<1x32xf32, #tpu.memory_space<vmem>>, vector<1x32xf32>
    %11 = arith.truncf %10 : vector<1x32xf32> to vector<1x32xbf16>
    %12 = arith.truncf %9 : vector<128x32xf32> to vector<128x32xbf16>
    %cst_6 = arith.constant dense<0.000000e+00> : vector<1x128xf32>
    %13 = tpu.matmul %11, %12, %cst_6 {dimension_numbers = #tpu.dot_dimension_numbers<[1], [1], [0], [0], [0, 0, 1, 0], [], []>} : vector<1x32xbf16>, vector<128x32xbf16>, vector<1x128xf32> -> vector<1x128xf32>
    %14 = tpu.iota {dimensions = array<i32: 0>} : vector<8x128xi32>
    %15 = vector.broadcast %3 : vector<1x128xi32> to vector<8x128xi32>
    %16 = arith.cmpi eq, %14, %15 : vector<8x128xi32>
    %17 = vector.shape_cast %13 : vector<1x128xf32> to vector<1x128xf32>
    %18 = vector.broadcast %17 : vector<1x128xf32> to vector<8x128xf32>
    %cst_7 = arith.constant -1.000000e+30 : f32
    %19 = vector.broadcast %cst_7 : f32 to vector<8x128xf32>
    %20 = arith.select %16, %18, %19 : vector<8x128xi1>, vector<8x128xf32>
    %c0_8 = arith.constant 0 : index
    %c0_9 = arith.constant 0 : index
    %21 = vector.load %arg7[%c0_8, %c0_9] : memref<8x1xf32, #tpu.memory_space<vmem>>, vector<8x1xf32>
    %cst_10 = arith.constant dense<0xFF800000> : vector<8xf32>
    %22 = vector.multi_reduction <maximumf>, %20, %cst_10 [1] : vector<8x128xf32> to vector<8xf32>
    %23 = vector.shape_cast %22 : vector<8xf32> to vector<8x1xf32>
    %24 = arith.maximumf %21, %23 : vector<8x1xf32>
    %c0_11 = arith.constant 0 : index
    %c0_12 = arith.constant 0 : index
    %25 = vector.load %arg7[%c0_11, %c0_12] : memref<8x1xf32, #tpu.memory_space<vmem>>, vector<8x1xf32>
    %26 = arith.subf %25, %24 : vector<8x1xf32>
    %27 = math.exp %26 : vector<8x1xf32>
    %28 = vector.broadcast %24 : vector<8x1xf32> to vector<8x128xf32>
    %29 = arith.subf %20, %28 : vector<8x128xf32>
    %30 = math.exp %29 : vector<8x128xf32>
    %31 = arith.extui %16 : vector<8x128xi1> to vector<8x128xi32>
    %32 = arith.sitofp %31 : vector<8x128xi32> to vector<8x128xf32>
    %33 = arith.mulf %30, %32 : vector<8x128xf32>
    %c0_13 = arith.constant 0 : index
    %c0_14 = arith.constant 0 : index
    %34 = vector.load %arg8[%c0_13, %c0_14] : memref<8x1xf32, #tpu.memory_space<vmem>>, vector<8x1xf32>
    %35 = arith.mulf %27, %34 : vector<8x1xf32>
    %cst_15 = arith.constant dense<0.000000e+00> : vector<8xf32>
    %36 = vector.multi_reduction <add>, %33, %cst_15 [1] : vector<8x128xf32> to vector<8xf32>
    %37 = vector.shape_cast %36 : vector<8xf32> to vector<8x1xf32>
    %38 = arith.addf %35, %37 : vector<8x1xf32>
    %c0_16 = arith.constant 0 : index
    %c0_17 = arith.constant 0 : index
    %39 = vector.load %arg8[%c0_16, %c0_17] : memref<8x1xf32, #tpu.memory_space<vmem>>, vector<8x1xf32>
    tpu.vector_store %arg8[%c0_16, %c0_17], %38 {strides = array<i32>} : memref<8x1xf32, #tpu.memory_space<vmem>>, vector<8x1xf32>,
    %c0_18 = arith.constant 0 : index
    %c0_19 = arith.constant 0 : index
    %40 = vector.load %arg9[%c0_18, %c0_19] : memref<8x32xf32, #tpu.memory_space<vmem>>, vector<8x32xf32>
    %41 = vector.broadcast %27 : vector<8x1xf32> to vector<8x32xf32>
    %42 = arith.mulf %41, %40 : vector<8x32xf32>
    %43 = arith.truncf %33 : vector<8x128xf32> to vector<8x128xbf16>
    %c0_20 = arith.constant 0 : index
    %c0_21 = arith.constant 0 : index
    %44 = vector.load %arg4[%c0_20, %c0_21] : memref<128x32xf32, #tpu.memory_space<vmem>>, vector<128x32xf32>
    %45 = arith.truncf %44 : vector<128x32xf32> to vector<128x32xbf16>
    %cst_22 = arith.constant dense<0.000000e+00> : vector<8x32xf32>
    %46 = tpu.matmul %43, %45, %cst_22 {dimension_numbers = #tpu.dot_dimension_numbers<[1], [0], [0], [1], [0, 0, 1, 1], [], []>} : vector<8x128xbf16>, vector<128x32xbf16>, vector<8x32xf32> -> vector<8x32xf32>
    %47 = arith.addf %42, %46 : vector<8x32xf32>
    %c0_23 = arith.constant 0 : index
    %c0_24 = arith.constant 0 : index
    %48 = vector.load %arg9[%c0_23, %c0_24] : memref<8x32xf32, #tpu.memory_space<vmem>>, vector<8x32xf32>
    tpu.vector_store %arg9[%c0_23, %c0_24], %47 {strides = array<i32>} : memref<8x32xf32, #tpu.memory_space<vmem>>, vector<8x32xf32>,
    %c0_25 = arith.constant 0 : index
    %c0_26 = arith.constant 0 : index
    %49 = vector.load %arg7[%c0_25, %c0_26] : memref<8x1xf32, #tpu.memory_space<vmem>>, vector<8x1xf32>
    tpu.vector_store %arg7[%c0_25, %c0_26], %24 {strides = array<i32>} : memref<8x1xf32, #tpu.memory_space<vmem>>, vector<8x1xf32>,
    %c0_i32_27 = arith.constant 0 : i32
    %50 = arith.cmpi eq, %arg0, %c0_i32_27 : i32
    %51 = arith.extui %50 : i1 to i32
    %c0_i32_28 = arith.constant 0 : i32
    %52 = arith.cmpi ne, %51, %c0_i32_28 : i32
    scf.if %52 {
      %c0_29 = arith.constant 0 : index
      %c0_30 = arith.constant 0 : index
      %53 = vector.load %arg8[%c0_29, %c0_30] : memref<8x1xf32, #tpu.memory_space<vmem>>, vector<8x1xf32>
      %cst_31 = arith.constant 1.000000e-30 : f32
      %54 = vector.broadcast %cst_31 : f32 to vector<8x1xf32>
      %55 = arith.maximumf %53, %54 : vector<8x1xf32>
      %56 = tpu.reciprocal %55 {approx = true} : vector<8x1xf32> -> vector<8x1xf32>
      %c0_32 = arith.constant 0 : index
      %c0_33 = arith.constant 0 : index
      %57 = vector.load %arg9[%c0_32, %c0_33] : memref<8x32xf32, #tpu.memory_space<vmem>>, vector<8x32xf32>
      %58 = vector.broadcast %56 : vector<8x1xf32> to vector<8x32xf32>
      %59 = arith.mulf %57, %58 : vector<8x32xf32>
      %c0_34 = arith.constant 0 : index
      %c0_35 = arith.constant 0 : index
      %60 = vector.load %arg5[%c0_34, %c0_35] : memref<1x32xf32, #tpu.memory_space<vmem>>, vector<1x32xf32>
      %cst_36 = arith.constant 0.000000e+00 : f32
      %61 = vector.broadcast %cst_36 : f32 to vector<8x32xf32>
      %62 = arith.cmpf oge, %59, %61 : vector<8x32xf32>
      %63 = vector.broadcast %60 : vector<1x32xf32> to vector<8x32xf32>
      %64 = arith.mulf %63, %59 : vector<8x32xf32>
      %65 = arith.select %62, %59, %64 : vector<8x32xi1>, vector<8x32xf32>
      %c0_37 = arith.constant 0 : index
      %c0_38 = arith.constant 0 : index
      %66 = vector.load %arg6[%c0_37, %c0_38] : memref<8x32xf32, #tpu.memory_space<vmem>>, vector<8x32xf32>
      tpu.vector_store %arg6[%c0_37, %c0_38], %65 {strides = array<i32>} : memref<8x32xf32, #tpu.memory_space<vmem>>, vector<8x32xf32>,
    } else {
    }
    return
  }
  func.func @transform_0(%arg0: i32) -> (i32, i32) {
    %c0_i32 = arith.constant 0 : i32
    %c0_i32_0 = arith.constant 0 : i32
    return %c0_i32, %arg0 : i32, i32
  }
  func.func @transform_1(%arg0: i32) -> (i32, i32) {
    %c0_i32 = arith.constant 0 : i32
    %c0_i32_0 = arith.constant 0 : i32
    return %arg0, %c0_i32 : i32, i32
  }
  func.func @transform_2(%arg0: i32) -> (i32, i32) {
    %c0_i32 = arith.constant 0 : i32
    %c0_i32_0 = arith.constant 0 : i32
    %c0_i32_1 = arith.constant 0 : i32
    return %c0_i32, %c0_i32_0 : i32, i32
  }
  func.func @transform_3(%arg0: i32) -> (i32, i32) {
    %c0_i32 = arith.constant 0 : i32
    %c0_i32_0 = arith.constant 0 : i32
    return %arg0, %c0_i32 : i32, i32
  }
  func.func @transform_4(%arg0: i32) -> (i32, i32) {
    %c0_i32 = arith.constant 0 : i32
    %c0_i32_0 = arith.constant 0 : i32
    %c0_i32_1 = arith.constant 0 : i32
    return %c0_i32, %c0_i32_0 : i32, i32
  }
  func.func @transform_5(%arg0: i32) -> (i32, i32) {
    %c0_i32 = arith.constant 0 : i32
    %c0_i32_0 = arith.constant 0 : i32
    %c0_i32_1 = arith.constant 0 : i32
    return %c0_i32, %c0_i32_0 : i32, i32
  }
}

module attributes {stable_mosaic.version = 11 : i64} {
  func.func @_linear_kernel(%arg0: i32, %arg1: memref<8x96xf32, #tpu.memory_space<vmem>>, %arg2: memref<96x128xf32, #tpu.memory_space<vmem>>, %arg3: memref<1x128xf32, #tpu.memory_space<vmem>>, %arg4: memref<1x128xf32, #tpu.memory_space<vmem>>, %arg5: memref<8x128xf32, #tpu.memory_space<vmem>>) attributes {dimension_semantics = [#tpu.dimension_semantics<parallel>], iteration_bounds = array<i64: 1>, scalar_prefetch = 0 : i64, scratch_operands = 0 : i64, tpu.core_type = #tpu.core_type<tc>, window_params = [{transform_indices = @transform_0, window_bounds = array<i64: 8, 96>}, {pipeline_mode = #tpu.pipeline_mode<synchronous>, transform_indices = @transform_1, window_bounds = array<i64: 96, 128>}, {pipeline_mode = #tpu.pipeline_mode<synchronous>, transform_indices = @transform_2, window_bounds = array<i64: 1, 128>}, {pipeline_mode = #tpu.pipeline_mode<synchronous>, transform_indices = @transform_3, window_bounds = array<i64: 1, 128>}, {transform_indices = @transform_4, window_bounds = array<i64: 8, 128>}]} {
    %c0 = arith.constant 0 : index
    %c0_0 = arith.constant 0 : index
    %0 = vector.load %arg1[%c0, %c0_0] : memref<8x96xf32, #tpu.memory_space<vmem>>, vector<8x96xf32>
    %1 = arith.truncf %0 : vector<8x96xf32> to vector<8x96xbf16>
    %c0_1 = arith.constant 0 : index
    %c0_2 = arith.constant 0 : index
    %2 = vector.load %arg2[%c0_1, %c0_2] : memref<96x128xf32, #tpu.memory_space<vmem>>, vector<96x128xf32>
    %3 = arith.truncf %2 : vector<96x128xf32> to vector<96x128xbf16>
    %cst = arith.constant dense<0.000000e+00> : vector<8x128xf32>
    %4 = tpu.matmul %1, %3, %cst {dimension_numbers = #tpu.dot_dimension_numbers<[1], [0], [0], [1], [0, 0, 1, 1], [], []>} : vector<8x96xbf16>, vector<96x128xbf16>, vector<8x128xf32> -> vector<8x128xf32>
    %c0_3 = arith.constant 0 : index
    %c0_4 = arith.constant 0 : index
    %5 = vector.load %arg3[%c0_3, %c0_4] : memref<1x128xf32, #tpu.memory_space<vmem>>, vector<1x128xf32>
    %6 = vector.broadcast %5 : vector<1x128xf32> to vector<8x128xf32>
    %7 = arith.addf %4, %6 : vector<8x128xf32>
    %c0_5 = arith.constant 0 : index
    %c0_6 = arith.constant 0 : index
    %8 = vector.load %arg4[%c0_5, %c0_6] : memref<1x128xf32, #tpu.memory_space<vmem>>, vector<1x128xf32>
    %cst_7 = arith.constant 0.000000e+00 : f32
    %9 = vector.broadcast %cst_7 : f32 to vector<8x128xf32>
    %10 = arith.cmpf oge, %7, %9 : vector<8x128xf32>
    %11 = vector.broadcast %8 : vector<1x128xf32> to vector<8x128xf32>
    %12 = arith.mulf %11, %7 : vector<8x128xf32>
    %13 = arith.select %10, %7, %12 : vector<8x128xi1>, vector<8x128xf32>
    %c0_8 = arith.constant 0 : index
    %c0_9 = arith.constant 0 : index
    %14 = vector.load %arg5[%c0_8, %c0_9] : memref<8x128xf32, #tpu.memory_space<vmem>>, vector<8x128xf32>
    tpu.vector_store %arg5[%c0_8, %c0_9], %13 {strides = array<i32>} : memref<8x128xf32, #tpu.memory_space<vmem>>, vector<8x128xf32>,
    return
  }
  func.func @transform_0(%arg0: i32) -> (i32, i32) {
    %c0_i32 = arith.constant 0 : i32
    %c0_i32_0 = arith.constant 0 : i32
    return %arg0, %c0_i32 : i32, i32
  }
  func.func @transform_1(%arg0: i32) -> (i32, i32) {
    %c0_i32 = arith.constant 0 : i32
    %c0_i32_0 = arith.constant 0 : i32
    %c0_i32_1 = arith.constant 0 : i32
    return %c0_i32, %c0_i32_0 : i32, i32
  }
  func.func @transform_2(%arg0: i32) -> (i32, i32) {
    %c0_i32 = arith.constant 0 : i32
    %c0_i32_0 = arith.constant 0 : i32
    %c0_i32_1 = arith.constant 0 : i32
    return %c0_i32, %c0_i32_0 : i32, i32
  }
  func.func @transform_3(%arg0: i32) -> (i32, i32) {
    %c0_i32 = arith.constant 0 : i32
    %c0_i32_0 = arith.constant 0 : i32
    %c0_i32_1 = arith.constant 0 : i32
    return %c0_i32, %c0_i32_0 : i32, i32
  }
  func.func @transform_4(%arg0: i32) -> (i32, i32) {
    %c0_i32 = arith.constant 0 : i32
    %c0_i32_0 = arith.constant 0 : i32
    return %arg0, %c0_i32 : i32, i32
  }
}

module attributes {stable_mosaic.version = 11 : i64} {
  func.func @_seg_attn_kernel(%arg0: i32, %arg1: memref<1x128xi32, #tpu.memory_space<vmem>>, %arg2: memref<128x32xf32, #tpu.memory_space<vmem>>, %arg3: memref<1x32xf32, #tpu.memory_space<vmem>>, %arg4: memref<128x96xf32, #tpu.memory_space<vmem>>, %arg5: memref<1x96xf32, #tpu.memory_space<vmem>>, %arg6: memref<8x96xf32, #tpu.memory_space<vmem>>, %arg7: memref<8x1xf32, #tpu.memory_space<vmem>>, %arg8: memref<8x1xf32, #tpu.memory_space<vmem>>, %arg9: memref<8x96xf32, #tpu.memory_space<vmem>>) attributes {dimension_semantics = [#tpu.dimension_semantics<arbitrary>], iteration_bounds = array<i64: 1>, scalar_prefetch = 0 : i64, scratch_operands = 3 : i64, tpu.core_type = #tpu.core_type<tc>, window_params = [{transform_indices = @transform_0, window_bounds = array<i64: 1, 128>}, {transform_indices = @transform_1, window_bounds = array<i64: 128, 32>}, {pipeline_mode = #tpu.pipeline_mode<synchronous>, transform_indices = @transform_2, window_bounds = array<i64: 1, 32>}, {transform_indices = @transform_3, window_bounds = array<i64: 128, 96>}, {pipeline_mode = #tpu.pipeline_mode<synchronous>, transform_indices = @transform_4, window_bounds = array<i64: 1, 96>}, {pipeline_mode = #tpu.pipeline_mode<synchronous>, transform_indices = @transform_5, window_bounds = array<i64: 8, 96>}]} {
    %c0_i32 = arith.constant 0 : i32
    %0 = arith.cmpi eq, %arg0, %c0_i32 : i32
    %1 = arith.extui %0 : i1 to i32
    %c0_i32_0 = arith.constant 0 : i32
    %2 = arith.cmpi ne, %1, %c0_i32_0 : i32
    scf.if %2 {
      %cst_29 = arith.constant -1.000000e+30 : f32
      %53 = vector.broadcast %cst_29 : f32 to vector<8x1xf32>
      %c0_30 = arith.constant 0 : index
      %c0_31 = arith.constant 0 : index
      %54 = vector.load %arg7[%c0_30, %c0_31] : memref<8x1xf32, #tpu.memory_space<vmem>>, vector<8x1xf32>
      tpu.vector_store %arg7[%c0_30, %c0_31], %53 {strides = array<i32>} : memref<8x1xf32, #tpu.memory_space<vmem>>, vector<8x1xf32>,
      %cst_32 = arith.constant 0.000000e+00 : f32
      %55 = vector.broadcast %cst_32 : f32 to vector<8x1xf32>
      %c0_33 = arith.constant 0 : index
      %c0_34 = arith.constant 0 : index
      %56 = vector.load %arg8[%c0_33, %c0_34] : memref<8x1xf32, #tpu.memory_space<vmem>>, vector<8x1xf32>
      tpu.vector_store %arg8[%c0_33, %c0_34], %55 {strides = array<i32>} : memref<8x1xf32, #tpu.memory_space<vmem>>, vector<8x1xf32>,
      %cst_35 = arith.constant 0.000000e+00 : f32
      %57 = vector.broadcast %cst_35 : f32 to vector<8x96xf32>
      %c0_36 = arith.constant 0 : index
      %c0_37 = arith.constant 0 : index
      %58 = vector.load %arg9[%c0_36, %c0_37] : memref<8x96xf32, #tpu.memory_space<vmem>>, vector<8x96xf32>
      tpu.vector_store %arg9[%c0_36, %c0_37], %57 {strides = array<i32>} : memref<8x96xf32, #tpu.memory_space<vmem>>, vector<8x96xf32>,
    } else {
    }
    %c0 = arith.constant 0 : index
    %c0_1 = arith.constant 0 : index
    %3 = vector.load %arg1[%c0, %c0_1] : memref<1x128xi32, #tpu.memory_space<vmem>>, vector<1x128xi32>
    %c0_2 = arith.constant 0 : index
    %c0_3 = arith.constant 0 : index
    %4 = vector.load %arg2[%c0_2, %c0_3] : memref<128x32xf32, #tpu.memory_space<vmem>>, vector<128x32xf32>
    %5 = arith.negf %4 : vector<128x32xf32>
    %6 = math.exp %5 : vector<128x32xf32>
    %cst = arith.constant 1.000000e+00 : f32
    %7 = vector.broadcast %cst : f32 to vector<128x32xf32>
    %8 = arith.addf %7, %6 : vector<128x32xf32>
    %9 = arith.divf %7, %8 : vector<128x32xf32>
    %c0_4 = arith.constant 0 : index
    %c0_5 = arith.constant 0 : index
    %10 = vector.load %arg3[%c0_4, %c0_5] : memref<1x32xf32, #tpu.memory_space<vmem>>, vector<1x32xf32>
    %11 = arith.truncf %10 : vector<1x32xf32> to vector<1x32xbf16>
    %12 = arith.truncf %9 : vector<128x32xf32> to vector<128x32xbf16>
    %cst_6 = arith.constant dense<0.000000e+00> : vector<1x128xf32>
    %13 = tpu.matmul %11, %12, %cst_6 {dimension_numbers = #tpu.dot_dimension_numbers<[1], [1], [0], [0], [0, 0, 1, 0], [], []>} : vector<1x32xbf16>, vector<128x32xbf16>, vector<1x128xf32> -> vector<1x128xf32>
    %14 = tpu.iota {dimensions = array<i32: 0>} : vector<8x128xi32>
    %15 = vector.broadcast %3 : vector<1x128xi32> to vector<8x128xi32>
    %16 = arith.cmpi eq, %14, %15 : vector<8x128xi32>
    %17 = vector.shape_cast %13 : vector<1x128xf32> to vector<1x128xf32>
    %18 = vector.broadcast %17 : vector<1x128xf32> to vector<8x128xf32>
    %cst_7 = arith.constant -1.000000e+30 : f32
    %19 = vector.broadcast %cst_7 : f32 to vector<8x128xf32>
    %20 = arith.select %16, %18, %19 : vector<8x128xi1>, vector<8x128xf32>
    %c0_8 = arith.constant 0 : index
    %c0_9 = arith.constant 0 : index
    %21 = vector.load %arg7[%c0_8, %c0_9] : memref<8x1xf32, #tpu.memory_space<vmem>>, vector<8x1xf32>
    %cst_10 = arith.constant dense<0xFF800000> : vector<8xf32>
    %22 = vector.multi_reduction <maximumf>, %20, %cst_10 [1] : vector<8x128xf32> to vector<8xf32>
    %23 = vector.shape_cast %22 : vector<8xf32> to vector<8x1xf32>
    %24 = arith.maximumf %21, %23 : vector<8x1xf32>
    %c0_11 = arith.constant 0 : index
    %c0_12 = arith.constant 0 : index
    %25 = vector.load %arg7[%c0_11, %c0_12] : memref<8x1xf32, #tpu.memory_space<vmem>>, vector<8x1xf32>
    %26 = arith.subf %25, %24 : vector<8x1xf32>
    %27 = math.exp %26 : vector<8x1xf32>
    %28 = vector.broadcast %24 : vector<8x1xf32> to vector<8x128xf32>
    %29 = arith.subf %20, %28 : vector<8x128xf32>
    %30 = math.exp %29 : vector<8x128xf32>
    %31 = arith.extui %16 : vector<8x128xi1> to vector<8x128xi32>
    %32 = arith.sitofp %31 : vector<8x128xi32> to vector<8x128xf32>
    %33 = arith.mulf %30, %32 : vector<8x128xf32>
    %c0_13 = arith.constant 0 : index
    %c0_14 = arith.constant 0 : index
    %34 = vector.load %arg8[%c0_13, %c0_14] : memref<8x1xf32, #tpu.memory_space<vmem>>, vector<8x1xf32>
    %35 = arith.mulf %27, %34 : vector<8x1xf32>
    %cst_15 = arith.constant dense<0.000000e+00> : vector<8xf32>
    %36 = vector.multi_reduction <add>, %33, %cst_15 [1] : vector<8x128xf32> to vector<8xf32>
    %37 = vector.shape_cast %36 : vector<8xf32> to vector<8x1xf32>
    %38 = arith.addf %35, %37 : vector<8x1xf32>
    %c0_16 = arith.constant 0 : index
    %c0_17 = arith.constant 0 : index
    %39 = vector.load %arg8[%c0_16, %c0_17] : memref<8x1xf32, #tpu.memory_space<vmem>>, vector<8x1xf32>
    tpu.vector_store %arg8[%c0_16, %c0_17], %38 {strides = array<i32>} : memref<8x1xf32, #tpu.memory_space<vmem>>, vector<8x1xf32>,
    %c0_18 = arith.constant 0 : index
    %c0_19 = arith.constant 0 : index
    %40 = vector.load %arg9[%c0_18, %c0_19] : memref<8x96xf32, #tpu.memory_space<vmem>>, vector<8x96xf32>
    %41 = vector.broadcast %27 : vector<8x1xf32> to vector<8x96xf32>
    %42 = arith.mulf %41, %40 : vector<8x96xf32>
    %43 = arith.truncf %33 : vector<8x128xf32> to vector<8x128xbf16>
    %c0_20 = arith.constant 0 : index
    %c0_21 = arith.constant 0 : index
    %44 = vector.load %arg4[%c0_20, %c0_21] : memref<128x96xf32, #tpu.memory_space<vmem>>, vector<128x96xf32>
    %45 = arith.truncf %44 : vector<128x96xf32> to vector<128x96xbf16>
    %cst_22 = arith.constant dense<0.000000e+00> : vector<8x96xf32>
    %46 = tpu.matmul %43, %45, %cst_22 {dimension_numbers = #tpu.dot_dimension_numbers<[1], [0], [0], [1], [0, 0, 1, 1], [], []>} : vector<8x128xbf16>, vector<128x96xbf16>, vector<8x96xf32> -> vector<8x96xf32>
    %47 = arith.addf %42, %46 : vector<8x96xf32>
    %c0_23 = arith.constant 0 : index
    %c0_24 = arith.constant 0 : index
    %48 = vector.load %arg9[%c0_23, %c0_24] : memref<8x96xf32, #tpu.memory_space<vmem>>, vector<8x96xf32>
    tpu.vector_store %arg9[%c0_23, %c0_24], %47 {strides = array<i32>} : memref<8x96xf32, #tpu.memory_space<vmem>>, vector<8x96xf32>,
    %c0_25 = arith.constant 0 : index
    %c0_26 = arith.constant 0 : index
    %49 = vector.load %arg7[%c0_25, %c0_26] : memref<8x1xf32, #tpu.memory_space<vmem>>, vector<8x1xf32>
    tpu.vector_store %arg7[%c0_25, %c0_26], %24 {strides = array<i32>} : memref<8x1xf32, #tpu.memory_space<vmem>>, vector<8x1xf32>,
    %c0_i32_27 = arith.constant 0 : i32
    %50 = arith.cmpi eq, %arg0, %c0_i32_27 : i32
    %51 = arith.extui %50 : i1 to i32
    %c0_i32_28 = arith.constant 0 : i32
    %52 = arith.cmpi ne, %51, %c0_i32_28 : i32
    scf.if %52 {
      %c0_29 = arith.constant 0 : index
      %c0_30 = arith.constant 0 : index
      %53 = vector.load %arg8[%c0_29, %c0_30] : memref<8x1xf32, #tpu.memory_space<vmem>>, vector<8x1xf32>
      %cst_31 = arith.constant 1.000000e-30 : f32
      %54 = vector.broadcast %cst_31 : f32 to vector<8x1xf32>
      %55 = arith.maximumf %53, %54 : vector<8x1xf32>
      %56 = tpu.reciprocal %55 {approx = true} : vector<8x1xf32> -> vector<8x1xf32>
      %c0_32 = arith.constant 0 : index
      %c0_33 = arith.constant 0 : index
      %57 = vector.load %arg9[%c0_32, %c0_33] : memref<8x96xf32, #tpu.memory_space<vmem>>, vector<8x96xf32>
      %58 = vector.broadcast %56 : vector<8x1xf32> to vector<8x96xf32>
      %59 = arith.mulf %57, %58 : vector<8x96xf32>
      %c0_34 = arith.constant 0 : index
      %c0_35 = arith.constant 0 : index
      %60 = vector.load %arg5[%c0_34, %c0_35] : memref<1x96xf32, #tpu.memory_space<vmem>>, vector<1x96xf32>
      %cst_36 = arith.constant 0.000000e+00 : f32
      %61 = vector.broadcast %cst_36 : f32 to vector<8x96xf32>
      %62 = arith.cmpf oge, %59, %61 : vector<8x96xf32>
      %63 = vector.broadcast %60 : vector<1x96xf32> to vector<8x96xf32>
      %64 = arith.mulf %63, %59 : vector<8x96xf32>
      %65 = arith.select %62, %59, %64 : vector<8x96xi1>, vector<8x96xf32>
      %c0_37 = arith.constant 0 : index
      %c0_38 = arith.constant 0 : index
      %66 = vector.load %arg6[%c0_37, %c0_38] : memref<8x96xf32, #tpu.memory_space<vmem>>, vector<8x96xf32>
      tpu.vector_store %arg6[%c0_37, %c0_38], %65 {strides = array<i32>} : memref<8x96xf32, #tpu.memory_space<vmem>>, vector<8x96xf32>,
    } else {
    }
    return
  }
  func.func @transform_0(%arg0: i32) -> (i32, i32) {
    %c0_i32 = arith.constant 0 : i32
    %c0_i32_0 = arith.constant 0 : i32
    return %c0_i32, %arg0 : i32, i32
  }
  func.func @transform_1(%arg0: i32) -> (i32, i32) {
    %c0_i32 = arith.constant 0 : i32
    %c0_i32_0 = arith.constant 0 : i32
    return %arg0, %c0_i32 : i32, i32
  }
  func.func @transform_2(%arg0: i32) -> (i32, i32) {
    %c0_i32 = arith.constant 0 : i32
    %c0_i32_0 = arith.constant 0 : i32
    %c0_i32_1 = arith.constant 0 : i32
    return %c0_i32, %c0_i32_0 : i32, i32
  }
  func.func @transform_3(%arg0: i32) -> (i32, i32) {
    %c0_i32 = arith.constant 0 : i32
    %c0_i32_0 = arith.constant 0 : i32
    return %arg0, %c0_i32 : i32, i32
  }
  func.func @transform_4(%arg0: i32) -> (i32, i32) {
    %c0_i32 = arith.constant 0 : i32
    %c0_i32_0 = arith.constant 0 : i32
    %c0_i32_1 = arith.constant 0 : i32
    return %c0_i32, %c0_i32_0 : i32, i32
  }
  func.func @transform_5(%arg0: i32) -> (i32, i32) {
    %c0_i32 = arith.constant 0 : i32
    %c0_i32_0 = arith.constant 0 : i32
    %c0_i32_1 = arith.constant 0 : i32
    return %c0_i32, %c0_i32_0 : i32, i32
  }
}

module attributes {stable_mosaic.version = 11 : i64} {
  func.func @_logits_kernel(%arg0: i32, %arg1: memref<8x32xf32, #tpu.memory_space<vmem>>, %arg2: memref<128x32xf32, #tpu.memory_space<vmem>>, %arg3: memref<8x128xf32, #tpu.memory_space<vmem>>) attributes {dimension_semantics = [#tpu.dimension_semantics<parallel>], iteration_bounds = array<i64: 1>, scalar_prefetch = 0 : i64, scratch_operands = 0 : i64, tpu.core_type = #tpu.core_type<tc>, window_params = [{pipeline_mode = #tpu.pipeline_mode<synchronous>, transform_indices = @transform_0, window_bounds = array<i64: 8, 32>}, {transform_indices = @transform_1, window_bounds = array<i64: 128, 32>}, {transform_indices = @transform_2, window_bounds = array<i64: 8, 128>}]} {
    %c0 = arith.constant 0 : index
    %c0_0 = arith.constant 0 : index
    %0 = vector.load %arg2[%c0, %c0_0] : memref<128x32xf32, #tpu.memory_space<vmem>>, vector<128x32xf32>
    %1 = arith.mulf %0, %0 : vector<128x32xf32>
    %cst = arith.constant dense<0.000000e+00> : vector<128xf32>
    %2 = vector.multi_reduction <add>, %1, %cst [1] : vector<128x32xf32> to vector<128xf32>
    %3 = vector.shape_cast %2 : vector<128xf32> to vector<128x1xf32>
    %4 = math.sqrt %3 : vector<128x1xf32>
    %cst_1 = arith.constant 1.000000e+00 : f32
    %5 = vector.broadcast %cst_1 : f32 to vector<128x1xf32>
    %6 = arith.cmpf ogt, %4, %5 : vector<128x1xf32>
    %cst_2 = arith.constant 1.000000e-07 : f32
    %7 = vector.broadcast %cst_2 : f32 to vector<128x1xf32>
    %8 = arith.addf %4, %7 : vector<128x1xf32>
    %cst_3 = arith.constant 1.000000e+00 : f32
    %9 = vector.broadcast %cst_3 : f32 to vector<128x1xf32>
    %10 = arith.divf %9, %8 : vector<128x1xf32>
    %cst_4 = arith.constant 1.000000e+00 : f32
    %11 = vector.broadcast %cst_4 : f32 to vector<128x1xf32>
    %12 = arith.select %6, %10, %11 : vector<128x1xi1>, vector<128x1xf32>
    %13 = vector.broadcast %12 : vector<128x1xf32> to vector<128x32xf32>
    %14 = arith.mulf %0, %13 : vector<128x32xf32>
    %15 = arith.truncf %14 : vector<128x32xf32> to vector<128x32xbf16>
    %c0_5 = arith.constant 0 : index
    %c0_6 = arith.constant 0 : index
    %16 = vector.load %arg1[%c0_5, %c0_6] : memref<8x32xf32, #tpu.memory_space<vmem>>, vector<8x32xf32>
    %17 = arith.truncf %16 : vector<8x32xf32> to vector<8x32xbf16>
    %cst_7 = arith.constant dense<0.000000e+00> : vector<8x128xf32>
    %18 = tpu.matmul %17, %15, %cst_7 {dimension_numbers = #tpu.dot_dimension_numbers<[1], [1], [0], [0], [0, 0, 1, 0], [], []>} : vector<8x32xbf16>, vector<128x32xbf16>, vector<8x128xf32> -> vector<8x128xf32>
    %c0_8 = arith.constant 0 : index
    %c0_9 = arith.constant 0 : index
    %19 = vector.load %arg3[%c0_8, %c0_9] : memref<8x128xf32, #tpu.memory_space<vmem>>, vector<8x128xf32>
    tpu.vector_store %arg3[%c0_8, %c0_9], %18 {strides = array<i32>} : memref<8x128xf32, #tpu.memory_space<vmem>>, vector<8x128xf32>,
    return
  }
  func.func @transform_0(%arg0: i32) -> (i32, i32) {
    %c0_i32 = arith.constant 0 : i32
    %c0_i32_0 = arith.constant 0 : i32
    %c0_i32_1 = arith.constant 0 : i32
    return %c0_i32, %c0_i32_0 : i32, i32
  }
  func.func @transform_1(%arg0: i32) -> (i32, i32) {
    %c0_i32 = arith.constant 0 : i32
    %c0_i32_0 = arith.constant 0 : i32
    return %arg0, %c0_i32 : i32, i32
  }
  func.func @transform_2(%arg0: i32) -> (i32, i32) {
    %c0_i32 = arith.constant 0 : i32
    %c0_i32_0 = arith.constant 0 : i32
    return %c0_i32, %arg0 : i32, i32
  }
}

module attributes {stable_mosaic.version = 11 : i64} {
  func.func @_linear_kernel(%arg0: i32, %arg1: memref<8x128xf32, #tpu.memory_space<vmem>>, %arg2: memref<128x128xf32, #tpu.memory_space<vmem>>, %arg3: memref<1x128xf32, #tpu.memory_space<vmem>>, %arg4: memref<1x128xf32, #tpu.memory_space<vmem>>, %arg5: memref<8x128xf32, #tpu.memory_space<vmem>>) attributes {dimension_semantics = [#tpu.dimension_semantics<parallel>], iteration_bounds = array<i64: 1>, scalar_prefetch = 0 : i64, scratch_operands = 0 : i64, tpu.core_type = #tpu.core_type<tc>, window_params = [{transform_indices = @transform_0, window_bounds = array<i64: 8, 128>}, {pipeline_mode = #tpu.pipeline_mode<synchronous>, transform_indices = @transform_1, window_bounds = array<i64: 128, 128>}, {pipeline_mode = #tpu.pipeline_mode<synchronous>, transform_indices = @transform_2, window_bounds = array<i64: 1, 128>}, {pipeline_mode = #tpu.pipeline_mode<synchronous>, transform_indices = @transform_3, window_bounds = array<i64: 1, 128>}, {transform_indices = @transform_4, window_bounds = array<i64: 8, 128>}]} {
    %c0 = arith.constant 0 : index
    %c0_0 = arith.constant 0 : index
    %0 = vector.load %arg1[%c0, %c0_0] : memref<8x128xf32, #tpu.memory_space<vmem>>, vector<8x128xf32>
    %1 = arith.truncf %0 : vector<8x128xf32> to vector<8x128xbf16>
    %c0_1 = arith.constant 0 : index
    %c0_2 = arith.constant 0 : index
    %2 = vector.load %arg2[%c0_1, %c0_2] : memref<128x128xf32, #tpu.memory_space<vmem>>, vector<128x128xf32>
    %3 = arith.truncf %2 : vector<128x128xf32> to vector<128x128xbf16>
    %cst = arith.constant dense<0.000000e+00> : vector<8x128xf32>
    %4 = tpu.matmul %1, %3, %cst {dimension_numbers = #tpu.dot_dimension_numbers<[1], [0], [0], [1], [0, 0, 1, 1], [], []>} : vector<8x128xbf16>, vector<128x128xbf16>, vector<8x128xf32> -> vector<8x128xf32>
    %c0_3 = arith.constant 0 : index
    %c0_4 = arith.constant 0 : index
    %5 = vector.load %arg3[%c0_3, %c0_4] : memref<1x128xf32, #tpu.memory_space<vmem>>, vector<1x128xf32>
    %6 = vector.broadcast %5 : vector<1x128xf32> to vector<8x128xf32>
    %7 = arith.addf %4, %6 : vector<8x128xf32>
    %c0_5 = arith.constant 0 : index
    %c0_6 = arith.constant 0 : index
    %8 = vector.load %arg4[%c0_5, %c0_6] : memref<1x128xf32, #tpu.memory_space<vmem>>, vector<1x128xf32>
    %cst_7 = arith.constant 0.000000e+00 : f32
    %9 = vector.broadcast %cst_7 : f32 to vector<8x128xf32>
    %10 = arith.cmpf oge, %7, %9 : vector<8x128xf32>
    %11 = vector.broadcast %8 : vector<1x128xf32> to vector<8x128xf32>
    %12 = arith.mulf %11, %7 : vector<8x128xf32>
    %13 = arith.select %10, %7, %12 : vector<8x128xi1>, vector<8x128xf32>
    %c0_8 = arith.constant 0 : index
    %c0_9 = arith.constant 0 : index
    %14 = vector.load %arg5[%c0_8, %c0_9] : memref<8x128xf32, #tpu.memory_space<vmem>>, vector<8x128xf32>
    tpu.vector_store %arg5[%c0_8, %c0_9], %13 {strides = array<i32>} : memref<8x128xf32, #tpu.memory_space<vmem>>, vector<8x128xf32>,
    return
  }
  func.func @transform_0(%arg0: i32) -> (i32, i32) {
    %c0_i32 = arith.constant 0 : i32
    %c0_i32_0 = arith.constant 0 : i32
    return %arg0, %c0_i32 : i32, i32
  }
  func.func @transform_1(%arg0: i32) -> (i32, i32) {
    %c0_i32 = arith.constant 0 : i32
    %c0_i32_0 = arith.constant 0 : i32
    %c0_i32_1 = arith.constant 0 : i32
    return %c0_i32, %c0_i32_0 : i32, i32
  }
  func.func @transform_2(%arg0: i32) -> (i32, i32) {
    %c0_i32 = arith.constant 0 : i32
    %c0_i32_0 = arith.constant 0 : i32
    %c0_i32_1 = arith.constant 0 : i32
    return %c0_i32, %c0_i32_0 : i32, i32
  }
  func.func @transform_3(%arg0: i32) -> (i32, i32) {
    %c0_i32 = arith.constant 0 : i32
    %c0_i32_0 = arith.constant 0 : i32
    %c0_i32_1 = arith.constant 0 : i32
    return %c0_i32, %c0_i32_0 : i32, i32
  }
  func.func @transform_4(%arg0: i32) -> (i32, i32) {
    %c0_i32 = arith.constant 0 : i32
    %c0_i32_0 = arith.constant 0 : i32
    return %arg0, %c0_i32 : i32, i32
  }
}

</mosaic_0001>

<bundles_post_ra>
// kernel: lessr_forward.12
= control target key start
LH: loop header
LB: loop body
LE: loop exit
PB: predicated region body
PF: predicated region fallthrough
CT: control target
= control target key end

     0   :  { %v114_v0 = vmov 0.0   ;;  %vm115_vm0 = vmmov 0   ;;  %vm34_vm1 = vcmask 261120   ;;  %s171_s1 = inlined_call_operand.vmem [shape: f32[32,128], index: 1, kind: input, shape index: {}]   ;;  %s172_s0 = inlined_call_operand.vmem [shape: f32[16,32], index: 0, kind: input, shape index: {}]   ;;  %s173_s2 = inlined_call_operand.vmem [shape: f32[1,128], index: 2, kind: input, shape index: {}]   ;;  %s174_s3 = inlined_call_operand.vmem [shape: f32[1,128], index: 3, kind: input, shape index: {}]   ;;  %s175_s4 = inlined_call_operand.vmem [shape: f32[16,128], index: 4, kind: output, shape index: {}]  }
   0x1   :  { %104 = vmatprep.subr.bf16.mxu0 %v114_v0  ;;  %v21_v1 = vld [vmem:[%s171_s1] sm:$0xff]  ;;  %v22_v2 = vld [vmem:[%s171_s1 + $0x8] sm:$0xff]  ;;  %v23_v3 = vld [vmem:[%s171_s1 + $0x10] sm:$0xff]  ;;  %108 = vmatprep.mubr.msk.bf16.mxu0 %vm115_vm0, %v114_v0 }
   0x2   :  { %v25_v4 = vpack.c.bf16 %v22_v2, %v21_v1  ;;  %v24_v5 = vld [vmem:[%s171_s1 + $0x18] sm:$0xff]  ;;  %v18_v7 = vld [vmem:[%s172_s0] sm:$0xff]  ;;  %v19_v8 = vld [vmem:[%s172_s0 + $0x8] sm:$0xff] }
   0x3   :  { %v26_v6 = vpack.c.bf16 %v24_v5, %v23_v3  ;;  %v20_v9 = vpack.c.bf16 %v19_v8, %v18_v7  ;;  %v98_v10 = vld [vmem:[%s173_s2] ss:$0 sm:$0xff] }
   0x4   :  { %105 = vmatpush3.bf16.msra.mxu0 %v25_v4  ;;  %v100_v12 = vld [vmem:[%s174_s3] ss:$0 sm:$0xff] }
   0x5   :  { %106 = vmatprep.subr.bf16.mxu0 %v114_v0 }
   0x8   :  { %107 = vmatpush3.bf16.msra.mxu0 %v26_v6 }
   0xb   :  { %109 = vmatmul.mubr.msk.bf16.vlgmr.msra.gmra.mrb[0].mxu0 %vm34_vm1, %v20_v9 }
  0xde   :  { %v72_v11 = vpop.f32.mrb[0].mxu0 }
  0xdf   :  { %v73_v13 = vadd.f32 %v98_v10, %v72_v11  ;;  %v110_v14 = vpop.f32.mrb[1].mxu0 }
  0xe0   :  { %v75_v15 = vpop.f32.mrb[2].mxu0 }
  0xe1   :  { %vm80_vm2 = vcmp.ge.f32.partialorder %v73_v13, 0.0  ;;  %v88_v16 = vmul.f32 %v100_v12, %v73_v13  ;;  %v76_v17 = vadd.f32 %v98_v10, %v75_v15  ;;  %v111_v18 = vpop.f32.mrb[3].mxu0 }
  0xe3   :  { %v90_v19 = vsel %vm80_vm2, %v73_v13, %v88_v16  ;;  %vm81_vm3 = vcmp.ge.f32.partialorder %v76_v17, 0.0  ;;  %v89_v20 = vmul.f32 %v100_v12, %v76_v17 }
  0xe4   :  { %92 = vst [vmem:[%s175_s4] sm:$0xff] %v90_v19 }
  0xe5   :  { %v91_v21 = vsel %vm81_vm3, %v76_v17, %v89_v20 }
  0xe6   :  { %93 = vst [vmem:[%s175_s4 + $0x8] sm:$0xff] %v91_v21 }

// kernel: lessr_forward.15
= control target key start
LH: loop header
LB: loop body
LE: loop exit
PB: predicated region body
PF: predicated region fallthrough
CT: control target
= control target key end

     0   :  { %s533_s1 = inlined_call_operand.vmem [shape: f32[512,128], index: 1, kind: input, shape index: {}]   ;;  %s534_s0 = inlined_call_operand.vmem [shape: f32[16,512], index: 0, kind: input, shape index: {}]   ;;  %s535_s2 = inlined_call_operand.vmem [shape: f32[1,128], index: 2, kind: input, shape index: {}]   ;;  %s536_s3 = inlined_call_operand.vmem [shape: f32[1,128], index: 3, kind: input, shape index: {}]   ;;  %s537_s4 = inlined_call_operand.vmem [shape: f32[16,128], index: 4, kind: output, shape index: {}]  }
   0x1   :  { %v46_v0 = vld [vmem:[%s533_s1 + $0x80] sm:$0xff]  ;;  %v47_v1 = vld [vmem:[%s533_s1 + $0x88] sm:$0xff]  ;;  %v48_v11 = vld [vmem:[%s533_s1 + $0x90] sm:$0xff] }
   0x2   :  { %v78_v2 = vld [vmem:[%s533_s1 + $0x180] sm:$0xff]  ;;  %v102_v3 = vpack.c.bf16 %v47_v1, %v46_v0  ;;  %v79_v4 = vld [vmem:[%s533_s1 + $0x188] sm:$0xff]  ;;  %v49_v13 = vld [vmem:[%s533_s1 + $0x98] sm:$0xff] }
   0x3   :  { %v30_v5 = vld [vmem:[%s533_s1] sm:$0xff]  ;;  %v31_v6 = vld [vmem:[%s533_s1 + $0x8] sm:$0xff]  ;;  %v118_v7 = vpack.c.bf16 %v79_v4, %v78_v2  ;;  %v80_v14 = vld [vmem:[%s533_s1 + $0x190] sm:$0xff]  ;;  %v103_v16 = vpack.c.bf16 %v49_v13, %v48_v11 }
   0x4   :  { %v94_v8 = vpack.c.bf16 %v31_v6, %v30_v5  ;;  %v62_v9 = vld [vmem:[%s533_s1 + $0x100] sm:$0xff]  ;;  %v63_v10 = vld [vmem:[%s533_s1 + $0x108] sm:$0xff]  ;;  %236 = vmatprep.subr.bf16.mxu0 %v102_v3  ;;  %v81_v15 = vld [vmem:[%s533_s1 + $0x198] sm:$0xff] }
   0x5   :  { %v110_v12 = vpack.c.bf16 %v63_v10, %v62_v9  ;;  %258 = vmatprep.subr.bf16.mxu1 %v118_v7  ;;  %v119_v17 = vpack.c.bf16 %v81_v15, %v80_v14  ;;  %v32_v18 = vld [vmem:[%s533_s1 + $0x10] sm:$0xff]  ;;  %v33_v19 = vld [vmem:[%s533_s1 + $0x18] sm:$0xff]  ;;  %v50_v23 = vld [vmem:[%s533_s1 + $0xa0] sm:$0xff] }
   0x6   :  { %237 = vmatpush3.bf16.msra.mxu0 %v94_v8  ;;  %v64_v20 = vld [vmem:[%s533_s1 + $0x110] sm:$0xff]  ;;  %v95_v21 = vpack.c.bf16 %v33_v19, %v32_v18  ;;  %v65_v22 = vld [vmem:[%s533_s1 + $0x118] sm:$0xff]  ;;  %v51_v24 = vld [vmem:[%s533_s1 + $0xa8] sm:$0xff] }
   0x7   :  { %259 = vmatpush3.bf16.msra.mxu1 %v110_v12  ;;  %238 = vmatprep.subr.bf16.mxu0 %v103_v16  ;;  %v111_v25 = vpack.c.bf16 %v65_v22, %v64_v20  ;;  %v104_v26 = vpack.c.bf16 %v51_v24, %v50_v23  ;;  %v82_v27 = vld [vmem:[%s533_s1 + $0x1a0] sm:$0xff]  ;;  %v83_v28 = vld [vmem:[%s533_s1 + $0x1a8] sm:$0xff]  ;;  %v52_v35 = vld [vmem:[%s533_s1 + $0xb0] sm:$0xff] }
   0x8   :  { %260 = vmatprep.subr.bf16.mxu1 %v119_v17  ;;  %v34_v29 = vld [vmem:[%s533_s1 + $0x20] sm:$0xff]  ;;  %v120_v30 = vpack.c.bf16 %v83_v28, %v82_v27  ;;  %v35_v31 = vld [vmem:[%s533_s1 + $0x28] sm:$0xff]  ;;  %v53_v36 = vld [vmem:[%s533_s1 + $0xb8] sm:$0xff] }
   0x9   :  { %v66_v32 = vld [vmem:[%s533_s1 + $0x120] sm:$0xff]  ;;  %v67_v33 = vld [vmem:[%s533_s1 + $0x128] sm:$0xff]  ;;  %v96_v34 = vpack.c.bf16 %v35_v31, %v34_v29  ;;  %v84_v37 = vld [vmem:[%s533_s1 + $0x1b0] sm:$0xff]  ;;  %v105_v39 = vpack.c.bf16 %v53_v36, %v52_v35 }
   0xa   :  { %239 = vmatpush3.bf16.msra.mxu0 %v95_v21  ;;  %v112_v38 = vpack.c.bf16 %v67_v33, %v66_v32  ;;  %v85_v40 = vld [vmem:[%s533_s1 + $0x1b8] sm:$0xff]  ;;  %v36_v41 = vld [vmem:[%s533_s1 + $0x30] sm:$0xff]  ;;  %v54_v46 = vld [vmem:[%s533_s1 + $0xc0] sm:$0xff] }
   0xb   :  { %261 = vmatpush3.bf16.msra.mxu1 %v111_v25  ;;  %240 = vmatprep.subr.bf16.mxu0 %v104_v26  ;;  %v37_v42 = vld [vmem:[%s533_s1 + $0x38] sm:$0xff]  ;;  %v121_v43 = vpack.c.bf16 %v85_v40, %v84_v37  ;;  %v68_v44 = vld [vmem:[%s533_s1 + $0x130] sm:$0xff]  ;;  %v55_v47 = vld [vmem:[%s533_s1 + $0xc8] sm:$0xff] }
   0xc   :  { %262 = vmatprep.subr.bf16.mxu1 %v120_v30  ;;  %v69_v45 = vld [vmem:[%s533_s1 + $0x138] sm:$0xff]  ;;  %v86_v48 = vld [vmem:[%s533_s1 + $0x1c0] sm:$0xff]  ;;  %v87_v49 = vld [vmem:[%s533_s1 + $0x1c8] sm:$0xff]  ;;  %v97_v50 = vpack.c.bf16 %v37_v42, %v36_v41  ;;  %v106_v52 = vpack.c.bf16 %v55_v47, %v54_v46 }
   0xd   :  { %v113_v51 = vpack.c.bf16 %v69_v45, %v68_v44  ;;  %v38_v53 = vld [vmem:[%s533_s1 + $0x40] sm:$0xff]  ;;  %v39_v54 = vld [vmem:[%s533_s1 + $0x48] sm:$0xff]  ;;  %v122_v56 = vpack.c.bf16 %v87_v49, %v86_v48  ;;  %v56_v58 = vld [vmem:[%s533_s1 + $0xd0] sm:$0xff] }
   0xe   :  { %241 = vmatpush3.bf16.msra.mxu0 %v96_v34  ;;  %v70_v55 = vld [vmem:[%s533_s1 + $0x140] sm:$0xff]  ;;  %v71_v57 = vld [vmem:[%s533_s1 + $0x148] sm:$0xff]  ;;  %v57_v59 = vld [vmem:[%s533_s1 + $0xd8] sm:$0xff]  ;;  %v98_v62 = vpack.c.bf16 %v39_v54, %v38_v53 }
   0xf   :  { %263 = vmatpush3.bf16.msra.mxu1 %v112_v38  ;;  %242 = vmatprep.subr.bf16.mxu0 %v105_v39  ;;  %v88_v60 = vld [vmem:[%s533_s1 + $0x1d0] sm:$0xff]  ;;  %v89_v61 = vld [vmem:[%s533_s1 + $0x1d8] sm:$0xff]  ;;  %v114_v63 = vpack.c.bf16 %v71_v57, %v70_v55  ;;  %v107_v0 = vpack.c.bf16 %v57_v59, %v56_v58  ;;  %v58_v6 = vld [vmem:[%s533_s1 + $0xe0] sm:$0xff] }
  0x10   :  { %264 = vmatprep.subr.bf16.mxu1 %v121_v43  ;;  %v40_v1 = vld [vmem:[%s533_s1 + $0x50] sm:$0xff]  ;;  %v41_v2 = vld [vmem:[%s533_s1 + $0x58] sm:$0xff]  ;;  %v123_v4 = vpack.c.bf16 %v89_v61, %v88_v60  ;;  %v59_v7 = vld [vmem:[%s533_s1 + $0xe8] sm:$0xff] }
  0x11   :  { %v72_v3 = vld [vmem:[%s533_s1 + $0x150] sm:$0xff]  ;;  %v73_v5 = vld [vmem:[%s533_s1 + $0x158] sm:$0xff]  ;;  %v90_v8 = vld [vmem:[%s533_s1 + $0x1e0] sm:$0xff]  ;;  %v99_v11 = vpack.c.bf16 %v41_v2, %v40_v1  ;;  %v108_v16 = vpack.c.bf16 %v59_v7, %v58_v6 }
  0x12   :  { %243 = vmatpush3.bf16.msra.mxu0 %v97_v50  ;;  %v91_v9 = vld [vmem:[%s533_s1 + $0x1e8] sm:$0xff]  ;;  %v42_v10 = vld [vmem:[%s533_s1 + $0x60] sm:$0xff]  ;;  %v115_v15 = vpack.c.bf16 %v73_v5, %v72_v3  ;;  %v60_v17 = vld [vmem:[%s533_s1 + $0xf0] sm:$0xff] }
  0x13   :  { %265 = vmatpush3.bf16.msra.mxu1 %v113_v51  ;;  %244 = vmatprep.subr.bf16.mxu0 %v106_v52  ;;  %v43_v12 = vld [vmem:[%s533_s1 + $0x68] sm:$0xff]  ;;  %v74_v13 = vld [vmem:[%s533_s1 + $0x160] sm:$0xff]  ;;  %v124_v20 = vpack.c.bf16 %v91_v9, %v90_v8  ;;  %v61_v21 = vld [vmem:[%s533_s1 + $0xf8] sm:$0xff] }
  0x14   :  { %266 = vmatprep.subr.bf16.mxu1 %v122_v56  ;;  %v75_v14 = vld [vmem:[%s533_s1 + $0x168] sm:$0xff]  ;;  %v21_v23 = vld [vmem:[%s534_s0 + $0x18] sm:$0xff]  ;;  %v92_v25 = vld [vmem:[%s533_s1 + $0x1f0] sm:$0xff]  ;;  %v100_v28 = vpack.c.bf16 %v43_v12, %v42_v10  ;;  %v109_v30 = vpack.c.bf16 %v61_v21, %v60_v17 }
  0x15   :  { %v19_v18 = vld [vmem:[%s534_s0 + $0x8] sm:$0xff]  ;;  %v25_v24 = vld [vmem:[%s534_s0 + $0x38] sm:$0xff]  ;;  %v116_v29 = vpack.c.bf16 %v75_v14, %v74_v13  ;;  %v44_v31 = vld [vmem:[%s533_s1 + $0x70] sm:$0xff] }
  0x16   :  { %245 = vmatpush3.bf16.msra.mxu0 %v98_v62  ;;  %v23_v19 = vld [vmem:[%s534_s0 + $0x28] sm:$0xff]  ;;  %v93_v26 = vld [vmem:[%s533_s1 + $0x1f8] sm:$0xff]  ;;  %v29_v27 = vpack.c.bf16 %v25_v24, %v21_v23  ;;  %v76_v34 = vld [vmem:[%s533_s1 + $0x170] sm:$0xff] }
  0x17   :  { %267 = vmatpush3.bf16.msra.mxu1 %v114_v63  ;;  %246 = vmatprep.subr.bf16.mxu0 %v107_v0  ;;  %v27_v22 = vpack.c.bf16 %v23_v19, %v19_v18  ;;  %v45_v32 = vld [vmem:[%s533_s1 + $0x78] sm:$0xff]  ;;  %v125_v33 = vpack.c.bf16 %v93_v26, %v92_v25  ;;  %v18_v37 = vld [vmem:[%s534_s0] sm:$0xff]  ;;  %v20_v40 = vld [vmem:[%s534_s0 + $0x10] sm:$0xff] }
  0x18   :  { %268 = vmatprep.subr.bf16.mxu1 %v123_v4  ;;  %v77_v35 = vld [vmem:[%s533_s1 + $0x178] sm:$0xff]  ;;  %206 = vmatprep.mubr.bf16.mxu1 %v29_v27  ;;  %v101_v36 = vpack.c.bf16 %v45_v32, %v44_v31  ;;  %v22_v38 = vld [vmem:[%s534_s0 + $0x20] sm:$0xff]  ;;  %v24_v41 = vld [vmem:[%s534_s0 + $0x30] sm:$0xff] }
  0x19   :  { %165 = vmatprep.mubr.bf16.mxu0 %v27_v22  ;;  %v117_v39 = vpack.c.bf16 %v77_v35, %v76_v34  ;;  %v26_v42 = vpack.c.bf16 %v22_v38, %v18_v37  ;;  %v28_v43 = vpack.c.bf16 %v24_v41, %v20_v40  ;;  %v234_v46 = vld [vmem:[%s535_s2] ss:$0 sm:$0xff] }
  0x1a   :  { %247 = vmatpush3.bf16.msra.mxu0 %v99_v11  ;;  %v235_v57 = vld [vmem:[%s536_s3] ss:$0 sm:$0xff] }
  0x1b   :  { %269 = vmatpush3.bf16.msra.mxu1 %v115_v15  ;;  %248 = vmatprep.subr.bf16.mxu0 %v108_v16 }
  0x1c   :  { %270 = vmatprep.subr.bf16.mxu1 %v124_v20 }
  0x1e   :  { %249 = vmatpush3.bf16.msra.mxu0 %v100_v28 }
  0x1f   :  { %271 = vmatpush3.bf16.msra.mxu1 %v116_v29  ;;  %250 = vmatprep.subr.bf16.mxu0 %v109_v30 }
  0x20   :  { %272 = vmatprep.subr.bf16.mxu1 %v125_v33 }
  0x22   :  { %251 = vmatpush3.bf16.msra.mxu0 %v101_v36 }
  0x23   :  { %273 = vmatpush3.bf16.msra.mxu1 %v117_v39 }
  0x25   :  { %166 = vmatmul.mubr.bf16.vlgmr.msra.gmra.mrb[0].mxu0 %v26_v42 }
  0x26   :  { %207 = vmatmul.mubr.bf16.vlgmr.msra.gmra.mrb[0].mxu1 %v28_v43 }
  0xf8   :  { %v252_v44 = vpop.f32.mrb[0].mxu0 }
  0xf9   :  { %v274_v45 = vpop.f32.mrb[0].mxu1  ;;  %v253_v47 = vpop.f32.mrb[1].mxu0 }
  0xfa   :  { %v254_v48 = vadd.f32 %v253_v47, %v252_v44  ;;  %v275_v49 = vpop.f32.mrb[1].mxu1  ;;  %v255_v50 = vpop.f32.mrb[2].mxu0 }
  0xfb   :  { %v276_v51 = vadd.f32 %v275_v49, %v274_v45  ;;  %v277_v52 = vpop.f32.mrb[2].mxu1  ;;  %v256_v53 = vpop.f32.mrb[3].mxu0 }
  0xfc   :  { %v168_v54 = vadd.f32 %v254_v48, %v234_v46  ;;  %v257_v55 = vadd.f32 %v256_v53, %v255_v50  ;;  %v278_v56 = vpop.f32.mrb[3].mxu1 }
  0xfd   :  { %v279_v58 = vadd.f32 %v278_v56, %v277_v52 }
  0xfe   :  { %v209_v59 = vadd.f32 %v276_v51, %v168_v54  ;;  %v171_v60 = vadd.f32 %v257_v55, %v234_v46 }
 0x100   :  { %vm216_vm0 = vcmp.ge.f32.partialorder %v209_v59, 0.0  ;;  %v224_v61 = vmul.f32 %v235_v57, %v209_v59  ;;  %v212_v62 = vadd.f32 %v279_v58, %v171_v60 }
 0x102   :  { %v226_v63 = vsel %vm216_vm0, %v209_v59, %v224_v61  ;;  %vm217_vm1 = vcmp.ge.f32.partialorder %v212_v62, 0.0  ;;  %v225_v0 = vmul.f32 %v235_v57, %v212_v62 }
 0x103   :  { %228 = vst [vmem:[%s537_s4] sm:$0xff] %v226_v63 }
 0x104   :  { %v227_v1 = vsel %vm217_vm1, %v212_v62, %v225_v0 }
 0x105   :  { %229 = vst [vmem:[%s537_s4 + $0x8] sm:$0xff] %v227_v1 }

// kernel: lessr_forward.14
= control target key start
LH: loop header
LB: loop body
LE: loop exit
PB: predicated region body
PF: predicated region fallthrough
CT: control target
= control target key end

     0   :  { %v218_v3 = vmov 0   ;;  %vm67_vm0 = vcmask 261120   ;;  %v47_v28 = vlaneseq  ;;  %s328_s1 = inlined_call_operand.vmem [shape: f32[32,512], index: 1, kind: input, shape index: {}]   ;;  %s329_s0 = inlined_call_operand.vmem [shape: f32[16,32], index: 0, kind: input, shape index: {}]   ;;  %s330_s2 = inlined_call_operand.vmem [shape: f32[1,512], index: 2, kind: input, shape index: {}]   ;;  %s331_s3 = inlined_call_operand.vmem [shape: f32[1,512], index: 3, kind: input, shape index: {}]   ;;  %s332_s4 = inlined_call_operand.vmem [shape: f32[16,512], index: 4, kind: output, shape index: {}]  }
   0x1   :  { %v22_v0 = vld [vmem:[%s328_s1 + $0x8] sm:$0xff]  ;;  %v24_v2 = vld [vmem:[%s328_s1 + $0x18] sm:$0xff]  ;;  %103 = vmatprep.mubr.bf16.mxu0 %v218_v3  ;;  %146 = vmatprep.mubr.bf16.mxu1 %v218_v3  ;;  %v21_v6 = vld [vmem:[%s328_s1] sm:$0xff] }
   0x2   :  { %v26_v1 = vld [vmem:[%s328_s1 + $0x28] sm:$0xff]  ;;  %v28_v5 = vld [vmem:[%s328_s1 + $0x38] sm:$0xff]  ;;  %v25_v7 = vld [vmem:[%s328_s1 + $0x20] sm:$0xff]  ;;  %v48_v29 = vshrl.u32 %v47_v28, 7 }
   0x3   :  { %v38_v4 = vpack.c.bf16 %v26_v1, %v22_v0  ;;  %v40_v8 = vpack.c.bf16 %v28_v5, %v24_v2  ;;  %v37_v9 = vpack.c.bf16 %v25_v7, %v21_v6  ;;  %v23_v10 = vld [vmem:[%s328_s1 + $0x10] sm:$0xff]  ;;  %v30_v12 = vld [vmem:[%s328_s1 + $0x48] sm:$0xff]  ;;  %v32_v15 = vld [vmem:[%s328_s1 + $0x58] sm:$0xff] }
   0x4   :  { %v27_v11 = vld [vmem:[%s328_s1 + $0x30] sm:$0xff]  ;;  %v34_v14 = vld [vmem:[%s328_s1 + $0x68] sm:$0xff]  ;;  %v36_v16 = vld [vmem:[%s328_s1 + $0x78] sm:$0xff]  ;;  %v49_v30 = vsub.s32 0, %v48_v29  ;;  %v57_v32 = vsub.s32 2, %v48_v29  ;;  %v53_v33 = vsub.s32 1, %v48_v29 }
   0x5   :  { %71 = vmatprep.subr.bf16.mxu0 %v38_v4  ;;  %v39_v13 = vpack.c.bf16 %v27_v11, %v23_v10  ;;  %114 = vmatprep.subr.bf16.mxu1 %v40_v8  ;;  %v42_v17 = vpack.c.bf16 %v34_v14, %v30_v12  ;;  %v44_v18 = vpack.c.bf16 %v36_v16, %v32_v15  ;;  %v29_v19 = vld [vmem:[%s328_s1 + $0x40] sm:$0xff]  ;;  %v31_v21 = vld [vmem:[%s328_s1 + $0x50] sm:$0xff]  ;;  %v19_v25 = vld [vmem:[%s329_s0 + $0x8] sm:$0xff]  ;;  %v61_v34 = vsub.s32 3, %v48_v29 }
   0x6   :  { %72 = vmatpush1.bf16.msra.mxu0 %v37_v9  ;;  %v33_v20 = vld [vmem:[%s328_s1 + $0x60] sm:$0xff]  ;;  %v35_v23 = vld [vmem:[%s328_s1 + $0x70] sm:$0xff] }
   0x7   :  { %115 = vmatpush1.bf16.msra.mxu1 %v39_v13  ;;  %v41_v22 = vpack.c.bf16 %v33_v20, %v29_v19  ;;  %v18_v24 = vld [vmem:[%s329_s0] sm:$0xff]  ;;  %73 = vmatprep.subr.bf16.mxu0 %v42_v17  ;;  %v43_v26 = vpack.c.bf16 %v35_v23, %v31_v21 }
   0x8   :  { %116 = vmatprep.subr.bf16.mxu1 %v44_v18  ;;  %v20_v27 = vpack.c.bf16 %v19_v25, %v18_v24  ;;  %v45_v31 = vld [vmem:[%s330_s2] sm:$0xf] }
   0x9   :  { %v157_v35 = vld [vmem:[%s331_s3] sm:$0xf]  ;;  %v50_v36 = vrot.slane %v45_v31, %v49_v30  ;;  %v58_v37 = vrot.slane %v45_v31, %v57_v32  ;;  %v54_v38 = vrot.slane %v45_v31, %v53_v33  ;;  %v62_v40 = vrot.slane %v45_v31, %v61_v34 }
   0xa   :  { %74 = vmatpush1.bf16.msra.mxu0 %v41_v22  ;;  %v170_v39 = vrot.slane %v157_v35, %v49_v30  ;;  %v178_v42 = vrot.slane %v157_v35, %v57_v32  ;;  %v174_v43 = vrot.slane %v157_v35, %v53_v33  ;;  %v182_v47 = vrot.slane %v157_v35, %v61_v34 }
   0xb   :  { %117 = vmatpush1.bf16.msra.mxu1 %v43_v26 }
   0xd   :  { %215 = vmatmul.mubr.msk.bf16.vlgmr.msra.gmra.mrb[0].mxu0 %vm67_vm0, %v20_v27 }
   0xe   :  { %216 = vmatmul.mubr.msk.bf16.vlgmr.msra.gmra.mrb[0].mxu1 %vm67_vm0, %v20_v27 }
  0xe0   :  { %v105_v41 = vpop.f32.mrb[0].mxu0 }
  0xe1   :  { %v106_v44 = vadd.f32 %v105_v41, %v50_v36  ;;  %v148_v45 = vpop.f32.mrb[0].mxu1  ;;  %v107_v46 = vpop.f32.mrb[1].mxu0 }
  0xe2   :  { %v149_v48 = vadd.f32 %v148_v45, %v58_v37  ;;  %v108_v49 = vadd.f32 %v107_v46, %v54_v38  ;;  %v150_v50 = vpop.f32.mrb[1].mxu1  ;;  %v109_v51 = vpop.f32.mrb[2].mxu0 }
  0xe3   :  { %vm158_vm1 = vcmp.ge.f32.partialorder %v106_v44, 0.0  ;;  %v187_v52 = vmul.f32 %v170_v39, %v106_v44  ;;  %v151_v53 = vadd.f32 %v150_v50, %v62_v40  ;;  %v110_v54 = vadd.f32 %v109_v51, %v50_v36  ;;  %v152_v55 = vpop.f32.mrb[2].mxu1  ;;  %v111_v56 = vpop.f32.mrb[3].mxu0 }
  0xe4   :  { %vm160_vm2 = vcmp.ge.f32.partialorder %v149_v48, 0.0  ;;  %v189_v57 = vmul.f32 %v178_v42, %v149_v48  ;;  %vm159_vm3 = vcmp.ge.f32.partialorder %v108_v49, 0.0  ;;  %v188_v58 = vmul.f32 %v174_v43, %v108_v49  ;;  %v154_v59 = vpop.f32.mrb[3].mxu1 }
  0xe5   :  { %v195_v60 = vsel %vm158_vm1, %v106_v44, %v187_v52  ;;  %vm161_vm4 = vcmp.ge.f32.partialorder %v151_v53, 0.0  ;;  %v190_v61 = vmul.f32 %v182_v47, %v151_v53  ;;  %vm162_vm5 = vcmp.ge.f32.partialorder %v110_v54, 0.0 }
  0xe6   :  { %203 = vst [vmem:[%s332_s4] sm:$0xff] %v195_v60  ;;  %v197_v62 = vsel %vm160_vm2, %v149_v48, %v189_v57  ;;  %v196_v63 = vsel %vm159_vm3, %v108_v49, %v188_v58  ;;  %v191_v0 = vmul.f32 %v170_v39, %v110_v54  ;;  %v153_v1 = vadd.f32 %v152_v55, %v58_v37 }
  0xe7   :  { %205 = vst [vmem:[%s332_s4 + $0x10] sm:$0xff] %v197_v62  ;;  %204 = vst [vmem:[%s332_s4 + $0x8] sm:$0xff] %v196_v63  ;;  %v198_v2 = vsel %vm161_vm4, %v151_v53, %v190_v61  ;;  %v112_v3 = vadd.f32 %v111_v56, %v54_v38  ;;  %v155_v4 = vadd.f32 %v154_v59, %v62_v40 }
  0xe8   :  { %206 = vst [vmem:[%s332_s4 + $0x18] sm:$0xff] %v198_v2  ;;  %v199_v5 = vsel %vm162_vm5, %v110_v54, %v191_v0  ;;  %vm164_vm6 = vcmp.ge.f32.partialorder %v153_v1, 0.0  ;;  %v193_v6 = vmul.f32 %v178_v42, %v153_v1 }
  0xe9   :  { %207 = vst [vmem:[%s332_s4 + $0x20] sm:$0xff] %v199_v5  ;;  %vm163_vm7 = vcmp.ge.f32.partialorder %v112_v3, 0.0  ;;  %v192_v7 = vmul.f32 %v174_v43, %v112_v3  ;;  %vm165_vm8 = vcmp.ge.f32.partialorder %v155_v4, 0.0  ;;  %v194_v8 = vmul.f32 %v182_v47, %v155_v4 }
  0xea   :  { %v201_v9 = vsel %vm164_vm6, %v153_v1, %v193_v6 }
  0xeb   :  { %209 = vst [vmem:[%s332_s4 + $0x30] sm:$0xff] %v201_v9  ;;  %v200_v10 = vsel %vm163_vm7, %v112_v3, %v192_v7  ;;  %v202_v11 = vsel %vm165_vm8, %v155_v4, %v194_v8 }
  0xec   :  { %208 = vst [vmem:[%s332_s4 + $0x28] sm:$0xff] %v200_v10  ;;  %210 = vst [vmem:[%s332_s4 + $0x38] sm:$0xff] %v202_v11 }

// kernel: lessr_forward.16
= control target key start
LH: loop header
LB: loop body
LE: loop exit
PB: predicated region body
PF: predicated region fallthrough
CT: control target
= control target key end

     0   :  { %v120_v0 = vmov 0.0   ;;  %vm121_vm0 = vmmov 0   ;;  %vm39_vm1 = vcmask 523264   ;;  %s183_s1 = inlined_call_operand.vmem [shape: f32[64,128], index: 1, kind: input, shape index: {}]   ;;  %s184_s0 = inlined_call_operand.vmem [shape: f32[8,64], index: 0, kind: input, shape index: {}]   ;;  %s185_s2 = inlined_call_operand.vmem [shape: f32[1,128], index: 2, kind: input, shape index: {}]   ;;  %s186_s3 = inlined_call_operand.vmem [shape: f32[1,128], index: 3, kind: input, shape index: {}]   ;;  %s187_s4 = inlined_call_operand.vmem [shape: f32[8,128], index: 4, kind: output, shape index: {}]  }
   0x1   :  { %106 = vmatprep.subr.bf16.mxu0 %v120_v0  ;;  %v20_v1 = vld [vmem:[%s183_s1] sm:$0xff]  ;;  %v21_v2 = vld [vmem:[%s183_s1 + $0x8] sm:$0xff]  ;;  %v22_v3 = vld [vmem:[%s183_s1 + $0x10] sm:$0xff]  ;;  %114 = vmatprep.mubr.msk.bf16.mxu0 %vm121_vm0, %v120_v0 }
   0x2   :  { %v28_v4 = vpack.c.bf16 %v21_v2, %v20_v1  ;;  %v23_v5 = vld [vmem:[%s183_s1 + $0x18] sm:$0xff]  ;;  %v24_v7 = vld [vmem:[%s183_s1 + $0x20] sm:$0xff]  ;;  %v25_v8 = vld [vmem:[%s183_s1 + $0x28] sm:$0xff] }
   0x3   :  { %v29_v6 = vpack.c.bf16 %v23_v5, %v22_v3  ;;  %v30_v9 = vpack.c.bf16 %v25_v8, %v24_v7  ;;  %v26_v10 = vld [vmem:[%s183_s1 + $0x30] sm:$0xff]  ;;  %v27_v11 = vld [vmem:[%s183_s1 + $0x38] sm:$0xff]  ;;  %v18_v13 = vld [vmem:[%s184_s0] sm:$0xff] }
   0x4   :  { %107 = vmatpush3.bf16.msra.mxu0 %v28_v4  ;;  %v31_v12 = vpack.c.bf16 %v27_v11, %v26_v10  ;;  %v19_v14 = vpack.c.bf16 %v18_v13, %v18_v13  ;;  %v98_v15 = vld [vmem:[%s185_s2] ss:$0 sm:$0xff] }
   0x5   :  { %108 = vmatprep.subr.bf16.mxu0 %v120_v0  ;;  %v100_v17 = vld [vmem:[%s186_s3] ss:$0 sm:$0xff] }
   0x8   :  { %109 = vmatpush3.bf16.msra.mxu0 %v29_v6 }
   0x9   :  { %110 = vmatprep.subr.bf16.mxu0 %v120_v0 }
   0xc   :  { %111 = vmatpush3.bf16.msra.mxu0 %v30_v9 }
   0xd   :  { %112 = vmatprep.subr.bf16.mxu0 %v120_v0 }
  0x10   :  { %113 = vmatpush3.bf16.msra.mxu0 %v31_v12 }
  0x13   :  { %115 = vmatmul.mubr.msk.bf16.vlgmr.msra.gmra.mrb[0].mxu0 %vm39_vm1, %v19_v14 }
  0xe6   :  { %v77_v16 = vpop.f32.mrb[0].mxu0 }
  0xe7   :  { %v78_v18 = vadd.f32 %v98_v15, %v77_v16  ;;  %v116_v19 = vpop.f32.mrb[1].mxu0 }
  0xe8   :  { %v80_v20 = vpop.f32.mrb[2].mxu0 }
  0xe9   :  { %vm84_vm2 = vcmp.ge.f32.partialorder %v78_v18, 0.0  ;;  %v91_v21 = vmul.f32 %v100_v17, %v78_v18  ;;  %v117_v22 = vpop.f32.mrb[3].mxu0 }
  0xeb   :  { %v92_v23 = vsel %vm84_vm2, %v78_v18, %v91_v21 }
  0xec   :  { %93 = vst [vmem:[%s187_s4] sm:$0xff] %v92_v23 }

// kernel: lessr_forward.18
= control target key start
LH: loop header
LB: loop body
LE: loop exit
PB: predicated region body
PF: predicated region fallthrough
CT: control target
= control target key end

     0   :  { %vm28_vm0 = vcmask 261120   ;;  %v515_v0 = vmov 0.0   ;;  %vm516_vm1 = vmmov 0   ;;  %vm25_vm2 = vcmask 7168   ;;  %s707_s1 = inlined_call_operand.vmem [shape: f32[128,32], index: 1, kind: input, shape index: {}]   ;;  %s708_s2 = inlined_call_operand.vmem [shape: f32[1,32], index: 2, kind: input, shape index: {}]   ;;  %s709_s0 = inlined_call_operand.vmem [shape: s32[1,128], index: 0, kind: input, shape index: {}]   ;;  %s710_s3 = inlined_call_operand.vmem [shape: f32[128,32], index: 3, kind: input, shape index: {}]   ;;  %s711_s4 = inlined_call_operand.vmem [shape: f32[1,32], index: 4, kind: input, shape index: {}]   ;;  %s712_s5 = inlined_call_operand.vmem [shape: f32[8,32], index: 5, kind: output, shape index: {}]  }
   0x1   :  { %399 = vmatprep.subr.bf16.mxu0 %v515_v0  ;;  %v31_v1 = vld [vmem:[%s707_s1] sm:$0xff]  ;;  %v32_v2 = vld [vmem:[%s707_s1 + $0x8] sm:$0xff]  ;;  %29 = vst.msk [vmem:[#allocation4] sm:$0xff] %vm28_vm0, %v515_v0  ;;  %v33_v3 = vld [vmem:[%s707_s1 + $0x10] sm:$0xff]  ;;  %415 = vmatprep.mubr.msk.bf16.mxu0 %vm516_vm1, %v515_v0 }
   0x2   :  { %v361_v4 = vmul.f32 -1.442695, %v31_v1  ;;  %v362_v5 = vmul.f32 -1.442695, %v32_v2  ;;  %v34_v6 = vld [vmem:[%s707_s1 + $0x18] sm:$0xff]  ;;  %419 = vmatprep.subr.bf16.mxu1 %v515_v0  ;;  %435 = vmatprep.mubr.msk.bf16.mxu1 %vm516_vm1, %v515_v0  ;;  %v35_v9 = vld [vmem:[%s707_s1 + $0x20] sm:$0xff] }
   0x3   :  { %v363_v7 = vmul.f32 -1.442695, %v33_v3  ;;  %v364_v8 = vmul.f32 -1.442695, %v34_v6  ;;  %v36_v10 = vld [vmem:[%s707_s1 + $0x28] sm:$0xff]  ;;  %v37_v13 = vld [vmem:[%s707_s1 + $0x30] sm:$0xff] }
   0x4   :  { %445 = vpow2.f32 %v361_v4  ;;  %v365_v11 = vmul.f32 -1.442695, %v35_v9  ;;  %v366_v12 = vmul.f32 -1.442695, %v36_v10  ;;  %v38_v14 = vld [vmem:[%s707_s1 + $0x38] sm:$0xff]  ;;  %v39_v25 = vld [vmem:[%s707_s1 + $0x40] sm:$0xff] }
   0x5   :  { %447 = vpow2.f32 %v362_v5  ;;  %v367_v15 = vmul.f32 -1.442695, %v37_v13  ;;  %v368_v16 = vmul.f32 -1.442695, %v38_v14  ;;  %v40_v26 = vld [vmem:[%s707_s1 + $0x48] sm:$0xff]  ;;  %v41_v34 = vld [vmem:[%s707_s1 + $0x50] sm:$0xff] }
   0x6   :  { %449 = vpow2.f32 %v363_v7  ;;  %v369_v29 = vmul.f32 -1.442695, %v39_v25  ;;  %v370_v30 = vmul.f32 -1.442695, %v40_v26  ;;  %v42_v37 = vld [vmem:[%s707_s1 + $0x58] sm:$0xff]  ;;  %v43_v48 = vld [vmem:[%s707_s1 + $0x60] sm:$0xff] }
   0x7   :  { %451 = vpow2.f32 %v364_v8  ;;  %v371_v39 = vmul.f32 -1.442695, %v41_v34  ;;  %v372_v43 = vmul.f32 -1.442695, %v42_v37  ;;  %v44_v51 = vld [vmem:[%s707_s1 + $0x68] sm:$0xff]  ;;  %v45_v61 = vld [vmem:[%s707_s1 + $0x70] sm:$0xff]  ;;  %v221_v37 = vlaneseq }
   0x8   :  { %453 = vpow2.f32 %v365_v11  ;;  %v373_v54 = vmul.f32 -1.442695, %v43_v48  ;;  %v374_v57 = vmul.f32 -1.442695, %v44_v51  ;;  %v46_v63 = vld [vmem:[%s707_s1 + $0x78] sm:$0xff]  ;;  %27 = vst.msk [vmem:[#allocation3] sm:$0xff] %vm25_vm2, %v515_v0 }
   0x9   :  { %455 = vpow2.f32 %v366_v12  ;;  %v375_v5 = vmul.f32 -1.442695, %v45_v61  ;;  %v376_v6 = vmul.f32 -1.442695, %v46_v63  ;;  %v143_v34 = vld [vmem:[%s708_s2] sm:$0x1] }
   0xa   :  { %457 = vpow2.f32 %v367_v15  ;;  %v266_v48 = vld [vmem:[%s710_s3] sm:$0xff] }
   0xb   :  { %459 = vpow2.f32 %v368_v16 }
   0xe   :  { %v446_v17 = vpop.eup %445 }
   0xf   :  { %v448_v18 = vpop.eup %447  ;;  %v95_v19 = vadd.f32 1.0, %v446_v17 }
  0x10   :  { %v450_v20 = vpop.eup %449  ;;  %v96_v21 = vadd.f32 1.0, %v448_v18 }
  0x11   :  { %v452_v22 = vpop.eup %451  ;;  %461 = vrcp.f32 %v95_v19  ;;  %v97_v23 = vadd.f32 1.0, %v450_v20 }
  0x12   :  { %463 = vrcp.f32 %v96_v21  ;;  %v98_v24 = vadd.f32 1.0, %v452_v22  ;;  %v454_v27 = vpop.eup %453 }
  0x13   :  { %465 = vrcp.f32 %v97_v23  ;;  %v456_v28 = vpop.eup %455  ;;  %v99_v31 = vadd.f32 1.0, %v454_v27 }
  0x14   :  { %467 = vrcp.f32 %v98_v24  ;;  %v100_v32 = vadd.f32 1.0, %v456_v28  ;;  %v458_v33 = vpop.eup %457 }
  0x15   :  { %469 = vpow2.f32 %v369_v29  ;;  %v460_v35 = vpop.eup %459  ;;  %v101_v45 = vadd.f32 1.0, %v458_v33 }
  0x16   :  { %471 = vpow2.f32 %v370_v30  ;;  %v102_v46 = vadd.f32 1.0, %v460_v35  ;;  %v144_v35 = vpack.c.bf16 %v143_v34, %v143_v34 }
  0x17   :  { %473 = vrcp.f32 %v99_v31 }
  0x18   :  { %475 = vrcp.f32 %v100_v32 }
  0x19   :  { %477 = vpow2.f32 %v371_v39 }
  0x1a   :  { %479 = vpow2.f32 %v372_v43 }
  0x1b   :  { %v462_v36 = vpop.eup %461  ;;  %481 = vrcp.f32 %v101_v45 }
  0x1c   :  { %v464_v38 = vpop.eup %463  ;;  %483 = vrcp.f32 %v102_v46 }
  0x1d   :  { %v466_v40 = vpop.eup %465  ;;  %v145_v41 = vpack.c.bf16 %v464_v38, %v462_v36  ;;  %485 = vpow2.f32 %v373_v54  ;;  %v517_v36 = vmov -1e+30   ;;  %v625_v38 = vshrl.u32 %v221_v37, 7  ;;  %v270_v54 = vld [vmem:[%s710_s3 + $0x20] sm:$0xff] }
  0x1e   :  { %v468_v42 = vpop.eup %467  ;;  %26 = vst.msk [vmem:[#allocation2] sm:$0xff] %vm25_vm2, %v517_v36  ;;  %v380_v37 = vld [vmem:[%s711_s4] ss:$0 sm:$0xff] }
  0x1f   :  { %v158_v44 = vsel %vm28_vm0, %v145_v41, 0  ;;  %v146_v47 = vpack.c.bf16 %v468_v42, %v466_v40  ;;  %v470_v49 = vpop.eup %469  ;;  %v230_v39 = vsub.s32 0, %v625_v38  ;;  %v631_v40 = vld [vmem:[%s709_s0] ss:$0 sm:$0xff] }
  0x20   :  { %400 = vmatpush3.bf16.xpose.msra.mxu0 %v158_v44  ;;  %v472_v50 = vpop.eup %471  ;;  %v103_v56 = vadd.f32 1.0, %v470_v49  ;;  %vm227_vm3 = vcmp.eq.s32.totalorder %v625_v38, %v631_v40  ;;  %v267_v49 = vld [vmem:[%s710_s3 + $0x8] sm:$0xff] }
  0x21   :  { %401 = vmatprep.subr.bf16.mxu0 %v515_v0  ;;  %v474_v52 = vpop.eup %473  ;;  %v161_v53 = vsel %vm28_vm0, %v146_v47, 0  ;;  %v104_v58 = vadd.f32 1.0, %v472_v50  ;;  %v518_v47 = vmov 0   ;;  %v268_v50 = vld [vmem:[%s710_s3 + $0x10] sm:$0xff]  ;;  %v282_v51 = vpack.c.bf16 %v267_v49, %v266_v48 }
  0x22   :  { %v476_v55 = vpop.eup %475  ;;  %487 = vrcp.f32 %v103_v56  ;;  %443 = vset.pattern.permute.xlu0 %v518_v47  ;;  %444 = vset.pattern.permute.xlu1 %v518_v47 }
  0x23   :  { %v147_v59 = vpack.c.bf16 %v476_v55, %v474_v52  ;;  %v478_v60 = vpop.eup %477  ;;  %489 = vpow2.f32 %v374_v57  ;;  %v269_v52 = vld [vmem:[%s710_s3 + $0x18] sm:$0xff]  ;;  %420 = vmatpush3.bf16.msra.mxu1 %v282_v51  ;;  %v271_v55 = vld [vmem:[%s710_s3 + $0x28] sm:$0xff] }
  0x24   :  { %v480_v62 = vpop.eup %479  ;;  %491 = vrcp.f32 %v104_v58  ;;  %v105_v3 = vadd.f32 1.0, %v478_v60  ;;  %421 = vmatprep.subr.bf16.mxu1 %v515_v0  ;;  %v284_v56 = vpack.c.bf16 %v271_v55, %v270_v54  ;;  %v273_v60 = vld [vmem:[%s710_s3 + $0x38] sm:$0xff] }
  0x25   :  { %v482_v1 = vpop.eup %481  ;;  %v164_v2 = vsel %vm28_vm0, %v147_v59, 0  ;;  %v106_v7 = vadd.f32 1.0, %v480_v62  ;;  %v233_v57 = vld [vmem:[#allocation2] sm:$0xff]  ;;  %v272_v59 = vld [vmem:[%s710_s3 + $0x30] sm:$0xff] }
  0x26   :  { %v484_v4 = vpop.eup %483  ;;  %493 = vrcp.f32 %v105_v3  ;;  %v285_v62 = vpack.c.bf16 %v273_v60, %v272_v59 }
  0x27   :  { %v148_v8 = vpack.c.bf16 %v484_v4, %v482_v1  ;;  %495 = vpow2.f32 %v375_v5  ;;  %v486_v9 = vpop.eup %485  ;;  %v274_v1 = vld [vmem:[%s710_s3 + $0x40] sm:$0xff]  ;;  %v276_v4 = vld [vmem:[%s710_s3 + $0x50] sm:$0xff]  ;;  %v277_v5 = vld [vmem:[%s710_s3 + $0x58] sm:$0xff] }
  0x28   :  { %402 = vmatpush3.bf16.xpose.msra.mxu0 %v161_v53  ;;  %497 = vpow2.f32 %v376_v6  ;;  %v107_v14 = vadd.f32 1.0, %v486_v9  ;;  %v283_v53 = vpack.c.bf16 %v269_v52, %v268_v50  ;;  %v287_v6 = vpack.c.bf16 %v277_v5, %v276_v4 }
  0x29   :  { %403 = vmatprep.subr.bf16.mxu0 %v515_v0  ;;  %499 = vrcp.f32 %v106_v7  ;;  %v167_v12 = vsel %vm28_vm0, %v148_v8, 0  ;;  %v278_v7 = vld [vmem:[%s710_s3 + $0x60] sm:$0xff]  ;;  %v279_v8 = vld [vmem:[%s710_s3 + $0x68] sm:$0xff] }
  0x2a   :  { %501 = vrcp.f32 %v107_v14  ;;  %422 = vmatpush3.bf16.msra.mxu1 %v283_v53  ;;  %v288_v9 = vpack.c.bf16 %v279_v8, %v278_v7 }
  0x2b   :  { %423 = vmatprep.subr.bf16.mxu1 %v515_v0 }
  0x2c   :  { %v488_v10 = vpop.eup %487 }
  0x2d   :  { %v490_v11 = vpop.eup %489 }
  0x2e   :  { %v492_v13 = vpop.eup %491  ;;  %v108_v15 = vadd.f32 1.0, %v490_v11  ;;  %424 = vmatpush3.bf16.msra.mxu1 %v284_v56  ;;  %v281_v11 = vld [vmem:[%s710_s3 + $0x78] sm:$0xff] }
  0x2f   :  { %v149_v16 = vpack.c.bf16 %v492_v13, %v488_v10  ;;  %425 = vmatprep.subr.bf16.mxu1 %v515_v0  ;;  %v280_v10 = vld [vmem:[%s710_s3 + $0x70] sm:$0xff] }
  0x30   :  { %404 = vmatpush3.bf16.xpose.msra.mxu0 %v164_v2  ;;  %v494_v17 = vpop.eup %493  ;;  %503 = vrcp.f32 %v108_v15  ;;  %v275_v2 = vld [vmem:[%s710_s3 + $0x48] sm:$0xff] }
  0x31   :  { %405 = vmatprep.subr.bf16.mxu0 %v515_v0  ;;  %v496_v18 = vpop.eup %495  ;;  %v170_v20 = vsel %vm28_vm0, %v149_v16, 0  ;;  %v286_v3 = vpack.c.bf16 %v275_v2, %v274_v1  ;;  %v379_v16 = vsel %vm227_vm3, 1.0, %v515_v0 }
  0x32   :  { %v498_v19 = vpop.eup %497  ;;  %v109_v22 = vadd.f32 1.0, %v496_v18  ;;  %426 = vmatpush3.bf16.msra.mxu1 %v285_v62 }
  0x33   :  { %v500_v21 = vpop.eup %499  ;;  %v110_v23 = vadd.f32 1.0, %v498_v19  ;;  %427 = vmatprep.subr.bf16.mxu1 %v515_v0 }
  0x34   :  { %v150_v24 = vpack.c.bf16 %v500_v21, %v494_v17  ;;  %505 = vrcp.f32 %v109_v22  ;;  %v502_v25 = vpop.eup %501  ;;  %v251_v22 = vld [vmem:[#allocation3] sm:$0xff] }
  0x35   :  { %507 = vrcp.f32 %v110_v23 }
  0x36   :  { %v173_v26 = vsel %vm28_vm0, %v150_v24, 0  ;;  %428 = vmatpush3.bf16.msra.mxu1 %v286_v3 }
  0x37   :  { %429 = vmatprep.subr.bf16.mxu1 %v515_v0 }
  0x38   :  { %406 = vmatpush3.bf16.xpose.msra.mxu0 %v167_v12  ;;  %v289_v12 = vpack.c.bf16 %v281_v11, %v280_v10 }
  0x39   :  { %407 = vmatprep.subr.bf16.mxu0 %v515_v0 }
  0x3a   :  { %v504_v27 = vpop.eup %503  ;;  %430 = vmatpush3.bf16.msra.mxu1 %v287_v6 }
  0x3b   :  { %v151_v28 = vpack.c.bf16 %v504_v27, %v502_v25  ;;  %431 = vmatprep.subr.bf16.mxu1 %v515_v0 }
  0x3d   :  { %v176_v30 = vsel %vm28_vm0, %v151_v28, 0 }
  0x3e   :  { %v506_v29 = vpop.eup %505  ;;  %432 = vmatpush3.bf16.msra.mxu1 %v288_v9 }
  0x3f   :  { %v508_v31 = vpop.eup %507  ;;  %433 = vmatprep.subr.bf16.mxu1 %v515_v0 }
  0x40   :  { %408 = vmatpush3.bf16.xpose.msra.mxu0 %v170_v20  ;;  %v152_v32 = vpack.c.bf16 %v508_v31, %v506_v29 }
  0x41   :  { %409 = vmatprep.subr.bf16.mxu0 %v515_v0 }
  0x42   :  { %v179_v33 = vsel %vm28_vm0, %v152_v32, 0  ;;  %434 = vmatpush3.bf16.msra.mxu1 %v289_v12 }
  0x48   :  { %410 = vmatpush3.bf16.xpose.msra.mxu0 %v173_v26 }
  0x49   :  { %411 = vmatprep.subr.bf16.mxu0 %v515_v0 }
  0x50   :  { %412 = vmatpush3.bf16.xpose.msra.mxu0 %v176_v30 }
  0x51   :  { %413 = vmatprep.subr.bf16.mxu0 %v515_v0  ;;  %v258_v0 = vld [vmem:[#allocation4] sm:$0xff] }
  0x58   :  { %414 = vmatpush3.bf16.xpose.msra.mxu0 %v179_v33 }
  0x5f   :  { %416 = vmatmul.mubr.msk.bf16.vlgmr.msra.gmra.mrb[0].mxu0 %vm28_vm0, %v144_v35 }
 0x132   :  { %v215_v41 = vpop.f32.mrb[0].mxu0 }
 0x133   :  { %v231_v42 = vrot.slane %v215_v41, %v230_v39  ;;  %v417_v43 = vpop.f32.mrb[1].mxu0 }
 0x134   :  { %v218_v44 = vpop.f32.mrb[2].mxu0 }
 0x135   :  { %v418_v45 = vpop.f32.mrb[3].mxu0  ;;  %v232_v46 = vsel %vm227_vm3, %v231_v42, -1e+30 }
 0x136   :  { %234 = vmax.xlane.f32.xlu0 %v232_v46 }
 0x1c3   :  { %v235_v58 = vpop.xlane.xlu0 %234 }
 0x1c4   :  { %v236_v61 = vmax.f32 %v233_v57, %v235_v58 }
 0x1c6   :  { %v237_v63 = vsub.f32 %v233_v57, %v236_v61  ;;  %332 = vst.msk [vmem:[#allocation2] sm:$0xff] %vm25_vm2, %v236_v61  ;;  %242 = vperm.xlu0 %443, %v236_v61  }
 0x1c8   :  { %v238_v20 = vmul.f32 1.442695, %v237_v63 }
 0x245   :  { %v243_v13 = vpop.permute.xlu0 %242 }
 0x246   :  { %v245_v14 = vsub.f32 %v232_v46, %v243_v13 }
 0x248   :  { %v246_v15 = vmul.f32 1.442695, %v245_v14 }
 0x24a   :  { %509 = vpow2.f32 %v246_v15 }
 0x24b   :  { %511 = vpow2.f32 %v238_v20 }
 0x254   :  { %v510_v17 = vpop.eup %509 }
 0x255   :  { %v250_v18 = vmul.f32 %v510_v17, %v379_v16  ;;  %v512_v21 = vpop.eup %511 }
 0x256   :  { %v252_v23 = vmul.f32 %v512_v21, %v251_v22 }
 0x257   :  { %253 = vadd.xlane.f32.xlu1 %v250_v18  ;;  %v265_v19 = vpack.c.bf16 %v250_v18, %v250_v18 }
 0x259   :  { %436 = vmatmul.mubr.bf16.vlgmr.msra.gmra.mrb[0].mxu1 %v265_v19 }
 0x268   :  { %261 = vperm.xlu1 %444, %v512_v21  }
 0x2e4   :  { %v254_v24 = vpop.xlane.xlu1 %253 }
 0x2e5   :  { %v255_v25 = vadd.f32 %v254_v24, %v252_v23 }
 0x2e7   :  { %257 = vst.msk [vmem:[#allocation3] sm:$0xff] %vm25_vm2, %v255_v25 }
 0x2e8   :  { %v262_v29 = vpop.permute.xlu1 %261 }
 0x2e9   :  { %v264_v30 = vmul.f32 %v262_v29, %v258_v0 }
 0x2ee   :  { %v336_v26 = vld [vmem:[#allocation3] sm:$0xff] }
 0x2ef   :  { %v337_v27 = vmax.f32 %v336_v26, 1e-30 }
 0x2f1   :  { %513 = vrcp.f32 %v337_v27 }
 0x2fb   :  { %v514_v28 = vpop.eup %513 }
 0x2fc   :  { %342 = vperm.xlu1 %444, %v514_v28  }
 0x32c   :  { %v324_v31 = vpop.f32.mrb[0].mxu1 }
 0x32d   :  { %v330_v32 = vadd.f32 %v324_v31, %v264_v30  ;;  %v437_v33 = vpop.f32.mrb[1].mxu1 }
 0x32e   :  { %v327_v34 = vpop.f32.mrb[2].mxu1 }
 0x32f   :  { %331 = vst.msk [vmem:[#allocation4] sm:$0xff] %vm28_vm0, %v330_v32  ;;  %v438_v35 = vpop.f32.mrb[3].mxu1 }
 0x336   :  { %v339_v36 = vld [vmem:[#allocation4] sm:$0xff] }
 0x37b   :  { %v343_v38 = vpop.permute.xlu1 %342 }
 0x37c   :  { %v345_v39 = vmul.f32 %v343_v38, %v339_v36 }
 0x37e   :  { %vm347_vm4 = vcmp.ge.f32.partialorder %v345_v39, 0.0  ;;  %v354_v40 = vmul.f32 %v380_v37, %v345_v39 }
 0x380   :  { %v355_v41 = vsel %vm347_vm4, %v345_v39, %v354_v40 }
 0x381   :  { %356 = vst.msk [vmem:[%s712_s5] sm:$0xff] %vm28_vm0, %v355_v41 }

// kernel: lessr_forward.19
= control target key start
LH: loop header
LB: loop body
LE: loop exit
PB: predicated region body
PF: predicated region fallthrough
CT: control target
= control target key end

     0   :  { %v132_v0 = vmov 0.0   ;;  %vm133_vm0 = vmmov 0   ;;  %vm45_vm1 = vcmask 785408   ;;  %s207_s1 = inlined_call_operand.vmem [shape: f32[96,128], index: 1, kind: input, shape index: {}]   ;;  %s208_s0 = inlined_call_operand.vmem [shape: f32[8,96], index: 0, kind: input, shape index: {}]   ;;  %s209_s2 = inlined_call_operand.vmem [shape: f32[1,128], index: 2, kind: input, shape index: {}]   ;;  %s210_s3 = inlined_call_operand.vmem [shape: f32[1,128], index: 3, kind: input, shape index: {}]   ;;  %s211_s4 = inlined_call_operand.vmem [shape: f32[8,128], index: 4, kind: output, shape index: {}]  }
   0x1   :  { %114 = vmatprep.subr.bf16.mxu0 %v132_v0  ;;  %v20_v1 = vld [vmem:[%s207_s1] sm:$0xff]  ;;  %v21_v2 = vld [vmem:[%s207_s1 + $0x8] sm:$0xff]  ;;  %v22_v3 = vld [vmem:[%s207_s1 + $0x10] sm:$0xff]  ;;  %126 = vmatprep.mubr.msk.bf16.mxu0 %vm133_vm0, %v132_v0 }
   0x2   :  { %v32_v4 = vpack.c.bf16 %v21_v2, %v20_v1  ;;  %v23_v5 = vld [vmem:[%s207_s1 + $0x18] sm:$0xff]  ;;  %v24_v7 = vld [vmem:[%s207_s1 + $0x20] sm:$0xff]  ;;  %v25_v8 = vld [vmem:[%s207_s1 + $0x28] sm:$0xff] }
   0x3   :  { %v33_v6 = vpack.c.bf16 %v23_v5, %v22_v3  ;;  %v34_v9 = vpack.c.bf16 %v25_v8, %v24_v7  ;;  %v26_v10 = vld [vmem:[%s207_s1 + $0x30] sm:$0xff]  ;;  %v27_v11 = vld [vmem:[%s207_s1 + $0x38] sm:$0xff]  ;;  %v28_v13 = vld [vmem:[%s207_s1 + $0x40] sm:$0xff] }
   0x4   :  { %115 = vmatpush3.bf16.msra.mxu0 %v32_v4  ;;  %v35_v12 = vpack.c.bf16 %v27_v11, %v26_v10  ;;  %v29_v14 = vld [vmem:[%s207_s1 + $0x48] sm:$0xff]  ;;  %v30_v16 = vld [vmem:[%s207_s1 + $0x50] sm:$0xff]  ;;  %v31_v17 = vld [vmem:[%s207_s1 + $0x58] sm:$0xff] }
   0x5   :  { %116 = vmatprep.subr.bf16.mxu0 %v132_v0  ;;  %v36_v15 = vpack.c.bf16 %v29_v14, %v28_v13  ;;  %v37_v18 = vpack.c.bf16 %v31_v17, %v30_v16  ;;  %v18_v19 = vld [vmem:[%s208_s0] sm:$0xff] }
   0x6   :  { %v19_v20 = vpack.c.bf16 %v18_v19, %v18_v19  ;;  %v104_v21 = vld [vmem:[%s209_s2] ss:$0 sm:$0xff] }
   0x7   :  { %v106_v23 = vld [vmem:[%s210_s3] ss:$0 sm:$0xff] }
   0x8   :  { %117 = vmatpush3.bf16.msra.mxu0 %v33_v6 }
   0x9   :  { %118 = vmatprep.subr.bf16.mxu0 %v132_v0 }
   0xc   :  { %119 = vmatpush3.bf16.msra.mxu0 %v34_v9 }
   0xd   :  { %120 = vmatprep.subr.bf16.mxu0 %v132_v0 }
  0x10   :  { %121 = vmatpush3.bf16.msra.mxu0 %v35_v12 }
  0x11   :  { %122 = vmatprep.subr.bf16.mxu0 %v132_v0 }
  0x14   :  { %123 = vmatpush3.bf16.msra.mxu0 %v36_v15 }
  0x15   :  { %124 = vmatprep.subr.bf16.mxu0 %v132_v0 }
  0x18   :  { %125 = vmatpush3.bf16.msra.mxu0 %v37_v18 }
  0x1b   :  { %127 = vmatmul.mubr.msk.bf16.vlgmr.msra.gmra.mrb[0].mxu0 %vm45_vm1, %v19_v20 }
  0xee   :  { %v83_v22 = vpop.f32.mrb[0].mxu0 }
  0xef   :  { %v84_v24 = vadd.f32 %v104_v21, %v83_v22  ;;  %v128_v25 = vpop.f32.mrb[1].mxu0 }
  0xf0   :  { %v86_v26 = vpop.f32.mrb[2].mxu0 }
  0xf1   :  { %vm90_vm2 = vcmp.ge.f32.partialorder %v84_v24, 0.0  ;;  %v97_v27 = vmul.f32 %v106_v23, %v84_v24  ;;  %v129_v28 = vpop.f32.mrb[3].mxu0 }
  0xf3   :  { %v98_v29 = vsel %vm90_vm2, %v84_v24, %v97_v27 }
  0xf4   :  { %99 = vst [vmem:[%s211_s4] sm:$0xff] %v98_v29 }

// kernel: lessr_forward.23
= control target key start
LH: loop header
LB: loop body
LE: loop exit
PB: predicated region body
PF: predicated region fallthrough
CT: control target
= control target key end

     0   :  { %vm44_vm0 = vcmask 261120   ;;  %v479_v48 = vmov 0.0   ;;  %vm480_vm1 = vmmov 0   ;;  %s816_s1 = inlined_call_operand.vmem [shape: f32[128,32], index: 1, kind: input, shape index: {}]   ;;  %s817_s0 = inlined_call_operand.vmem [shape: f32[8,32], index: 0, kind: input, shape index: {}]   ;;  %s818_s2 = inlined_call_operand.vmem [shape: f32[8,128], index: 2, kind: output, shape index: {}]  }
   0x1   :  { %v499_v0 = vld [vmem:[%s816_s1 + $0x10] sm:$0xff]  ;;  %v504_v1 = vld [vmem:[%s816_s1] sm:$0xff]  ;;  %v509_v2 = vld [vmem:[%s816_s1 + $0x18] sm:$0xff]  ;;  %393 = vmatprep.subr.bf16.mxu0 %v479_v48  ;;  %409 = vmatprep.mubr.msk.bf16.mxu0 %vm480_vm1, %v479_v48 }
   0x2   :  { %v30_v3 = vmul.f32 %v499_v0, %v499_v0  ;;  %v28_v4 = vmul.f32 %v504_v1, %v504_v1  ;;  %v31_v5 = vmul.f32 %v509_v2, %v509_v2  ;;  %v520_v6 = vld [vmem:[%s816_s1 + $0x8] sm:$0xff]  ;;  %v532_v9 = vld [vmem:[%s816_s1 + $0x20] sm:$0xff]  ;;  %v545_v16 = vld [vmem:[%s816_s1 + $0x38] sm:$0xff] }
   0x3   :  { %v29_v7 = vmul.f32 %v520_v6, %v520_v6  ;;  %v527_v8 = vld [vmem:[%s816_s1 + $0x28] sm:$0xff]  ;;  %v32_v15 = vmul.f32 %v532_v9, %v532_v9  ;;  %v550_v17 = vld [vmem:[%s816_s1 + $0x30] sm:$0xff]  ;;  %v35_v20 = vmul.f32 %v545_v16, %v545_v16  ;;  %v566_v23 = vld [vmem:[%s816_s1 + $0x40] sm:$0xff] }
   0x4   :  { %v51_v10 = vsel %vm44_vm0, %v30_v3, 0.0  ;;  %v45_v11 = vsel %vm44_vm0, %v28_v4, 0.0  ;;  %v54_v12 = vsel %vm44_vm0, %v31_v5, 0.0  ;;  %v33_v14 = vmul.f32 %v527_v8, %v527_v8  ;;  %v561_v22 = vld [vmem:[%s816_s1 + $0x48] sm:$0xff]  ;;  %v577_v28 = vld [vmem:[%s816_s1 + $0x58] sm:$0xff]  ;;  %v582_v29 = vld [vmem:[%s816_s1 + $0x50] sm:$0xff] }
   0x5   :  { %52 = vadd.xlane.f32.xlu1 %v51_v10  ;;  %46 = vadd.xlane.f32.xlu0 %v45_v11  ;;  %v48_v13 = vsel %vm44_vm0, %v29_v7, 0.0  ;;  %v57_v19 = vsel %vm44_vm0, %v32_v15, 0.0  ;;  %v34_v21 = vmul.f32 %v550_v17, %v550_v17  ;;  %v66_v24 = vsel %vm44_vm0, %v35_v20, 0.0  ;;  %v593_v34 = vld [vmem:[%s816_s1 + $0x68] sm:$0xff]  ;;  %v598_v35 = vld [vmem:[%s816_s1 + $0x60] sm:$0xff]  ;;  %v609_v40 = vld [vmem:[%s816_s1 + $0x78] sm:$0xff] }
   0x6   :  { %v60_v18 = vsel %vm44_vm0, %v33_v14, 0.0  ;;  %v37_v26 = vmul.f32 %v561_v22, %v561_v22  ;;  %v36_v27 = vmul.f32 %v566_v23, %v566_v23  ;;  %v39_v32 = vmul.f32 %v577_v28, %v577_v28  ;;  %v614_v41 = vld [vmem:[%s816_s1 + $0x70] sm:$0xff] }
   0x7   :  { %v63_v25 = vsel %vm44_vm0, %v34_v21, 0.0  ;;  %v38_v33 = vmul.f32 %v582_v29, %v582_v29  ;;  %v41_v38 = vmul.f32 %v593_v34, %v593_v34  ;;  %v40_v39 = vmul.f32 %v598_v35, %v598_v35 }
   0x8   :  { %v72_v30 = vsel %vm44_vm0, %v37_v26, 0.0  ;;  %v69_v31 = vsel %vm44_vm0, %v36_v27, 0.0  ;;  %v78_v36 = vsel %vm44_vm0, %v39_v32, 0.0  ;;  %v43_v44 = vmul.f32 %v609_v40, %v609_v40 }
   0x9   :  { %55 = vadd.xlane.f32.xlu1 %v54_v12  ;;  %49 = vadd.xlane.f32.xlu0 %v48_v13  ;;  %v75_v37 = vsel %vm44_vm0, %v38_v33, 0.0  ;;  %v84_v42 = vsel %vm44_vm0, %v41_v38, 0.0  ;;  %v81_v43 = vsel %vm44_vm0, %v40_v39, 0.0  ;;  %v42_v45 = vmul.f32 %v614_v41, %v614_v41 }
   0xa   :  { %v90_v46 = vsel %vm44_vm0, %v43_v44, 0.0 }
   0xb   :  { %v87_v47 = vsel %vm44_vm0, %v42_v45, 0.0 }
   0xd   :  { %61 = vadd.xlane.f32.xlu1 %v60_v18  ;;  %58 = vadd.xlane.f32.xlu0 %v57_v19 }
  0x11   :  { %67 = vadd.xlane.f32.xlu1 %v66_v24  ;;  %64 = vadd.xlane.f32.xlu0 %v63_v25 }
  0x15   :  { %73 = vadd.xlane.f32.xlu1 %v72_v30  ;;  %70 = vadd.xlane.f32.xlu0 %v69_v31 }
  0x19   :  { %79 = vadd.xlane.f32.xlu1 %v78_v36  ;;  %76 = vadd.xlane.f32.xlu0 %v75_v37 }
  0x1d   :  { %85 = vadd.xlane.f32.xlu1 %v84_v42  ;;  %82 = vadd.xlane.f32.xlu0 %v81_v43 }
  0x21   :  { %91 = vadd.xlane.f32.xlu1 %v90_v46  ;;  %88 = vadd.xlane.f32.xlu0 %v87_v47 }
  0x92   :  { %v53_v49 = vpop.xlane.xlu1 %52  ;;  %v47_v50 = vpop.xlane.xlu0 %46 }
  0x93   :  { %415 = vrsqrt.f32 %v53_v49  ;;  %vm95_vm2 = vcmp.eq.f32.partialorder %v47_v50, inf  ;;  %v98_v61 = vand.u32 2147483648, %v47_v50  ;;  %vm109_vm3 = vcmp.eq.f32.partialorder %v53_v49, inf }
  0x94   :  { %417 = vrsqrt.f32 %v47_v50  ;;  %vm97_vm4 = vcmp.eq.f32.partialorder %v47_v50, 0.0  ;;  %v112_v10 = vand.u32 2147483648, %v53_v49  ;;  %vm111_vm6 = vcmp.eq.f32.partialorder %v53_v49, 0.0 }
  0x96   :  { %v56_v51 = vpop.xlane.xlu1 %55  ;;  %v50_v52 = vpop.xlane.xlu0 %49 }
  0x97   :  { %419 = vrsqrt.f32 %v56_v51  ;;  %vm116_vm5 = vcmp.eq.f32.partialorder %v56_v51, inf  ;;  %v119_v12 = vand.u32 2147483648, %v56_v51  ;;  %vm102_vm7 = vcmp.eq.f32.partialorder %v50_v52, inf }
  0x98   :  { %421 = vrsqrt.f32 %v50_v52  ;;  %v105_v13 = vand.u32 2147483648, %v50_v52  ;;  %vm104_vm8 = vcmp.eq.f32.partialorder %v50_v52, 0.0  ;;  %vm118_vm9 = vcmp.eq.f32.partialorder %v56_v51, 0.0 }
  0x9a   :  { %v626_v53 = vpop.xlane.xlu1 %61  ;;  %v628_v54 = vpop.xlane.xlu0 %58 }
  0x9b   :  { %423 = vrsqrt.f32 %v626_v53  ;;  %vm123_vm10 = vcmp.eq.f32.partialorder %v628_v54, inf  ;;  %vm130_vm11 = vcmp.eq.f32.partialorder %v626_v53, inf  ;;  %v133_v33 = vand.u32 2147483648, %v626_v53 }
  0x9c   :  { %425 = vrsqrt.f32 %v628_v54  ;;  %v126_v36 = vand.u32 2147483648, %v628_v54  ;;  %vm125_vm12 = vcmp.eq.f32.partialorder %v628_v54, 0.0  ;;  %vm132_vm13 = vcmp.eq.f32.partialorder %v626_v53, 0.0 }
  0x9d   :  { %v416_v55 = vpop.eup %415 }
  0x9e   :  { %v418_v56 = vpop.eup %417  ;;  %v108_v57 = vmul.f32 %v416_v55, %v53_v49  ;;  %v632_v58 = vpop.xlane.xlu0 %64 }
  0x9f   :  { %v94_v59 = vmul.f32 %v418_v56, %v47_v50  ;;  %v634_v60 = vpop.xlane.xlu1 %67  ;;  %427 = vrsqrt.f32 %v632_v58  ;;  %vm137_vm14 = vcmp.eq.f32.partialorder %v632_v58, inf  ;;  %vm139_vm1 = vcmp.eq.f32.partialorder %v632_v58, 0.0 }
  0xa0   :  { %429 = vrsqrt.f32 %v634_v60  ;;  %v110_v7 = vsel %vm109_vm3, %v53_v49, %v108_v57  ;;  %vm144_vm15 = vcmp.eq.f32.partialorder %v634_v60, inf  ;;  %v147_v56 = vand.u32 2147483648, %v634_v60 }
  0xa1   :  { %v420_v62 = vpop.eup %419  ;;  %v96_v63 = vsel %vm95_vm2, %v47_v50, %v94_v59  ;;  %v643_v20 = vsel %vm111_vm6, %v112_v10, %v110_v7  ;;  %vm146_vm2 = vcmp.eq.f32.partialorder %v634_v60, 0.0 }
  0xa2   :  { %v422_v3 = vpop.eup %421  ;;  %v115_v4 = vmul.f32 %v420_v62, %v56_v51  ;;  %v638_v5 = vsel %vm97_vm4, %v98_v61, %v96_v63  ;;  %v640_v15 = vpop.xlane.xlu0 %70  ;;  %v223_v32 = vadd.f32 1e-07, %v643_v20 }
  0xa3   :  { %v101_v11 = vmul.f32 %v422_v3, %v50_v52  ;;  %v221_v19 = vadd.f32 1e-07, %v638_v5  ;;  %v650_v30 = vpop.xlane.xlu1 %73  ;;  %431 = vrsqrt.f32 %v640_v15  ;;  %vm205_vm3 = vcmp.gt.f32.partialorder %v638_v5, 1.0 }
  0xa4   :  { %v117_v21 = vsel %vm116_vm5, %v56_v51, %v115_v4  ;;  %vm158_vm4 = vcmp.eq.f32.partialorder %v650_v30, inf  ;;  %vm151_vm5 = vcmp.eq.f32.partialorder %v640_v15, inf }
  0xa5   :  { %v424_v14 = vpop.eup %423  ;;  %v103_v18 = vsel %vm102_vm7, %v50_v52, %v101_v11  ;;  %v652_v31 = vsel %vm118_vm9, %v119_v12, %v117_v21  ;;  %433 = vrcp.f32 %v221_v19  ;;  %vm207_vm9 = vcmp.gt.f32.partialorder %v643_v20, 1.0 }
  0xa6   :  { %v426_v24 = vpop.eup %425  ;;  %v645_v25 = vsel %vm104_vm8, %v105_v13, %v103_v18  ;;  %v129_v26 = vmul.f32 %v424_v14, %v626_v53  ;;  %435 = vrsqrt.f32 %v650_v30  ;;  %v224_v38 = vadd.f32 1e-07, %v652_v31  ;;  %v666_v45 = vpop.xlane.xlu0 %76 }
  0xa7   :  { %v122_v27 = vmul.f32 %v426_v24, %v628_v54  ;;  %v222_v37 = vadd.f32 1e-07, %v645_v25  ;;  %437 = vrcp.f32 %v223_v32  ;;  %v675_v51 = vpop.xlane.xlu1 %79  ;;  %vm206_vm6 = vcmp.gt.f32.partialorder %v645_v25, 1.0 }
  0xa8   :  { %v131_v43 = vsel %vm130_vm11, %v626_v53, %v129_v26  ;;  %v140_v53 = vand.u32 2147483648, %v632_v58  ;;  %v161_v13 = vand.u32 2147483648, %v650_v30  ;;  %v154_v14 = vand.u32 2147483648, %v640_v15 }
  0xa9   :  { %v124_v39 = vsel %vm123_vm10, %v628_v54, %v122_v27  ;;  %v428_v42 = vpop.eup %427  ;;  %439 = vrcp.f32 %v222_v37  ;;  %v671_v49 = vsel %vm132_vm13, %v133_v33, %v131_v43  ;;  %vm208_vm7 = vcmp.gt.f32.partialorder %v652_v31, 1.0 }
  0xaa   :  { %v430_v44 = vpop.eup %429  ;;  %v668_v46 = vsel %vm125_vm12, %v126_v36, %v124_v39  ;;  %v136_v47 = vmul.f32 %v428_v42, %v632_v58  ;;  %441 = vrcp.f32 %v224_v38  ;;  %v226_v54 = vadd.f32 1e-07, %v671_v49  ;;  %v688_v63 = vpop.xlane.xlu0 %82 }
  0xab   :  { %v143_v50 = vmul.f32 %v430_v44, %v634_v60  ;;  %443 = vrsqrt.f32 %v666_v45  ;;  %v225_v52 = vadd.f32 1e-07, %v668_v46  ;;  %v699_v12 = vpop.xlane.xlu1 %85  ;;  %vm153_vm8 = vcmp.eq.f32.partialorder %v640_v15, 0.0 }
  0xac   :  { %445 = vrsqrt.f32 %v675_v51  ;;  %v138_v57 = vsel %vm137_vm14, %v632_v58, %v136_v47  ;;  %vm160_vm10 = vcmp.eq.f32.partialorder %v650_v30, 0.0  ;;  %vm165_vm11 = vcmp.eq.f32.partialorder %v666_v45, inf }
  0xad   :  { %v432_v55 = vpop.eup %431  ;;  %v145_v61 = vsel %vm144_vm15, %v634_v60, %v143_v50  ;;  %447 = vrcp.f32 %v225_v52  ;;  %v691_v3 = vsel %vm139_vm1, %v140_v53, %v138_v57  ;;  %vm172_vm12 = vcmp.eq.f32.partialorder %v675_v51, inf }
  0xae   :  { %449 = vrcp.f32 %v226_v54  ;;  %v150_v7 = vmul.f32 %v432_v55, %v640_v15  ;;  %v695_v10 = vsel %vm146_vm2, %v147_v56, %v145_v61  ;;  %v227_v19 = vadd.f32 1e-07, %v691_v3  ;;  %v721_v36 = vpop.xlane.xlu0 %88 }
  0xaf   :  { %v434_v59 = vpop.eup %433  ;;  %451 = vrsqrt.f32 %v688_v63  ;;  %v228_v27 = vadd.f32 1e-07, %v695_v10  ;;  %v732_v44 = vpop.xlane.xlu1 %91  ;;  %v168_v47 = vand.u32 2147483648, %v666_v45  ;;  %vm209_vm13 = vcmp.gt.f32.partialorder %v668_v46, 1.0 }
  0xb0   :  { %v436_v62 = vpop.eup %435  ;;  %v269_v58 = vsel %vm205_vm3, %v434_v59, 1.0  ;;  %453 = vrsqrt.f32 %v699_v12  ;;  %v152_v32 = vsel %vm151_vm5, %v640_v15, %v150_v7  ;;  %vm210_vm14 = vcmp.gt.f32.partialorder %v671_v49, 1.0 }
  0xb1   :  { %v438_v4 = vpop.eup %437  ;;  %v157_v60 = vmul.f32 %v436_v62, %v650_v30  ;;  %v285_v24 = vmul.f32 %v269_v58, %v504_v1  ;;  %455 = vrcp.f32 %v227_v19  ;;  %v725_v39 = vsel %vm153_vm8, %v154_v14, %v152_v32 }
  0xb2   :  { %v271_v37 = vsel %vm207_vm9, %v438_v4, 1.0  ;;  %457 = vrcp.f32 %v228_v27  ;;  %v229_v50 = vadd.f32 1e-07, %v725_v39  ;;  %vm167_vm15 = vcmp.eq.f32.partialorder %v666_v45, 0.0 }
  0xb3   :  { %v440_v11 = vpop.eup %439  ;;  %v159_v1 = vsel %vm158_vm4, %v650_v30, %v157_v60  ;;  %459 = vrsqrt.f32 %v721_v36  ;;  %vm174_vm1 = vcmp.eq.f32.partialorder %v675_v51, 0.0  ;;  %vm179_vm2 = vcmp.eq.f32.partialorder %v688_v63, inf }
  0xb4   :  { %v442_v5 = vpop.eup %441  ;;  %v270_v18 = vsel %vm206_vm6, %v440_v11, 1.0  ;;  %v728_v42 = vsel %vm160_vm10, %v161_v13, %v159_v1  ;;  %461 = vrsqrt.f32 %v732_v44  ;;  %vm186_vm3 = vcmp.eq.f32.partialorder %v699_v12, inf }
  0xb5   :  { %v444_v21 = vpop.eup %443  ;;  %v286_v26 = vmul.f32 %v270_v18, %v520_v6  ;;  %v272_v25 = vsel %vm208_vm7, %v442_v5, 1.0  ;;  %v230_v54 = vadd.f32 1e-07, %v728_v42  ;;  %463 = vrcp.f32 %v229_v50 }
  0xb6   :  { %v446_v6 = vpop.eup %445  ;;  %v164_v31 = vmul.f32 %v444_v21, %v666_v45  ;;  %v288_v15 = vmul.f32 %v272_v25, %v509_v2  ;;  %v287_v2 = vmul.f32 %v271_v37, %v499_v0  ;;  %v175_v0 = vand.u32 2147483648, %v675_v51 }
  0xb7   :  { %v301_v33 = vpack.c.bf16 %v286_v26, %v285_v24  ;;  %v448_v20 = vpop.eup %447  ;;  %v171_v43 = vmul.f32 %v446_v6, %v675_v51  ;;  %465 = vrcp.f32 %v230_v54  ;;  %v182_v60 = vand.u32 2147483648, %v688_v63 }
  0xb8   :  { %v450_v30 = vpop.eup %449  ;;  %v302_v53 = vpack.c.bf16 %v288_v15, %v287_v2  ;;  %v166_v55 = vsel %vm165_vm11, %v666_v45, %v164_v31  ;;  %v273_v56 = vsel %vm209_vm13, %v448_v20, 1.0  ;;  %vm211_vm4 = vcmp.gt.f32.partialorder %v691_v3, 1.0 }
  0xb9   :  { %v315_v38 = vsel %vm44_vm0, %v301_v33, 0  ;;  %v452_v52 = vpop.eup %451  ;;  %v274_v46 = vsel %vm210_vm14, %v450_v30, 1.0  ;;  %v173_v49 = vsel %vm172_vm12, %v675_v51, %v171_v43  ;;  %v753_v61 = vsel %vm167_vm15, %v168_v47, %v166_v55 }
  0xba   :  { %394 = vmatpush3.bf16.xpose.msra.mxu0 %v315_v38  ;;  %v454_v57 = vpop.eup %453  ;;  %v178_v59 = vmul.f32 %v452_v52, %v688_v63  ;;  %v318_v45 = vsel %vm44_vm0, %v302_v53, 0  ;;  %v289_v62 = vmul.f32 %v273_v56, %v532_v9  ;;  %v290_v4 = vmul.f32 %v274_v46, %v527_v8 }
  0xbb   :  { %395 = vmatprep.subr.bf16.mxu0 %v479_v48  ;;  %v456_v7 = vpop.eup %455  ;;  %v759_v58 = vsel %vm174_vm1, %v175_v0, %v173_v49  ;;  %v185_v11 = vmul.f32 %v454_v57, %v699_v12  ;;  %vm212_vm5 = vcmp.gt.f32.partialorder %v695_v10, 1.0  ;;  %v231_v8 = vadd.f32 1e-07, %v753_v61 }
  0xbc   :  { %v458_v51 = vpop.eup %457  ;;  %v303_v5 = vpack.c.bf16 %v290_v4, %v289_v62  ;;  %v232_v13 = vadd.f32 1e-07, %v759_v58  ;;  %v180_v14 = vsel %vm179_vm2, %v688_v63, %v178_v59  ;;  %vm181_vm6 = vcmp.eq.f32.partialorder %v688_v63, 0.0 }
  0xbd   :  { %v460_v9 = vpop.eup %459  ;;  %v189_v18 = vand.u32 2147483648, %v699_v12  ;;  %v275_v19 = vsel %vm211_vm4, %v456_v7, 1.0  ;;  %v276_v21 = vsel %vm212_vm5, %v458_v51, 1.0  ;;  %v187_v24 = vsel %vm186_vm3, %v699_v12, %v185_v11 }
  0xbe   :  { %vm188_vm7 = vcmp.eq.f32.partialorder %v699_v12, 0.0  ;;  %v462_v3 = vpop.eup %461  ;;  %v192_v10 = vmul.f32 %v460_v9, %v721_v36  ;;  %467 = vrcp.f32 %v231_v8  ;;  %v183_v26 = vsel %vm181_vm6, %v182_v60, %v180_v14  ;;  %v309_v8 = vld [vmem:[%s817_s0] sm:$0xff] }
  0xbf   :  { %v321_v27 = vsel %vm44_vm0, %v303_v5, 0  ;;  %v291_v25 = vmul.f32 %v275_v19, %v550_v17  ;;  %v292_v32 = vmul.f32 %v276_v21, %v545_v16  ;;  %469 = vrcp.f32 %v232_v13  ;;  %v464_v63 = vpop.eup %463 }
  0xc0   :  { %vm193_vm8 = vcmp.eq.f32.partialorder %v721_v36, inf  ;;  %v190_v33 = vsel %vm188_vm7, %v189_v18, %v187_v24  ;;  %v199_v12 = vmul.f32 %v462_v3, %v732_v44  ;;  %vm200_vm9 = vcmp.eq.f32.partialorder %v732_v44, inf }
  0xc1   :  { %v466_v1 = vpop.eup %465  ;;  %vm195_vm10 = vcmp.eq.f32.partialorder %v721_v36, 0.0  ;;  %v196_v6 = vand.u32 2147483648, %v721_v36  ;;  %vm213_vm11 = vcmp.gt.f32.partialorder %v725_v39, 1.0  ;;  %v233_v16 = vadd.f32 1e-07, %v183_v26 }
  0xc2   :  { %396 = vmatpush3.bf16.xpose.msra.mxu0 %v318_v45  ;;  %v194_v17 = vsel %vm193_vm8, %v721_v36, %v192_v10  ;;  %v304_v31 = vpack.c.bf16 %v292_v32, %v291_v25  ;;  %vm214_vm12 = vcmp.gt.f32.partialorder %v728_v42, 1.0  ;;  %v234_v37 = vadd.f32 1e-07, %v190_v33 }
  0xc3   :  { %397 = vmatprep.subr.bf16.mxu0 %v479_v48  ;;  %v203_v38 = vand.u32 2147483648, %v732_v44  ;;  %v277_v15 = vsel %vm213_vm11, %v464_v63, 1.0  ;;  %v278_v20 = vsel %vm214_vm12, %v466_v1, 1.0  ;;  %v201_v30 = vsel %vm200_vm9, %v732_v44, %v199_v12 }
  0xc4   :  { %vm202_vm13 = vcmp.eq.f32.partialorder %v732_v44, 0.0  ;;  %471 = vrcp.f32 %v233_v16  ;;  %v197_v43 = vsel %vm195_vm10, %v196_v6, %v194_v17  ;;  %v324_v2 = vsel %vm44_vm0, %v304_v31, 0 }
  0xc5   :  { %v293_v39 = vmul.f32 %v277_v15, %v566_v23  ;;  %v294_v36 = vmul.f32 %v278_v20, %v561_v22  ;;  %473 = vrcp.f32 %v234_v37  ;;  %v204_v42 = vsel %vm202_vm13, %v203_v38, %v201_v30 }
  0xc6   :  { %vm215_vm14 = vcmp.gt.f32.partialorder %v753_v61, 1.0  ;;  %vm216_vm15 = vcmp.gt.f32.partialorder %v759_v58, 1.0  ;;  %v235_v44 = vadd.f32 1e-07, %v197_v43  ;;  %v236_v53 = vadd.f32 1e-07, %v204_v42 }
  0xc7   :  { %v305_v52 = vpack.c.bf16 %v294_v36, %v293_v39  ;;  %vm217_vm1 = vcmp.gt.f32.partialorder %v183_v26, 1.0  ;;  %vm218_vm2 = vcmp.gt.f32.partialorder %v190_v33, 1.0  ;;  %vm219_vm3 = vcmp.gt.f32.partialorder %v197_v43, 1.0 }
  0xc8   :  { %v468_v47 = vpop.eup %467  ;;  %475 = vrcp.f32 %v235_v44  ;;  %vm220_vm4 = vcmp.gt.f32.partialorder %v204_v42, 1.0  ;;  %v310_v9 = vpack.c.bf16 %v309_v8, %v309_v8 }
  0xc9   :  { %v470_v50 = vpop.eup %469  ;;  %v279_v54 = vsel %vm215_vm14, %v468_v47, 1.0  ;;  %v327_v23 = vsel %vm44_vm0, %v305_v52, 0  ;;  %477 = vrcp.f32 %v236_v53 }
  0xca   :  { %398 = vmatpush3.bf16.xpose.msra.mxu0 %v321_v27  ;;  %v280_v55 = vsel %vm216_vm15, %v470_v50, 1.0  ;;  %v295_v22 = vmul.f32 %v279_v54, %v582_v29 }
  0xcb   :  { %399 = vmatprep.subr.bf16.mxu0 %v479_v48  ;;  %v296_v0 = vmul.f32 %v280_v55, %v577_v28 }
  0xcd   :  { %v306_v49 = vpack.c.bf16 %v296_v0, %v295_v22 }
  0xce   :  { %v472_v56 = vpop.eup %471 }
  0xcf   :  { %v474_v46 = vpop.eup %473  ;;  %v281_v57 = vsel %vm217_vm1, %v472_v56, 1.0  ;;  %v330_v61 = vsel %vm44_vm0, %v306_v49, 0 }
  0xd0   :  { %v282_v59 = vsel %vm218_vm2, %v474_v46, 1.0  ;;  %v297_v45 = vmul.f32 %v281_v57, %v598_v35 }
  0xd1   :  { %v298_v62 = vmul.f32 %v282_v59, %v593_v34 }
  0xd2   :  { %400 = vmatpush3.bf16.xpose.msra.mxu0 %v324_v2  ;;  %v476_v29 = vpop.eup %475 }
  0xd3   :  { %401 = vmatprep.subr.bf16.mxu0 %v479_v48  ;;  %v478_v28 = vpop.eup %477  ;;  %v307_v4 = vpack.c.bf16 %v298_v62, %v297_v45  ;;  %v283_v7 = vsel %vm219_vm3, %v476_v29, 1.0 }
  0xd4   :  { %v284_v58 = vsel %vm220_vm4, %v478_v28, 1.0  ;;  %v299_v11 = vmul.f32 %v283_v7, %v614_v41 }
  0xd5   :  { %v333_v51 = vsel %vm44_vm0, %v307_v4, 0  ;;  %v300_v60 = vmul.f32 %v284_v58, %v609_v40 }
  0xd7   :  { %v308_v34 = vpack.c.bf16 %v300_v60, %v299_v11 }
  0xd9   :  { %v336_v35 = vsel %vm44_vm0, %v308_v34, 0 }
  0xda   :  { %402 = vmatpush3.bf16.xpose.msra.mxu0 %v327_v23 }
  0xdb   :  { %403 = vmatprep.subr.bf16.mxu0 %v479_v48 }
  0xe2   :  { %404 = vmatpush3.bf16.xpose.msra.mxu0 %v330_v61 }
  0xe3   :  { %405 = vmatprep.subr.bf16.mxu0 %v479_v48 }
  0xea   :  { %406 = vmatpush3.bf16.xpose.msra.mxu0 %v333_v51 }
  0xeb   :  { %407 = vmatprep.subr.bf16.mxu0 %v479_v48 }
  0xf2   :  { %408 = vmatpush3.bf16.xpose.msra.mxu0 %v336_v35 }
  0xf9   :  { %410 = vmatmul.mubr.msk.bf16.vlgmr.msra.gmra.mrb[0].mxu0 %vm44_vm0, %v310_v9 }
 0x1cc   :  { %v372_v5 = vpop.f32.mrb[0].mxu0 }
 0x1cd   :  { %378 = vst [vmem:[%s818_s2] sm:$0xff] %v372_v5  ;;  %v411_v40 = vpop.f32.mrb[1].mxu0 }
 0x1ce   :  { %v375_v41 = vpop.f32.mrb[2].mxu0 }
 0x1cf   :  { %v412_v13 = vpop.f32.mrb[3].mxu0 }

// kernel: lessr_forward.20
= control target key start
LH: loop header
LB: loop body
LE: loop exit
PB: predicated region body
PF: predicated region fallthrough
CT: control target
= control target key end

     0   :  { %v516_v0 = vmov 0.0   ;;  %vm517_vm0 = vmmov 0   ;;  %vm153_vm1 = vcmask 261120   ;;  %vm25_vm2 = vcmask 7168   ;;  %s708_s1 = inlined_call_operand.vmem [shape: f32[128,32], index: 1, kind: input, shape index: {}]   ;;  %s709_s2 = inlined_call_operand.vmem [shape: f32[1,32], index: 2, kind: input, shape index: {}]   ;;  %s710_s0 = inlined_call_operand.vmem [shape: s32[1,128], index: 0, kind: input, shape index: {}]   ;;  %s711_s3 = inlined_call_operand.vmem [shape: f32[128,96], index: 3, kind: input, shape index: {}]   ;;  %s712_s4 = inlined_call_operand.vmem [shape: f32[1,96], index: 4, kind: input, shape index: {}]   ;;  %s713_s5 = inlined_call_operand.vmem [shape: f32[8,96], index: 5, kind: output, shape index: {}]  }
   0x1   :  { %400 = vmatprep.subr.bf16.mxu0 %v516_v0  ;;  %v31_v1 = vld [vmem:[%s708_s1] sm:$0xff]  ;;  %v32_v2 = vld [vmem:[%s708_s1 + $0x8] sm:$0xff]  ;;  %v33_v3 = vld [vmem:[%s708_s1 + $0x10] sm:$0xff]  ;;  %416 = vmatprep.mubr.msk.bf16.mxu0 %vm517_vm0, %v516_v0  ;;  %27 = vst.msk [vmem:[#allocation3] sm:$0xff] %vm25_vm2, %v516_v0  ;;  %vm28_vm4 = vcmask 785408  }
   0x2   :  { %v362_v4 = vmul.f32 -1.442695, %v31_v1  ;;  %v363_v5 = vmul.f32 -1.442695, %v32_v2  ;;  %v34_v6 = vld [vmem:[%s708_s1 + $0x18] sm:$0xff]  ;;  %420 = vmatprep.subr.bf16.mxu1 %v516_v0  ;;  %436 = vmatprep.mubr.msk.bf16.mxu1 %vm517_vm0, %v516_v0  ;;  %v35_v9 = vld [vmem:[%s708_s1 + $0x20] sm:$0xff] }
   0x3   :  { %v364_v7 = vmul.f32 -1.442695, %v33_v3  ;;  %v365_v8 = vmul.f32 -1.442695, %v34_v6  ;;  %v36_v10 = vld [vmem:[%s708_s1 + $0x28] sm:$0xff]  ;;  %v37_v13 = vld [vmem:[%s708_s1 + $0x30] sm:$0xff] }
   0x4   :  { %446 = vpow2.f32 %v362_v4  ;;  %v366_v11 = vmul.f32 -1.442695, %v35_v9  ;;  %v367_v12 = vmul.f32 -1.442695, %v36_v10  ;;  %v38_v14 = vld [vmem:[%s708_s1 + $0x38] sm:$0xff]  ;;  %v39_v25 = vld [vmem:[%s708_s1 + $0x40] sm:$0xff] }
   0x5   :  { %448 = vpow2.f32 %v363_v5  ;;  %v368_v15 = vmul.f32 -1.442695, %v37_v13  ;;  %v369_v16 = vmul.f32 -1.442695, %v38_v14  ;;  %v40_v26 = vld [vmem:[%s708_s1 + $0x48] sm:$0xff]  ;;  %v41_v34 = vld [vmem:[%s708_s1 + $0x50] sm:$0xff] }
   0x6   :  { %450 = vpow2.f32 %v364_v7  ;;  %v370_v29 = vmul.f32 -1.442695, %v39_v25  ;;  %v371_v30 = vmul.f32 -1.442695, %v40_v26  ;;  %v42_v37 = vld [vmem:[%s708_s1 + $0x58] sm:$0xff]  ;;  %v43_v48 = vld [vmem:[%s708_s1 + $0x60] sm:$0xff] }
   0x7   :  { %452 = vpow2.f32 %v365_v8  ;;  %v372_v39 = vmul.f32 -1.442695, %v41_v34  ;;  %v373_v43 = vmul.f32 -1.442695, %v42_v37  ;;  %v44_v51 = vld [vmem:[%s708_s1 + $0x68] sm:$0xff]  ;;  %v45_v61 = vld [vmem:[%s708_s1 + $0x70] sm:$0xff]  ;;  %v221_v37 = vlaneseq }
   0x8   :  { %454 = vpow2.f32 %v366_v11  ;;  %v374_v54 = vmul.f32 -1.442695, %v43_v48  ;;  %v375_v57 = vmul.f32 -1.442695, %v44_v51  ;;  %v46_v63 = vld [vmem:[%s708_s1 + $0x78] sm:$0xff]  ;;  %v266_v48 = vld [vmem:[%s711_s3] sm:$0xff] }
   0x9   :  { %456 = vpow2.f32 %v367_v12  ;;  %v376_v5 = vmul.f32 -1.442695, %v45_v61  ;;  %v377_v6 = vmul.f32 -1.442695, %v46_v63  ;;  %v143_v34 = vld [vmem:[%s709_s2] sm:$0x1] }
   0xa   :  { %458 = vpow2.f32 %v368_v15  ;;  %29 = vst.msk [vmem:[#allocation4] sm:$0xff] %vm28_vm4, %v516_v0 }
   0xb   :  { %460 = vpow2.f32 %v369_v16 }
   0xe   :  { %v447_v17 = vpop.eup %446 }
   0xf   :  { %v449_v18 = vpop.eup %448  ;;  %v95_v19 = vadd.f32 1.0, %v447_v17 }
  0x10   :  { %v451_v20 = vpop.eup %450  ;;  %v96_v21 = vadd.f32 1.0, %v449_v18 }
  0x11   :  { %v453_v22 = vpop.eup %452  ;;  %462 = vrcp.f32 %v95_v19  ;;  %v97_v23 = vadd.f32 1.0, %v451_v20 }
  0x12   :  { %464 = vrcp.f32 %v96_v21  ;;  %v98_v24 = vadd.f32 1.0, %v453_v22  ;;  %v455_v27 = vpop.eup %454 }
  0x13   :  { %466 = vrcp.f32 %v97_v23  ;;  %v457_v28 = vpop.eup %456  ;;  %v99_v31 = vadd.f32 1.0, %v455_v27 }
  0x14   :  { %468 = vrcp.f32 %v98_v24  ;;  %v100_v32 = vadd.f32 1.0, %v457_v28  ;;  %v459_v33 = vpop.eup %458 }
  0x15   :  { %470 = vpow2.f32 %v370_v29  ;;  %v461_v35 = vpop.eup %460  ;;  %v101_v45 = vadd.f32 1.0, %v459_v33 }
  0x16   :  { %472 = vpow2.f32 %v371_v30  ;;  %v102_v46 = vadd.f32 1.0, %v461_v35  ;;  %v144_v35 = vpack.c.bf16 %v143_v34, %v143_v34 }
  0x17   :  { %474 = vrcp.f32 %v99_v31 }
  0x18   :  { %476 = vrcp.f32 %v100_v32 }
  0x19   :  { %478 = vpow2.f32 %v372_v39 }
  0x1a   :  { %480 = vpow2.f32 %v373_v43 }
  0x1b   :  { %v463_v36 = vpop.eup %462  ;;  %482 = vrcp.f32 %v101_v45 }
  0x1c   :  { %v465_v38 = vpop.eup %464  ;;  %484 = vrcp.f32 %v102_v46 }
  0x1d   :  { %v467_v40 = vpop.eup %466  ;;  %v145_v41 = vpack.c.bf16 %v465_v38, %v463_v36  ;;  %486 = vpow2.f32 %v374_v54  ;;  %v518_v36 = vmov -1e+30   ;;  %v624_v38 = vshrl.u32 %v221_v37, 7  ;;  %v270_v54 = vld [vmem:[%s711_s3 + $0x20] sm:$0xff] }
  0x1e   :  { %v469_v42 = vpop.eup %468  ;;  %26 = vst.msk [vmem:[#allocation2] sm:$0xff] %vm25_vm2, %v518_v36  ;;  %v381_v37 = vld [vmem:[%s712_s4] ss:$0 sm:$0xff] }
  0x1f   :  { %v158_v44 = vsel %vm153_vm1, %v145_v41, 0  ;;  %v146_v47 = vpack.c.bf16 %v469_v42, %v467_v40  ;;  %v471_v49 = vpop.eup %470  ;;  %v230_v39 = vsub.s32 0, %v624_v38  ;;  %v630_v40 = vld [vmem:[%s710_s0] ss:$0 sm:$0xff] }
  0x20   :  { %401 = vmatpush3.bf16.xpose.msra.mxu0 %v158_v44  ;;  %v473_v50 = vpop.eup %472  ;;  %v103_v56 = vadd.f32 1.0, %v471_v49  ;;  %vm227_vm3 = vcmp.eq.s32.totalorder %v624_v38, %v630_v40  ;;  %v267_v49 = vld [vmem:[%s711_s3 + $0x8] sm:$0xff] }
  0x21   :  { %402 = vmatprep.subr.bf16.mxu0 %v516_v0  ;;  %v475_v52 = vpop.eup %474  ;;  %v161_v53 = vsel %vm153_vm1, %v146_v47, 0  ;;  %v104_v58 = vadd.f32 1.0, %v473_v50  ;;  %v519_v47 = vmov 0   ;;  %v268_v50 = vld [vmem:[%s711_s3 + $0x10] sm:$0xff]  ;;  %v282_v51 = vpack.c.bf16 %v267_v49, %v266_v48 }
  0x22   :  { %v477_v55 = vpop.eup %476  ;;  %488 = vrcp.f32 %v103_v56  ;;  %444 = vset.pattern.permute.xlu0 %v519_v47  ;;  %445 = vset.pattern.permute.xlu1 %v519_v47 }
  0x23   :  { %v147_v59 = vpack.c.bf16 %v477_v55, %v475_v52  ;;  %v479_v60 = vpop.eup %478  ;;  %490 = vpow2.f32 %v375_v57  ;;  %v269_v52 = vld [vmem:[%s711_s3 + $0x18] sm:$0xff]  ;;  %421 = vmatpush3.bf16.msra.mxu1 %v282_v51  ;;  %v271_v55 = vld [vmem:[%s711_s3 + $0x28] sm:$0xff] }
  0x24   :  { %v481_v62 = vpop.eup %480  ;;  %492 = vrcp.f32 %v104_v58  ;;  %v105_v3 = vadd.f32 1.0, %v479_v60  ;;  %422 = vmatprep.subr.bf16.mxu1 %v516_v0  ;;  %v284_v56 = vpack.c.bf16 %v271_v55, %v270_v54  ;;  %v273_v60 = vld [vmem:[%s711_s3 + $0x38] sm:$0xff] }
  0x25   :  { %v483_v1 = vpop.eup %482  ;;  %v164_v2 = vsel %vm153_vm1, %v147_v59, 0  ;;  %v106_v7 = vadd.f32 1.0, %v481_v62  ;;  %v233_v57 = vld [vmem:[#allocation2] sm:$0xff]  ;;  %v272_v59 = vld [vmem:[%s711_s3 + $0x30] sm:$0xff] }
  0x26   :  { %v485_v4 = vpop.eup %484  ;;  %494 = vrcp.f32 %v105_v3  ;;  %v285_v62 = vpack.c.bf16 %v273_v60, %v272_v59 }
  0x27   :  { %v148_v8 = vpack.c.bf16 %v485_v4, %v483_v1  ;;  %496 = vpow2.f32 %v376_v5  ;;  %v487_v9 = vpop.eup %486  ;;  %v274_v1 = vld [vmem:[%s711_s3 + $0x40] sm:$0xff]  ;;  %v276_v4 = vld [vmem:[%s711_s3 + $0x50] sm:$0xff]  ;;  %v277_v5 = vld [vmem:[%s711_s3 + $0x58] sm:$0xff] }
  0x28   :  { %403 = vmatpush3.bf16.xpose.msra.mxu0 %v161_v53  ;;  %498 = vpow2.f32 %v377_v6  ;;  %v107_v14 = vadd.f32 1.0, %v487_v9  ;;  %v283_v53 = vpack.c.bf16 %v269_v52, %v268_v50  ;;  %v287_v6 = vpack.c.bf16 %v277_v5, %v276_v4 }
  0x29   :  { %404 = vmatprep.subr.bf16.mxu0 %v516_v0  ;;  %500 = vrcp.f32 %v106_v7  ;;  %v167_v12 = vsel %vm153_vm1, %v148_v8, 0  ;;  %v278_v7 = vld [vmem:[%s711_s3 + $0x60] sm:$0xff]  ;;  %v279_v8 = vld [vmem:[%s711_s3 + $0x68] sm:$0xff] }
  0x2a   :  { %502 = vrcp.f32 %v107_v14  ;;  %423 = vmatpush3.bf16.msra.mxu1 %v283_v53  ;;  %v288_v9 = vpack.c.bf16 %v279_v8, %v278_v7 }
  0x2b   :  { %424 = vmatprep.subr.bf16.mxu1 %v516_v0 }
  0x2c   :  { %v489_v10 = vpop.eup %488 }
  0x2d   :  { %v491_v11 = vpop.eup %490 }
  0x2e   :  { %v493_v13 = vpop.eup %492  ;;  %v108_v15 = vadd.f32 1.0, %v491_v11  ;;  %425 = vmatpush3.bf16.msra.mxu1 %v284_v56  ;;  %v281_v11 = vld [vmem:[%s711_s3 + $0x78] sm:$0xff] }
  0x2f   :  { %v149_v16 = vpack.c.bf16 %v493_v13, %v489_v10  ;;  %426 = vmatprep.subr.bf16.mxu1 %v516_v0  ;;  %v280_v10 = vld [vmem:[%s711_s3 + $0x70] sm:$0xff] }
  0x30   :  { %405 = vmatpush3.bf16.xpose.msra.mxu0 %v164_v2  ;;  %v495_v17 = vpop.eup %494  ;;  %504 = vrcp.f32 %v108_v15  ;;  %v275_v2 = vld [vmem:[%s711_s3 + $0x48] sm:$0xff] }
  0x31   :  { %406 = vmatprep.subr.bf16.mxu0 %v516_v0  ;;  %v497_v18 = vpop.eup %496  ;;  %v170_v20 = vsel %vm153_vm1, %v149_v16, 0  ;;  %v286_v3 = vpack.c.bf16 %v275_v2, %v274_v1  ;;  %v380_v16 = vsel %vm227_vm3, 1.0, %v516_v0 }
  0x32   :  { %v499_v19 = vpop.eup %498  ;;  %v109_v22 = vadd.f32 1.0, %v497_v18  ;;  %427 = vmatpush3.bf16.msra.mxu1 %v285_v62 }
  0x33   :  { %v501_v21 = vpop.eup %500  ;;  %v110_v23 = vadd.f32 1.0, %v499_v19  ;;  %428 = vmatprep.subr.bf16.mxu1 %v516_v0 }
  0x34   :  { %v150_v24 = vpack.c.bf16 %v501_v21, %v495_v17  ;;  %506 = vrcp.f32 %v109_v22  ;;  %v503_v25 = vpop.eup %502  ;;  %v251_v22 = vld [vmem:[#allocation3] sm:$0xff] }
  0x35   :  { %508 = vrcp.f32 %v110_v23 }
  0x36   :  { %v173_v26 = vsel %vm153_vm1, %v150_v24, 0  ;;  %429 = vmatpush3.bf16.msra.mxu1 %v286_v3 }
  0x37   :  { %430 = vmatprep.subr.bf16.mxu1 %v516_v0 }
  0x38   :  { %407 = vmatpush3.bf16.xpose.msra.mxu0 %v167_v12  ;;  %v289_v12 = vpack.c.bf16 %v281_v11, %v280_v10 }
  0x39   :  { %408 = vmatprep.subr.bf16.mxu0 %v516_v0 }
  0x3a   :  { %v505_v27 = vpop.eup %504  ;;  %431 = vmatpush3.bf16.msra.mxu1 %v287_v6 }
  0x3b   :  { %v151_v28 = vpack.c.bf16 %v505_v27, %v503_v25  ;;  %432 = vmatprep.subr.bf16.mxu1 %v516_v0 }
  0x3d   :  { %v176_v30 = vsel %vm153_vm1, %v151_v28, 0 }
  0x3e   :  { %v507_v29 = vpop.eup %506  ;;  %433 = vmatpush3.bf16.msra.mxu1 %v288_v9 }
  0x3f   :  { %v509_v31 = vpop.eup %508  ;;  %434 = vmatprep.subr.bf16.mxu1 %v516_v0 }
  0x40   :  { %409 = vmatpush3.bf16.xpose.msra.mxu0 %v170_v20  ;;  %v152_v32 = vpack.c.bf16 %v509_v31, %v507_v29  ;;  %v258_v29 = vld [vmem:[#allocation4] sm:$0xff] }
  0x41   :  { %410 = vmatprep.subr.bf16.mxu0 %v516_v0 }
  0x42   :  { %v179_v33 = vsel %vm153_vm1, %v152_v32, 0  ;;  %435 = vmatpush3.bf16.msra.mxu1 %v289_v12 }
  0x48   :  { %411 = vmatpush3.bf16.xpose.msra.mxu0 %v173_v26 }
  0x49   :  { %412 = vmatprep.subr.bf16.mxu0 %v516_v0 }
  0x50   :  { %413 = vmatpush3.bf16.xpose.msra.mxu0 %v176_v30 }
  0x51   :  { %414 = vmatprep.subr.bf16.mxu0 %v516_v0 }
  0x58   :  { %415 = vmatpush3.bf16.xpose.msra.mxu0 %v179_v33 }
  0x5f   :  { %417 = vmatmul.mubr.msk.bf16.vlgmr.msra.gmra.mrb[0].mxu0 %vm153_vm1, %v144_v35 }
 0x132   :  { %v215_v41 = vpop.f32.mrb[0].mxu0 }
 0x133   :  { %v231_v42 = vrot.slane %v215_v41, %v230_v39  ;;  %v418_v43 = vpop.f32.mrb[1].mxu0 }
 0x134   :  { %v218_v44 = vpop.f32.mrb[2].mxu0 }
 0x135   :  { %v419_v45 = vpop.f32.mrb[3].mxu0  ;;  %v232_v46 = vsel %vm227_vm3, %v231_v42, -1e+30 }
 0x136   :  { %234 = vmax.xlane.f32.xlu0 %v232_v46 }
 0x1c3   :  { %v235_v58 = vpop.xlane.xlu0 %234 }
 0x1c4   :  { %v236_v61 = vmax.f32 %v233_v57, %v235_v58 }
 0x1c6   :  { %v237_v63 = vsub.f32 %v233_v57, %v236_v61  ;;  %333 = vst.msk [vmem:[#allocation2] sm:$0xff] %vm25_vm2, %v236_v61  ;;  %242 = vperm.xlu0 %444, %v236_v61  }
 0x1c8   :  { %v238_v20 = vmul.f32 1.442695, %v237_v63 }
 0x245   :  { %v243_v13 = vpop.permute.xlu0 %242 }
 0x246   :  { %v245_v14 = vsub.f32 %v232_v46, %v243_v13 }
 0x248   :  { %v246_v15 = vmul.f32 1.442695, %v245_v14 }
 0x24a   :  { %510 = vpow2.f32 %v246_v15 }
 0x24b   :  { %512 = vpow2.f32 %v238_v20 }
 0x254   :  { %v511_v17 = vpop.eup %510 }
 0x255   :  { %v250_v18 = vmul.f32 %v511_v17, %v380_v16  ;;  %v513_v21 = vpop.eup %512 }
 0x256   :  { %v252_v23 = vmul.f32 %v513_v21, %v251_v22 }
 0x257   :  { %253 = vadd.xlane.f32.xlu1 %v250_v18  ;;  %v265_v19 = vpack.c.bf16 %v250_v18, %v250_v18 }
 0x259   :  { %437 = vmatmul.mubr.bf16.vlgmr.msra.gmra.mrb[0].mxu1 %v265_v19 }
 0x268   :  { %261 = vperm.xlu1 %445, %v513_v21  }
 0x2e4   :  { %v254_v24 = vpop.xlane.xlu1 %253 }
 0x2e5   :  { %v255_v25 = vadd.f32 %v254_v24, %v252_v23 }
 0x2e7   :  { %257 = vst.msk [vmem:[#allocation3] sm:$0xff] %vm25_vm2, %v255_v25 }
 0x2e8   :  { %v262_v30 = vpop.permute.xlu1 %261 }
 0x2e9   :  { %v264_v31 = vmul.f32 %v262_v30, %v258_v29 }
 0x2ee   :  { %v337_v26 = vld [vmem:[#allocation3] sm:$0xff] }
 0x2ef   :  { %v338_v27 = vmax.f32 %v337_v26, 1e-30 }
 0x2f1   :  { %514 = vrcp.f32 %v338_v27 }
 0x2fb   :  { %v515_v28 = vpop.eup %514 }
 0x2fc   :  { %343 = vperm.xlu1 %445, %v515_v28  }
 0x32c   :  { %v324_v32 = vpop.f32.mrb[0].mxu1 }
 0x32d   :  { %v330_v33 = vadd.f32 %v324_v32, %v264_v31  ;;  %v438_v34 = vpop.f32.mrb[1].mxu1 }
 0x32e   :  { %v327_v0 = vpop.f32.mrb[2].mxu1 }
 0x32f   :  { %332 = vst.msk [vmem:[#allocation4] sm:$0xff] %vm28_vm4, %v330_v33  ;;  %v439_v35 = vpop.f32.mrb[3].mxu1 }
 0x336   :  { %v340_v36 = vld [vmem:[#allocation4] sm:$0xff] }
 0x37b   :  { %v344_v38 = vpop.permute.xlu1 %343 }
 0x37c   :  { %v346_v39 = vmul.f32 %v344_v38, %v340_v36 }
 0x37e   :  { %vm348_vm5 = vcmp.ge.f32.partialorder %v346_v39, 0.0  ;;  %v355_v40 = vmul.f32 %v381_v37, %v346_v39 }
 0x380   :  { %v356_v41 = vsel %vm348_vm5, %v346_v39, %v355_v40 }
 0x381   :  { %357 = vst.msk [vmem:[%s713_s5] sm:$0xff] %vm28_vm4, %v356_v41 }

// kernel: lessr_forward.22
= control target key start
LH: loop header
LB: loop body
LE: loop exit
PB: predicated region body
PF: predicated region fallthrough
CT: control target
= control target key end

     0   :  { %v139_v0 = vmov 0.0   ;;  %vm140_vm0 = vmmov 0   ;;  %s226_s1 = inlined_call_operand.vmem [shape: f32[128,128], index: 1, kind: input, shape index: {}]   ;;  %s227_s0 = inlined_call_operand.vmem [shape: f32[8,128], index: 0, kind: input, shape index: {}]   ;;  %s228_s2 = inlined_call_operand.vmem [shape: f32[1,128], index: 2, kind: input, shape index: {}]   ;;  %s229_s3 = inlined_call_operand.vmem [shape: f32[1,128], index: 3, kind: input, shape index: {}]   ;;  %s230_s4 = inlined_call_operand.vmem [shape: f32[8,128], index: 4, kind: output, shape index: {}]  }
   0x1   :  { %117 = vmatprep.subr.bf16.mxu0 %v139_v0  ;;  %v20_v1 = vld [vmem:[%s226_s1] sm:$0xff]  ;;  %v21_v2 = vld [vmem:[%s226_s1 + $0x8] sm:$0xff]  ;;  %v22_v3 = vld [vmem:[%s226_s1 + $0x10] sm:$0xff]  ;;  %133 = vmatprep.mubr.msk.bf16.mxu0 %vm140_vm0, %v139_v0 }
   0x2   :  { %v36_v4 = vpack.c.bf16 %v21_v2, %v20_v1  ;;  %v23_v5 = vld [vmem:[%s226_s1 + $0x18] sm:$0xff]  ;;  %v24_v7 = vld [vmem:[%s226_s1 + $0x20] sm:$0xff]  ;;  %v25_v8 = vld [vmem:[%s226_s1 + $0x28] sm:$0xff] }
   0x3   :  { %v37_v6 = vpack.c.bf16 %v23_v5, %v22_v3  ;;  %v38_v9 = vpack.c.bf16 %v25_v8, %v24_v7  ;;  %v26_v10 = vld [vmem:[%s226_s1 + $0x30] sm:$0xff]  ;;  %v27_v11 = vld [vmem:[%s226_s1 + $0x38] sm:$0xff]  ;;  %v28_v13 = vld [vmem:[%s226_s1 + $0x40] sm:$0xff] }
   0x4   :  { %118 = vmatpush3.bf16.msra.mxu0 %v36_v4  ;;  %v39_v12 = vpack.c.bf16 %v27_v11, %v26_v10  ;;  %v29_v14 = vld [vmem:[%s226_s1 + $0x48] sm:$0xff]  ;;  %v30_v16 = vld [vmem:[%s226_s1 + $0x50] sm:$0xff]  ;;  %v31_v17 = vld [vmem:[%s226_s1 + $0x58] sm:$0xff] }
   0x5   :  { %119 = vmatprep.subr.bf16.mxu0 %v139_v0  ;;  %v40_v15 = vpack.c.bf16 %v29_v14, %v28_v13  ;;  %v41_v18 = vpack.c.bf16 %v31_v17, %v30_v16  ;;  %v32_v19 = vld [vmem:[%s226_s1 + $0x60] sm:$0xff]  ;;  %v33_v20 = vld [vmem:[%s226_s1 + $0x68] sm:$0xff]  ;;  %v34_v22 = vld [vmem:[%s226_s1 + $0x70] sm:$0xff] }
   0x6   :  { %v42_v21 = vpack.c.bf16 %v33_v20, %v32_v19  ;;  %v35_v23 = vld [vmem:[%s226_s1 + $0x78] sm:$0xff]  ;;  %v18_v25 = vld [vmem:[%s227_s0] sm:$0xff] }
   0x7   :  { %v43_v24 = vpack.c.bf16 %v35_v23, %v34_v22  ;;  %v19_v26 = vpack.c.bf16 %v18_v25, %v18_v25  ;;  %v106_v27 = vld [vmem:[%s228_s2] ss:$0 sm:$0xff] }
   0x8   :  { %120 = vmatpush3.bf16.msra.mxu0 %v37_v6  ;;  %v107_v29 = vld [vmem:[%s229_s3] ss:$0 sm:$0xff] }
   0x9   :  { %121 = vmatprep.subr.bf16.mxu0 %v139_v0 }
   0xc   :  { %122 = vmatpush3.bf16.msra.mxu0 %v38_v9 }
   0xd   :  { %123 = vmatprep.subr.bf16.mxu0 %v139_v0 }
  0x10   :  { %124 = vmatpush3.bf16.msra.mxu0 %v39_v12 }
  0x11   :  { %125 = vmatprep.subr.bf16.mxu0 %v139_v0 }
  0x14   :  { %126 = vmatpush3.bf16.msra.mxu0 %v40_v15 }
  0x15   :  { %127 = vmatprep.subr.bf16.mxu0 %v139_v0 }
  0x18   :  { %128 = vmatpush3.bf16.msra.mxu0 %v41_v18 }
  0x19   :  { %129 = vmatprep.subr.bf16.mxu0 %v139_v0 }
  0x1c   :  { %130 = vmatpush3.bf16.msra.mxu0 %v42_v21 }
  0x1d   :  { %131 = vmatprep.subr.bf16.mxu0 %v139_v0 }
  0x20   :  { %132 = vmatpush3.bf16.msra.mxu0 %v43_v24 }
  0x23   :  { %134 = vmatmul.mubr.bf16.vlgmr.msra.gmra.mrb[0].mxu0 %v19_v26 }
  0xf6   :  { %v85_v28 = vpop.f32.mrb[0].mxu0 }
  0xf7   :  { %v86_v30 = vadd.f32 %v106_v27, %v85_v28  ;;  %v135_v31 = vpop.f32.mrb[1].mxu0 }
  0xf8   :  { %v88_v32 = vpop.f32.mrb[2].mxu0 }
  0xf9   :  { %vm92_vm1 = vcmp.ge.f32.partialorder %v86_v30, 0.0  ;;  %v99_v33 = vmul.f32 %v107_v29, %v86_v30  ;;  %v136_v34 = vpop.f32.mrb[3].mxu0 }
  0xfb   :  { %v100_v35 = vsel %vm92_vm1, %v86_v30, %v99_v33 }
  0xfc   :  { %101 = vst [vmem:[%s230_s4] sm:$0xff] %v100_v35 }

</bundles_post_ra>
